<compile_context>
chip_gen: v7x
topology: tpu7x:2x2x1
jax: 0.10.0
libtpu: 0.0.40
codegen_flags: <defaults>
</compile_context>

<pallas_src>
import math
import jax
import jax.numpy as jnp
from jax.experimental import pallas as pl
from jax.experimental.pallas import tpu as pltpu

# ----------------------------- tiny T5 config --------------------------------
BATCH = 2
SEQ = 8            # encoder and decoder sequence length
D_MODEL = 32
NUM_HEADS = 4
D_KV = 8
D_FF = 64
VOCAB = 64
NUM_LAYERS = 2
NUM_BUCKETS = 32   # T5 defaults
MAX_DISTANCE = 128
NEG_INF = -1e9
PAD_ID = 0         # pad_token_id == decoder_start_token_id == 0 (T5 default)

INNER = NUM_HEADS * D_KV
NT = BATCH * SEQ          # merged (batch*seq) token axis
MXU_BF16 = True           # feed MXU with bf16 operands, accumulate in f32


# --------------------------- slab layouts (static) ----------------------------
def _layout(entries):
    off, cur = {}, 0
    for name, rows in entries:
        off[name] = (cur, rows)
        cur += rows
    return off


W96_ENTRIES = ([(f"enc_wqkv_{i}", D_MODEL) for i in range(NUM_LAYERS)]
               + [(f"dec_wqkv_{i}", D_MODEL) for i in range(NUM_LAYERS)])

W64_ENTRIES = ([(f"enc_wi_{i}", D_MODEL) for i in range(NUM_LAYERS)]
               + [(f"dec_wi_{i}", D_MODEL) for i in range(NUM_LAYERS)]
               + [(f"dec_wkvc_{i}", D_MODEL) for i in range(NUM_LAYERS)]
               + [("embed_T", D_MODEL)])            # tied LM head, pre-transposed

W32_ENTRIES = ([("embed", VOCAB)]
               + [(f"enc_wo_{i}", INNER) for i in range(NUM_LAYERS)]
               + [(f"enc_woff_{i}", D_FF) for i in range(NUM_LAYERS)]
               + [(f"dec_wos_{i}", INNER) for i in range(NUM_LAYERS)]
               + [(f"dec_wqc_{i}", D_MODEL) for i in range(NUM_LAYERS)]
               + [(f"dec_woc_{i}", INNER) for i in range(NUM_LAYERS)]
               + [(f"dec_woff_{i}", D_FF) for i in range(NUM_LAYERS)]
               + [(f"enc_ln1_{i}", 1) for i in range(NUM_LAYERS)]
               + [(f"enc_ln2_{i}", 1) for i in range(NUM_LAYERS)]
               + [("enc_fln", 1)]
               + [(f"dec_ln1_{i}", 1) for i in range(NUM_LAYERS)]
               + [(f"dec_ln2_{i}", 1) for i in range(NUM_LAYERS)]
               + [(f"dec_ln3_{i}", 1) for i in range(NUM_LAYERS)]
               + [("dec_fln", 1)])

W96_LAYOUT = _layout(W96_ENTRIES)
W64_LAYOUT = _layout(W64_ENTRIES)
W32_LAYOUT = _layout(W32_ENTRIES)


def _mdot(a, b):
    """Matmul with bf16 MXU operands and f32 accumulation."""
    if MXU_BF16:
        a = a.astype(jnp.bfloat16)
        b = b.astype(jnp.bfloat16)
    return jnp.dot(a, b, preferred_element_type=jnp.float32)


# --------------------------- fused forward kernel -----------------------------
def _t5_fused_kernel(ids_ref, bias_ref, w96_ref, w64_ref, w32_ref, loss_ref):
    f32 = jnp.float32

    def view(ref, layout, name):
        o, r = layout[name]
        return ref[o:o + r, :]

    w32 = lambda n: view(w32_ref, W32_LAYOUT, n)
    w64 = lambda n: view(w64_ref, W64_LAYOUT, n)
    w96 = lambda n: view(w96_ref, W96_LAYOUT, n)

    embed = w32("embed")          # (V, D)  -- row lookup matrix
    embed_T = w64("embed_T")      # (D, V)  -- tied LM head (pre-transposed)

    # ------ encoder + decoder embedding lookups in ONE one-hot matmul --------
    ids_all = ids_ref[0:2 * NT, :]                               # (2N, 1)
    iota = jax.lax.broadcasted_iota(jnp.int32, (2 * NT, VOCAB), 1)
    onehot = (iota == ids_all).astype(f32)                       # (2N, V)
    emb_all = _mdot(onehot, embed)                               # (2N, D)
    x = emb_all[0:NT, :]                                         # encoder stream
    y = emb_all[NT:2 * NT, :]                                    # decoder stream

    # biases are pre-stacked host-side as (H*N, N) per attention kind
    enc_bias = bias_ref[0:NUM_HEADS * NT, :]
    dec_bias = bias_ref[NUM_HEADS * NT:2 * NUM_HEADS * NT, :]
    cross_bias = bias_ref[2 * NUM_HEADS * NT:3 * NUM_HEADS * NT, :]

    def rmsnorm(v_, wrow):                                       # w (1, D)
        var = jnp.mean(v_ * v_, axis=-1, keepdims=True)
        return v_ * jax.lax.rsqrt(var + 1e-6) * wrow

    def attention(q2d, k2d, v2d, bias, wo):
        # q2d (Nq, INNER), k2d/v2d (Nk, INNER), bias (H*Nq, Nk), wo (INNER, D)
        # T5: no 1/sqrt(d_kv) scaling; bias holds position bias + masks.
        nq = q2d.shape[0]
        kT = jnp.transpose(k2d)                                  # one transpose/call
        s_parts = []
        for h in range(NUM_HEADS):
            sl = slice(h * D_KV, (h + 1) * D_KV)
            s_parts.append(_mdot(q2d[:, sl], kT[sl, :]))         # (Nq, Nk)
        # stacked-head softmax: one max / exp / sum for all heads
        s = jnp.concatenate(s_parts, axis=0) + bias              # (H*Nq, Nk)
        s = s - jnp.max(s, axis=-1, keepdims=True)
        p = jnp.exp(s)
        p = p * pl.reciprocal(jnp.sum(p, axis=-1, keepdims=True), approx=True)
        ctx_parts = []
        for h in range(NUM_HEADS):
            sl = slice(h * D_KV, (h + 1) * D_KV)
            ctx_parts.append(_mdot(p[h * nq:(h + 1) * nq, :], v2d[:, sl]))
        ctx = jnp.concatenate(ctx_parts, axis=1)                 # (Nq, INNER)
        return _mdot(ctx, wo)                                    # single output proj

    def ffn(v_, wi, wo):
        h = jnp.maximum(_mdot(v_, wi), 0.0)
        return _mdot(h, wo)

    # -------------------------------- encoder --------------------------------
    for i in range(NUM_LAYERS):
        nx = rmsnorm(x, w32(f"enc_ln1_{i}"))
        qkv = _mdot(nx, w96(f"enc_wqkv_{i}"))                    # fused Q/K/V
        q, k, v = qkv[:, :INNER], qkv[:, INNER:2 * INNER], qkv[:, 2 * INNER:]
        x = x + attention(q, k, v, enc_bias, w32(f"enc_wo_{i}"))
        nx = rmsnorm(x, w32(f"enc_ln2_{i}"))
        x = x + ffn(nx, w64(f"enc_wi_{i}"), w32(f"enc_woff_{i}"))
    enc_out = rmsnorm(x, w32("enc_fln"))

    # -------------------------------- decoder --------------------------------
    for i in range(NUM_LAYERS):
        ny = rmsnorm(y, w32(f"dec_ln1_{i}"))
        qkv = _mdot(ny, w96(f"dec_wqkv_{i}"))
        q, k, v = qkv[:, :INNER], qkv[:, INNER:2 * INNER], qkv[:, 2 * INNER:]
        y = y + attention(q, k, v, dec_bias, w32(f"dec_wos_{i}"))

        ny = rmsnorm(y, w32(f"dec_ln2_{i}"))
        qc = _mdot(ny, w32(f"dec_wqc_{i}"))
        kv = _mdot(enc_out, w64(f"dec_wkvc_{i}"))                # fused K/V
        kc, vc = kv[:, :INNER], kv[:, INNER:]
        y = y + attention(qc, kc, vc, cross_bias, w32(f"dec_woc_{i}"))

        ny = rmsnorm(y, w32(f"dec_ln3_{i}"))
        y = y + ffn(ny, w64(f"dec_wi_{i}"), w32(f"dec_woff_{i}"))
    y = rmsnorm(y, w32("dec_fln")) * (D_MODEL ** -0.5)           # tied-head scaling

    # -------------------- LM head + CE (ignore_index = -100) ------------------
    logits = _mdot(y, embed_T)                                   # (N, V)
    labels = ids_ref[2 * NT:3 * NT, :]                           # (N, 1) int32
    m = jnp.max(logits, axis=-1, keepdims=True)
    lse = jnp.log(jnp.sum(jnp.exp(logits - m), axis=-1, keepdims=True)) + m
    vocab_iota = jax.lax.broadcasted_iota(jnp.int32, logits.shape, 1)
    sel = jnp.sum(jnp.where(vocab_iota == labels, logits, 0.0),
                  axis=-1, keepdims=True)
    valid = (labels != -100).astype(f32)
    tok_loss = (lse - sel) * valid                               # (N, 1)

    total = jnp.sum(tok_loss, axis=0, keepdims=True)             # (1, 1)
    count = jnp.sum(valid, axis=0, keepdims=True)                # (1, 1)
    loss_ref[...] = total / jnp.maximum(count, 1.0)              # 0/0 guard


# --------------------------- host-side (XLA) helpers ---------------------------
def _relative_position_bucket(relative_position, bidirectional, num_buckets,
                              max_distance):
    relative_buckets = jnp.zeros_like(relative_position)
    if bidirectional:
        num_buckets //= 2
        relative_buckets += (relative_position > 0).astype(jnp.int32) * num_buckets
        relative_position = jnp.abs(relative_position)
    else:
        relative_position = -jnp.minimum(relative_position,
                                         jnp.zeros_like(relative_position))
    max_exact = num_buckets // 2
    is_small = relative_position < max_exact
    rp = jnp.maximum(relative_position, 1).astype(jnp.float32)
    rel_if_large = max_exact + (
        jnp.log(rp / max_exact) / math.log(max_distance / max_exact)
        * (num_buckets - max_exact)
    ).astype(jnp.int32)
    rel_if_large = jnp.minimum(rel_if_large, num_buckets - 1)
    relative_buckets += jnp.where(is_small, relative_position, rel_if_large)
    return relative_buckets


def compute_position_bias(rel_emb, qlen, klen, bidirectional):
    context_position = jnp.arange(qlen, dtype=jnp.int32)[:, None]
    memory_position = jnp.arange(klen, dtype=jnp.int32)[None, :]
    relative_position = memory_position - context_position
    bucket = _relative_position_bucket(relative_position, bidirectional,
                                       NUM_BUCKETS, MAX_DISTANCE)
    values = rel_emb[bucket]                    # (q, k, H)
    return jnp.transpose(values, (2, 0, 1))     # (H, q, k)


def shift_right(labels):
    shifted = jnp.concatenate(
        [jnp.full((labels.shape[0], 1), PAD_ID, labels.dtype), labels[:, :-1]],
        axis=1)
    return jnp.where(shifted == -100, PAD_ID, shifted)


def _batch_block_mask(B, nq, nk):
    # Additive mask forbidding attention across different batch rows once the
    # batch dim is merged into the token axis.
    bq = jnp.arange(B * nq) // nq
    bk = jnp.arange(B * nk) // nk
    return jnp.where(bq[:, None] == bk[None, :], 0.0, NEG_INF).astype(jnp.float32)


def build_bias_slab(params, attention_mask, B, Te, Td):
    # All biases pre-stacked head-major as (H*B*T, B*T) so the kernel can run
    # one fused softmax over all heads.  Built under the same jit as the
    # pallas_call, so nothing round-trips HBM as standalone ops.
    H = NUM_HEADS
    enc_pos = compute_position_bias(params["enc_rel_bias"], Te, Te, True)   # (H,Te,Te)
    dec_pos = compute_position_bias(params["dec_rel_bias"], Td, Td, False)  # (H,Td,Td)
    causal = (1.0 - jnp.tril(jnp.ones((Td, Td), jnp.float32))) * NEG_INF
    key_mask = ((1.0 - attention_mask.astype(jnp.float32)) * NEG_INF).reshape(B * Te)

    enc_self = (jnp.tile(enc_pos, (1, B, B))
                + _batch_block_mask(B, Te, Te)[None]
                + key_mask[None, None, :])                    # (H, B*Te, B*Te)
    dec_self = (jnp.tile(dec_pos + causal[None], (1, B, B))
                + _batch_block_mask(B, Td, Td)[None])         # (H, B*Td, B*Td)
    # NOTE: no decoder key-padding mask (matches HF when decoder_attention_mask
    # is omitted).
    cross = _batch_block_mask(B, Td, Te) + key_mask[None, :]  # (B*Td, B*Te)
    cross = jnp.broadcast_to(cross[None], (H, B * Td, B * Te))

    enc_b = enc_self.reshape(H * B * Te, B * Te)
    dec_b = dec_self.reshape(H * B * Td, B * Td)
    cross_b = cross.reshape(H * B * Td, B * Te)
    return jnp.concatenate([enc_b, dec_b, cross_b], axis=0)   # (3*H*N, N)


def _pack(params, entries):
    arrs = []
    for name, _ in entries:
        if name == "embed_T":
            arrs.append(jnp.transpose(params["embed"]))
        else:
            arrs.append(params[name])
    return jnp.concatenate(arrs, axis=0)


def t5_forward(params, input_ids, attention_mask, labels):
    B, Te = input_ids.shape
    Td = labels.shape[1]

    dec_input_ids = shift_right(labels)
    bias_slab = build_bias_slab(params, attention_mask, B, Te, Td)

    ids_slab = jnp.concatenate(
        [input_ids.reshape(B * Te, 1),
         dec_input_ids.reshape(B * Td, 1),
         labels.reshape(B * Td, 1)], axis=0).astype(jnp.int32)   # (3N, 1)

    w96 = _pack(params, W96_ENTRIES)   # (128, 96)
    w64 = _pack(params, W64_ENTRIES)   # (224, 64)
    w32 = _pack(params, W32_ENTRIES)   # (588, 32)

    vmem = pl.BlockSpec(memory_space=pltpu.MemorySpace.VMEM)
    out = pl.pallas_call(
        _t5_fused_kernel,
        out_shape=jax.ShapeDtypeStruct((1, 1), jnp.float32),
        in_specs=[vmem] * 5,
        out_specs=vmem,
    )(ids_slab, bias_slab, w96, w64, w32)
    return out[0, 0]


# ------------------------------ deterministic init ----------------------------
def init_params(key):
    shapes = {
        "embed": ((VOCAB, D_MODEL), 1.0),
        "enc_rel_bias": ((NUM_BUCKETS, NUM_HEADS), 0.5),
        "dec_rel_bias": ((NUM_BUCKETS, NUM_HEADS), 0.5),
    }
    for i in range(NUM_LAYERS):
        shapes[f"enc_wqkv_{i}"] = ((D_MODEL, 3 * INNER), 0.05)
        shapes[f"enc_wo_{i}"] = ((INNER, D_MODEL), 0.05)
        shapes[f"enc_wi_{i}"] = ((D_MODEL, D_FF), 0.05)
        shapes[f"enc_woff_{i}"] = ((D_FF, D_MODEL), 0.05)
        shapes[f"dec_wqkv_{i}"] = ((D_MODEL, 3 * INNER), 0.05)
        shapes[f"dec_wos_{i}"] = ((INNER, D_MODEL), 0.05)
        shapes[f"dec_wqc_{i}"] = ((D_MODEL, INNER), 0.05)
        shapes[f"dec_wkvc_{i}"] = ((D_MODEL, 2 * INNER), 0.05)
        shapes[f"dec_woc_{i}"] = ((INNER, D_MODEL), 0.05)
        shapes[f"dec_wi_{i}"] = ((D_MODEL, D_FF), 0.05)
        shapes[f"dec_woff_{i}"] = ((D_FF, D_MODEL), 0.05)

    names = sorted(shapes.keys())
    keys = jax.random.split(key, len(names))
    params = {}
    for k, name in zip(keys, names):
        shp, scale = shapes[name]
        params[name] = jax.random.normal(k, shp, jnp.float32) * scale

    for i in range(NUM_LAYERS):
        for p in ("enc_ln1", "enc_ln2", "dec_ln1", "dec_ln2", "dec_ln3"):
            params[f"{p}_{i}"] = jnp.ones((1, D_MODEL), jnp.float32)
    params["enc_fln"] = jnp.ones((1, D_MODEL), jnp.float32)
    params["dec_fln"] = jnp.ones((1, D_MODEL), jnp.float32)
    return params


# ------------------------------------ main ------------------------------------
if __name__ == "__main__":
    key = jax.random.PRNGKey(0)
    kp, ki, kl = jax.random.split(key, 3)
    params = init_params(kp)

    input_ids = jax.random.randint(ki, (BATCH, SEQ), 1, VOCAB, dtype=jnp.int32)
    attention_mask = jnp.ones((BATCH, SEQ), jnp.int32).at[:, -1].set(0)
    labels = jax.random.randint(kl, (BATCH, SEQ), 1, VOCAB, dtype=jnp.int32)
    labels = labels.at[:, -2:].set(-100)   # ignored (padded) label positions

    loss = jax.jit(t5_forward)(params, input_ids, attention_mask, labels)
    loss = jax.block_until_ready(loss)
    assert loss.shape == () and bool(jnp.isfinite(loss))
    print("KERNEL_OK")
</pallas_src>

<mosaic_0001>
module attributes {stable_mosaic.version = 11 : i64} {
  func.func @_t5_fused_kernel(%arg0: memref<48x1xi32, #tpu.memory_space<vmem>>, %arg1: memref<192x16xf32, #tpu.memory_space<vmem>>, %arg2: memref<128x96xf32, #tpu.memory_space<vmem>>, %arg3: memref<224x64xf32, #tpu.memory_space<vmem>>, %arg4: memref<588x32xf32, #tpu.memory_space<vmem>>, %arg5: memref<1x1xf32, #tpu.memory_space<vmem>>) attributes {dimension_semantics = [], scalar_prefetch = 0 : i64, scratch_operands = 0 : i64, tpu.core_type = #tpu.core_type<tc>} {
    %c0 = arith.constant 0 : index
    %c0_0 = arith.constant 0 : index
    %0 = vector.load %arg4[%c0, %c0_0] : memref<588x32xf32, #tpu.memory_space<vmem>>, vector<64x32xf32>
    %c192 = arith.constant 192 : index
    %c0_1 = arith.constant 0 : index
    %1 = vector.load %arg3[%c192, %c0_1] : memref<224x64xf32, #tpu.memory_space<vmem>>, vector<32x64xf32>
    %c0_2 = arith.constant 0 : index
    %c0_3 = arith.constant 0 : index
    %2 = vector.load %arg0[%c0_2, %c0_3] : memref<48x1xi32, #tpu.memory_space<vmem>>, vector<32x1xi32>
    %3 = tpu.iota {dimensions = array<i32: 1>} : vector<32x64xi32>
    %4 = vector.broadcast %2 : vector<32x1xi32> to vector<32x64xi32>
    %5 = arith.cmpi eq, %3, %4 : vector<32x64xi32>
    %6 = arith.extui %5 : vector<32x64xi1> to vector<32x64xi32>
    %7 = arith.sitofp %6 : vector<32x64xi32> to vector<32x64xf32>
    %8 = arith.truncf %7 : vector<32x64xf32> to vector<32x64xbf16>
    %9 = arith.truncf %0 : vector<64x32xf32> to vector<64x32xbf16>
    %cst = arith.constant dense<0.000000e+00> : vector<32x32xf32>
    %10 = tpu.matmul %8, %9, %cst {dimension_numbers = #tpu.dot_dimension_numbers<[1], [0], [0], [1], [0, 0, 1, 1], [], []>} : vector<32x64xbf16>, vector<64x32xbf16>, vector<32x32xf32> -> vector<32x32xf32>
    %11 = vector.extract_strided_slice %10 {offsets = [0, 0], sizes = [16, 32], strides = [1, 1]} : vector<32x32xf32> to vector<16x32xf32>
    %12 = vector.extract_strided_slice %10 {offsets = [16, 0], sizes = [16, 32], strides = [1, 1]} : vector<32x32xf32> to vector<16x32xf32>
    %c0_4 = arith.constant 0 : index
    %c0_5 = arith.constant 0 : index
    %13 = vector.load %arg1[%c0_4, %c0_5] : memref<192x16xf32, #tpu.memory_space<vmem>>, vector<64x16xf32>
    %c64 = arith.constant 64 : index
    %c0_6 = arith.constant 0 : index
    %14 = vector.load %arg1[%c64, %c0_6] : memref<192x16xf32, #tpu.memory_space<vmem>>, vector<64x16xf32>
    %c128 = arith.constant 128 : index
    %c0_7 = arith.constant 0 : index
    %15 = vector.load %arg1[%c128, %c0_7] : memref<192x16xf32, #tpu.memory_space<vmem>>, vector<64x16xf32>
    %c576 = arith.constant 576 : index
    %c0_8 = arith.constant 0 : index
    %16 = vector.load %arg4[%c576, %c0_8] : memref<588x32xf32, #tpu.memory_space<vmem>>, vector<1x32xf32>
    %17 = arith.mulf %11, %11 : vector<16x32xf32>
    %cst_9 = arith.constant dense<0.000000e+00> : vector<16xf32>
    %18 = vector.multi_reduction <add>, %17, %cst_9 [1] : vector<16x32xf32> to vector<16xf32>
    %19 = vector.shape_cast %18 : vector<16xf32> to vector<16x1xf32>
    %cst_10 = arith.constant 3.200000e+01 : f32
    %20 = vector.broadcast %cst_10 : f32 to vector<16x1xf32>
    %21 = arith.divf %19, %20 : vector<16x1xf32>
    %cst_11 = arith.constant 9.99999997E-7 : f32
    %22 = vector.broadcast %cst_11 : f32 to vector<16x1xf32>
    %23 = arith.addf %21, %22 : vector<16x1xf32>
    %24 = math.rsqrt %23 : vector<16x1xf32>
    %25 = vector.broadcast %24 : vector<16x1xf32> to vector<16x32xf32>
    %26 = arith.mulf %11, %25 : vector<16x32xf32>
    %27 = vector.broadcast %16 : vector<1x32xf32> to vector<16x32xf32>
    %28 = arith.mulf %26, %27 : vector<16x32xf32>
    %c0_12 = arith.constant 0 : index
    %c0_13 = arith.constant 0 : index
    %29 = vector.load %arg2[%c0_12, %c0_13] : memref<128x96xf32, #tpu.memory_space<vmem>>, vector<32x96xf32>
    %30 = arith.truncf %28 : vector<16x32xf32> to vector<16x32xbf16>
    %31 = arith.truncf %29 : vector<32x96xf32> to vector<32x96xbf16>
    %cst_14 = arith.constant dense<0.000000e+00> : vector<16x96xf32>
    %32 = tpu.matmul %30, %31, %cst_14 {dimension_numbers = #tpu.dot_dimension_numbers<[1], [0], [0], [1], [0, 0, 1, 1], [], []>} : vector<16x32xbf16>, vector<32x96xbf16>, vector<16x96xf32> -> vector<16x96xf32>
    %33 = vector.extract_strided_slice %32 {offsets = [0, 0], sizes = [16, 32], strides = [1, 1]} : vector<16x96xf32> to vector<16x32xf32>
    %34 = vector.extract_strided_slice %32 {offsets = [0, 32], sizes = [16, 32], strides = [1, 1]} : vector<16x96xf32> to vector<16x32xf32>
    %35 = vector.extract_strided_slice %32 {offsets = [0, 64], sizes = [16, 32], strides = [1, 1]} : vector<16x96xf32> to vector<16x32xf32>
    %c64_15 = arith.constant 64 : index
    %c0_16 = arith.constant 0 : index
    %36 = vector.load %arg4[%c64_15, %c0_16] : memref<588x32xf32, #tpu.memory_space<vmem>>, vector<32x32xf32>
    %37 = tpu.transpose %34, [1, 0] : vector<16x32xf32> -> vector<32x16xf32>
    %38 = vector.extract_strided_slice %33 {offsets = [0, 0], sizes = [16, 8], strides = [1, 1]} : vector<16x32xf32> to vector<16x8xf32>
    %39 = vector.extract_strided_slice %37 {offsets = [0, 0], sizes = [8, 16], strides = [1, 1]} : vector<32x16xf32> to vector<8x16xf32>
    %40 = arith.truncf %38 : vector<16x8xf32> to vector<16x8xbf16>
    %41 = arith.truncf %39 : vector<8x16xf32> to vector<8x16xbf16>
    %cst_17 = arith.constant dense<0.000000e+00> : vector<16x16xf32>
    %42 = tpu.matmul %40, %41, %cst_17 {dimension_numbers = #tpu.dot_dimension_numbers<[1], [0], [0], [1], [0, 0, 1, 1], [], []>} : vector<16x8xbf16>, vector<8x16xbf16>, vector<16x16xf32> -> vector<16x16xf32>
    %43 = vector.extract_strided_slice %33 {offsets = [0, 8], sizes = [16, 8], strides = [1, 1]} : vector<16x32xf32> to vector<16x8xf32>
    %44 = vector.extract_strided_slice %37 {offsets = [8, 0], sizes = [8, 16], strides = [1, 1]} : vector<32x16xf32> to vector<8x16xf32>
    %45 = arith.truncf %43 : vector<16x8xf32> to vector<16x8xbf16>
    %46 = arith.truncf %44 : vector<8x16xf32> to vector<8x16xbf16>
    %cst_18 = arith.constant dense<0.000000e+00> : vector<16x16xf32>
    %47 = tpu.matmul %45, %46, %cst_18 {dimension_numbers = #tpu.dot_dimension_numbers<[1], [0], [0], [1], [0, 0, 1, 1], [], []>} : vector<16x8xbf16>, vector<8x16xbf16>, vector<16x16xf32> -> vector<16x16xf32>
    %48 = vector.extract_strided_slice %33 {offsets = [0, 16], sizes = [16, 8], strides = [1, 1]} : vector<16x32xf32> to vector<16x8xf32>
    %49 = vector.extract_strided_slice %37 {offsets = [16, 0], sizes = [8, 16], strides = [1, 1]} : vector<32x16xf32> to vector<8x16xf32>
    %50 = arith.truncf %48 : vector<16x8xf32> to vector<16x8xbf16>
    %51 = arith.truncf %49 : vector<8x16xf32> to vector<8x16xbf16>
    %cst_19 = arith.constant dense<0.000000e+00> : vector<16x16xf32>
    %52 = tpu.matmul %50, %51, %cst_19 {dimension_numbers = #tpu.dot_dimension_numbers<[1], [0], [0], [1], [0, 0, 1, 1], [], []>} : vector<16x8xbf16>, vector<8x16xbf16>, vector<16x16xf32> -> vector<16x16xf32>
    %53 = vector.extract_strided_slice %33 {offsets = [0, 24], sizes = [16, 8], strides = [1, 1]} : vector<16x32xf32> to vector<16x8xf32>
    %54 = vector.extract_strided_slice %37 {offsets = [24, 0], sizes = [8, 16], strides = [1, 1]} : vector<32x16xf32> to vector<8x16xf32>
    %55 = arith.truncf %53 : vector<16x8xf32> to vector<16x8xbf16>
    %56 = arith.truncf %54 : vector<8x16xf32> to vector<8x16xbf16>
    %cst_20 = arith.constant dense<0.000000e+00> : vector<16x16xf32>
    %57 = tpu.matmul %55, %56, %cst_20 {dimension_numbers = #tpu.dot_dimension_numbers<[1], [0], [0], [1], [0, 0, 1, 1], [], []>} : vector<16x8xbf16>, vector<8x16xbf16>, vector<16x16xf32> -> vector<16x16xf32>
    %58 = tpu.concatenate %42, %47, %52, %57 in 0 : vector<16x16xf32>, vector<16x16xf32>, vector<16x16xf32>, vector<16x16xf32> -> vector<64x16xf32>
    %59 = arith.addf %58, %13 : vector<64x16xf32>
    %cst_21 = arith.constant dense<0xFF800000> : vector<64xf32>
    %60 = vector.multi_reduction <maximumf>, %59, %cst_21 [1] : vector<64x16xf32> to vector<64xf32>
    %61 = vector.shape_cast %60 : vector<64xf32> to vector<64x1xf32>
    %62 = vector.broadcast %61 : vector<64x1xf32> to vector<64x16xf32>
    %63 = arith.subf %59, %62 : vector<64x16xf32>
    %64 = math.exp %63 : vector<64x16xf32>
    %cst_22 = arith.constant dense<0.000000e+00> : vector<64xf32>
    %65 = vector.multi_reduction <add>, %64, %cst_22 [1] : vector<64x16xf32> to vector<64xf32>
    %66 = vector.shape_cast %65 : vector<64xf32> to vector<64x1xf32>
    %67 = tpu.reciprocal %66 {approx = true} : vector<64x1xf32> -> vector<64x1xf32>
    %68 = vector.broadcast %67 : vector<64x1xf32> to vector<64x16xf32>
    %69 = arith.mulf %64, %68 : vector<64x16xf32>
    %70 = vector.extract_strided_slice %69 {offsets = [0, 0], sizes = [16, 16], strides = [1, 1]} : vector<64x16xf32> to vector<16x16xf32>
    %71 = vector.extract_strided_slice %35 {offsets = [0, 0], sizes = [16, 8], strides = [1, 1]} : vector<16x32xf32> to vector<16x8xf32>
    %72 = arith.truncf %70 : vector<16x16xf32> to vector<16x16xbf16>
    %73 = arith.truncf %71 : vector<16x8xf32> to vector<16x8xbf16>
    %cst_23 = arith.constant dense<0.000000e+00> : vector<16x8xf32>
    %74 = tpu.matmul %72, %73, %cst_23 {dimension_numbers = #tpu.dot_dimension_numbers<[1], [0], [0], [1], [0, 0, 1, 1], [], []>} : vector<16x16xbf16>, vector<16x8xbf16>, vector<16x8xf32> -> vector<16x8xf32>
    %75 = vector.extract_strided_slice %69 {offsets = [16, 0], sizes = [16, 16], strides = [1, 1]} : vector<64x16xf32> to vector<16x16xf32>
    %76 = vector.extract_strided_slice %35 {offsets = [0, 8], sizes = [16, 8], strides = [1, 1]} : vector<16x32xf32> to vector<16x8xf32>
    %77 = arith.truncf %75 : vector<16x16xf32> to vector<16x16xbf16>
    %78 = arith.truncf %76 : vector<16x8xf32> to vector<16x8xbf16>
    %cst_24 = arith.constant dense<0.000000e+00> : vector<16x8xf32>
    %79 = tpu.matmul %77, %78, %cst_24 {dimension_numbers = #tpu.dot_dimension_numbers<[1], [0], [0], [1], [0, 0, 1, 1], [], []>} : vector<16x16xbf16>, vector<16x8xbf16>, vector<16x8xf32> -> vector<16x8xf32>
    %80 = vector.extract_strided_slice %69 {offsets = [32, 0], sizes = [16, 16], strides = [1, 1]} : vector<64x16xf32> to vector<16x16xf32>
    %81 = vector.extract_strided_slice %35 {offsets = [0, 16], sizes = [16, 8], strides = [1, 1]} : vector<16x32xf32> to vector<16x8xf32>
    %82 = arith.truncf %80 : vector<16x16xf32> to vector<16x16xbf16>
    %83 = arith.truncf %81 : vector<16x8xf32> to vector<16x8xbf16>
    %cst_25 = arith.constant dense<0.000000e+00> : vector<16x8xf32>
    %84 = tpu.matmul %82, %83, %cst_25 {dimension_numbers = #tpu.dot_dimension_numbers<[1], [0], [0], [1], [0, 0, 1, 1], [], []>} : vector<16x16xbf16>, vector<16x8xbf16>, vector<16x8xf32> -> vector<16x8xf32>
    %85 = vector.extract_strided_slice %69 {offsets = [48, 0], sizes = [16, 16], strides = [1, 1]} : vector<64x16xf32> to vector<16x16xf32>
    %86 = vector.extract_strided_slice %35 {offsets = [0, 24], sizes = [16, 8], strides = [1, 1]} : vector<16x32xf32> to vector<16x8xf32>
    %87 = arith.truncf %85 : vector<16x16xf32> to vector<16x16xbf16>
    %88 = arith.truncf %86 : vector<16x8xf32> to vector<16x8xbf16>
    %cst_26 = arith.constant dense<0.000000e+00> : vector<16x8xf32>
    %89 = tpu.matmul %87, %88, %cst_26 {dimension_numbers = #tpu.dot_dimension_numbers<[1], [0], [0], [1], [0, 0, 1, 1], [], []>} : vector<16x16xbf16>, vector<16x8xbf16>, vector<16x8xf32> -> vector<16x8xf32>
    %90 = tpu.concatenate %74, %79, %84, %89 in 1 : vector<16x8xf32>, vector<16x8xf32>, vector<16x8xf32>, vector<16x8xf32> -> vector<16x32xf32>
    %91 = arith.truncf %90 : vector<16x32xf32> to vector<16x32xbf16>
    %92 = arith.truncf %36 : vector<32x32xf32> to vector<32x32xbf16>
    %cst_27 = arith.constant dense<0.000000e+00> : vector<16x32xf32>
    %93 = tpu.matmul %91, %92, %cst_27 {dimension_numbers = #tpu.dot_dimension_numbers<[1], [0], [0], [1], [0, 0, 1, 1], [], []>} : vector<16x32xbf16>, vector<32x32xbf16>, vector<16x32xf32> -> vector<16x32xf32>
    %94 = arith.addf %11, %93 : vector<16x32xf32>
    %c578 = arith.constant 578 : index
    %c0_28 = arith.constant 0 : index
    %95 = vector.load %arg4[%c578, %c0_28] : memref<588x32xf32, #tpu.memory_space<vmem>>, vector<1x32xf32>
    %96 = arith.mulf %94, %94 : vector<16x32xf32>
    %cst_29 = arith.constant dense<0.000000e+00> : vector<16xf32>
    %97 = vector.multi_reduction <add>, %96, %cst_29 [1] : vector<16x32xf32> to vector<16xf32>
    %98 = vector.shape_cast %97 : vector<16xf32> to vector<16x1xf32>
    %cst_30 = arith.constant 3.200000e+01 : f32
    %99 = vector.broadcast %cst_30 : f32 to vector<16x1xf32>
    %100 = arith.divf %98, %99 : vector<16x1xf32>
    %cst_31 = arith.constant 9.99999997E-7 : f32
    %101 = vector.broadcast %cst_31 : f32 to vector<16x1xf32>
    %102 = arith.addf %100, %101 : vector<16x1xf32>
    %103 = math.rsqrt %102 : vector<16x1xf32>
    %104 = vector.broadcast %103 : vector<16x1xf32> to vector<16x32xf32>
    %105 = arith.mulf %94, %104 : vector<16x32xf32>
    %106 = vector.broadcast %95 : vector<1x32xf32> to vector<16x32xf32>
    %107 = arith.mulf %105, %106 : vector<16x32xf32>
    %c0_32 = arith.constant 0 : index
    %c0_33 = arith.constant 0 : index
    %108 = vector.load %arg3[%c0_32, %c0_33] : memref<224x64xf32, #tpu.memory_space<vmem>>, vector<32x64xf32>
    %c128_34 = arith.constant 128 : index
    %c0_35 = arith.constant 0 : index
    %109 = vector.load %arg4[%c128_34, %c0_35] : memref<588x32xf32, #tpu.memory_space<vmem>>, vector<64x32xf32>
    %110 = arith.truncf %107 : vector<16x32xf32> to vector<16x32xbf16>
    %111 = arith.truncf %108 : vector<32x64xf32> to vector<32x64xbf16>
    %cst_36 = arith.constant dense<0.000000e+00> : vector<16x64xf32>
    %112 = tpu.matmul %110, %111, %cst_36 {dimension_numbers = #tpu.dot_dimension_numbers<[1], [0], [0], [1], [0, 0, 1, 1], [], []>} : vector<16x32xbf16>, vector<32x64xbf16>, vector<16x64xf32> -> vector<16x64xf32>
    %cst_37 = arith.constant 0.000000e+00 : f32
    %113 = vector.broadcast %cst_37 : f32 to vector<16x64xf32>
    %114 = arith.maximumf %112, %113 : vector<16x64xf32>
    %115 = arith.truncf %114 : vector<16x64xf32> to vector<16x64xbf16>
    %116 = arith.truncf %109 : vector<64x32xf32> to vector<64x32xbf16>
    %cst_38 = arith.constant dense<0.000000e+00> : vector<16x32xf32>
    %117 = tpu.matmul %115, %116, %cst_38 {dimension_numbers = #tpu.dot_dimension_numbers<[1], [0], [0], [1], [0, 0, 1, 1], [], []>} : vector<16x64xbf16>, vector<64x32xbf16>, vector<16x32xf32> -> vector<16x32xf32>
    %118 = arith.addf %94, %117 : vector<16x32xf32>
    %c577 = arith.constant 577 : index
    %c0_39 = arith.constant 0 : index
    %119 = vector.load %arg4[%c577, %c0_39] : memref<588x32xf32, #tpu.memory_space<vmem>>, vector<1x32xf32>
    %120 = arith.mulf %118, %118 : vector<16x32xf32>
    %cst_40 = arith.constant dense<0.000000e+00> : vector<16xf32>
    %121 = vector.multi_reduction <add>, %120, %cst_40 [1] : vector<16x32xf32> to vector<16xf32>
    %122 = vector.shape_cast %121 : vector<16xf32> to vector<16x1xf32>
    %cst_41 = arith.constant 3.200000e+01 : f32
    %123 = vector.broadcast %cst_41 : f32 to vector<16x1xf32>
    %124 = arith.divf %122, %123 : vector<16x1xf32>
    %cst_42 = arith.constant 9.99999997E-7 : f32
    %125 = vector.broadcast %cst_42 : f32 to vector<16x1xf32>
    %126 = arith.addf %124, %125 : vector<16x1xf32>
    %127 = math.rsqrt %126 : vector<16x1xf32>
    %128 = vector.broadcast %127 : vector<16x1xf32> to vector<16x32xf32>
    %129 = arith.mulf %118, %128 : vector<16x32xf32>
    %130 = vector.broadcast %119 : vector<1x32xf32> to vector<16x32xf32>
    %131 = arith.mulf %129, %130 : vector<16x32xf32>
    %c32 = arith.constant 32 : index
    %c0_43 = arith.constant 0 : index
    %132 = vector.load %arg2[%c32, %c0_43] : memref<128x96xf32, #tpu.memory_space<vmem>>, vector<32x96xf32>
    %133 = arith.truncf %131 : vector<16x32xf32> to vector<16x32xbf16>
    %134 = arith.truncf %132 : vector<32x96xf32> to vector<32x96xbf16>
    %cst_44 = arith.constant dense<0.000000e+00> : vector<16x96xf32>
    %135 = tpu.matmul %133, %134, %cst_44 {dimension_numbers = #tpu.dot_dimension_numbers<[1], [0], [0], [1], [0, 0, 1, 1], [], []>} : vector<16x32xbf16>, vector<32x96xbf16>, vector<16x96xf32> -> vector<16x96xf32>
    %136 = vector.extract_strided_slice %135 {offsets = [0, 0], sizes = [16, 32], strides = [1, 1]} : vector<16x96xf32> to vector<16x32xf32>
    %137 = vector.extract_strided_slice %135 {offsets = [0, 32], sizes = [16, 32], strides = [1, 1]} : vector<16x96xf32> to vector<16x32xf32>
    %138 = vector.extract_strided_slice %135 {offsets = [0, 64], sizes = [16, 32], strides = [1, 1]} : vector<16x96xf32> to vector<16x32xf32>
    %c96 = arith.constant 96 : index
    %c0_45 = arith.constant 0 : index
    %139 = vector.load %arg4[%c96, %c0_45] : memref<588x32xf32, #tpu.memory_space<vmem>>, vector<32x32xf32>
    %140 = tpu.transpose %137, [1, 0] : vector<16x32xf32> -> vector<32x16xf32>
    %141 = vector.extract_strided_slice %136 {offsets = [0, 0], sizes = [16, 8], strides = [1, 1]} : vector<16x32xf32> to vector<16x8xf32>
    %142 = vector.extract_strided_slice %140 {offsets = [0, 0], sizes = [8, 16], strides = [1, 1]} : vector<32x16xf32> to vector<8x16xf32>
    %143 = arith.truncf %141 : vector<16x8xf32> to vector<16x8xbf16>
    %144 = arith.truncf %142 : vector<8x16xf32> to vector<8x16xbf16>
    %cst_46 = arith.constant dense<0.000000e+00> : vector<16x16xf32>
    %145 = tpu.matmul %143, %144, %cst_46 {dimension_numbers = #tpu.dot_dimension_numbers<[1], [0], [0], [1], [0, 0, 1, 1], [], []>} : vector<16x8xbf16>, vector<8x16xbf16>, vector<16x16xf32> -> vector<16x16xf32>
    %146 = vector.extract_strided_slice %136 {offsets = [0, 8], sizes = [16, 8], strides = [1, 1]} : vector<16x32xf32> to vector<16x8xf32>
    %147 = vector.extract_strided_slice %140 {offsets = [8, 0], sizes = [8, 16], strides = [1, 1]} : vector<32x16xf32> to vector<8x16xf32>
    %148 = arith.truncf %146 : vector<16x8xf32> to vector<16x8xbf16>
    %149 = arith.truncf %147 : vector<8x16xf32> to vector<8x16xbf16>
    %cst_47 = arith.constant dense<0.000000e+00> : vector<16x16xf32>
    %150 = tpu.matmul %148, %149, %cst_47 {dimension_numbers = #tpu.dot_dimension_numbers<[1], [0], [0], [1], [0, 0, 1, 1], [], []>} : vector<16x8xbf16>, vector<8x16xbf16>, vector<16x16xf32> -> vector<16x16xf32>
    %151 = vector.extract_strided_slice %136 {offsets = [0, 16], sizes = [16, 8], strides = [1, 1]} : vector<16x32xf32> to vector<16x8xf32>
    %152 = vector.extract_strided_slice %140 {offsets = [16, 0], sizes = [8, 16], strides = [1, 1]} : vector<32x16xf32> to vector<8x16xf32>
    %153 = arith.truncf %151 : vector<16x8xf32> to vector<16x8xbf16>
    %154 = arith.truncf %152 : vector<8x16xf32> to vector<8x16xbf16>
    %cst_48 = arith.constant dense<0.000000e+00> : vector<16x16xf32>
    %155 = tpu.matmul %153, %154, %cst_48 {dimension_numbers = #tpu.dot_dimension_numbers<[1], [0], [0], [1], [0, 0, 1, 1], [], []>} : vector<16x8xbf16>, vector<8x16xbf16>, vector<16x16xf32> -> vector<16x16xf32>
    %156 = vector.extract_strided_slice %136 {offsets = [0, 24], sizes = [16, 8], strides = [1, 1]} : vector<16x32xf32> to vector<16x8xf32>
    %157 = vector.extract_strided_slice %140 {offsets = [24, 0], sizes = [8, 16], strides = [1, 1]} : vector<32x16xf32> to vector<8x16xf32>
    %158 = arith.truncf %156 : vector<16x8xf32> to vector<16x8xbf16>
    %159 = arith.truncf %157 : vector<8x16xf32> to vector<8x16xbf16>
    %cst_49 = arith.constant dense<0.000000e+00> : vector<16x16xf32>
    %160 = tpu.matmul %158, %159, %cst_49 {dimension_numbers = #tpu.dot_dimension_numbers<[1], [0], [0], [1], [0, 0, 1, 1], [], []>} : vector<16x8xbf16>, vector<8x16xbf16>, vector<16x16xf32> -> vector<16x16xf32>
    %161 = tpu.concatenate %145, %150, %155, %160 in 0 : vector<16x16xf32>, vector<16x16xf32>, vector<16x16xf32>, vector<16x16xf32> -> vector<64x16xf32>
    %162 = arith.addf %161, %13 : vector<64x16xf32>
    %cst_50 = arith.constant dense<0xFF800000> : vector<64xf32>
    %163 = vector.multi_reduction <maximumf>, %162, %cst_50 [1] : vector<64x16xf32> to vector<64xf32>
    %164 = vector.shape_cast %163 : vector<64xf32> to vector<64x1xf32>
    %165 = vector.broadcast %164 : vector<64x1xf32> to vector<64x16xf32>
    %166 = arith.subf %162, %165 : vector<64x16xf32>
    %167 = math.exp %166 : vector<64x16xf32>
    %cst_51 = arith.constant dense<0.000000e+00> : vector<64xf32>
    %168 = vector.multi_reduction <add>, %167, %cst_51 [1] : vector<64x16xf32> to vector<64xf32>
    %169 = vector.shape_cast %168 : vector<64xf32> to vector<64x1xf32>
    %170 = tpu.reciprocal %169 {approx = true} : vector<64x1xf32> -> vector<64x1xf32>
    %171 = vector.broadcast %170 : vector<64x1xf32> to vector<64x16xf32>
    %172 = arith.mulf %167, %171 : vector<64x16xf32>
    %173 = vector.extract_strided_slice %172 {offsets = [0, 0], sizes = [16, 16], strides = [1, 1]} : vector<64x16xf32> to vector<16x16xf32>
    %174 = vector.extract_strided_slice %138 {offsets = [0, 0], sizes = [16, 8], strides = [1, 1]} : vector<16x32xf32> to vector<16x8xf32>
    %175 = arith.truncf %173 : vector<16x16xf32> to vector<16x16xbf16>
    %176 = arith.truncf %174 : vector<16x8xf32> to vector<16x8xbf16>
    %cst_52 = arith.constant dense<0.000000e+00> : vector<16x8xf32>
    %177 = tpu.matmul %175, %176, %cst_52 {dimension_numbers = #tpu.dot_dimension_numbers<[1], [0], [0], [1], [0, 0, 1, 1], [], []>} : vector<16x16xbf16>, vector<16x8xbf16>, vector<16x8xf32> -> vector<16x8xf32>
    %178 = vector.extract_strided_slice %172 {offsets = [16, 0], sizes = [16, 16], strides = [1, 1]} : vector<64x16xf32> to vector<16x16xf32>
    %179 = vector.extract_strided_slice %138 {offsets = [0, 8], sizes = [16, 8], strides = [1, 1]} : vector<16x32xf32> to vector<16x8xf32>
    %180 = arith.truncf %178 : vector<16x16xf32> to vector<16x16xbf16>
    %181 = arith.truncf %179 : vector<16x8xf32> to vector<16x8xbf16>
    %cst_53 = arith.constant dense<0.000000e+00> : vector<16x8xf32>
    %182 = tpu.matmul %180, %181, %cst_53 {dimension_numbers = #tpu.dot_dimension_numbers<[1], [0], [0], [1], [0, 0, 1, 1], [], []>} : vector<16x16xbf16>, vector<16x8xbf16>, vector<16x8xf32> -> vector<16x8xf32>
    %183 = vector.extract_strided_slice %172 {offsets = [32, 0], sizes = [16, 16], strides = [1, 1]} : vector<64x16xf32> to vector<16x16xf32>
    %184 = vector.extract_strided_slice %138 {offsets = [0, 16], sizes = [16, 8], strides = [1, 1]} : vector<16x32xf32> to vector<16x8xf32>
    %185 = arith.truncf %183 : vector<16x16xf32> to vector<16x16xbf16>
    %186 = arith.truncf %184 : vector<16x8xf32> to vector<16x8xbf16>
    %cst_54 = arith.constant dense<0.000000e+00> : vector<16x8xf32>
    %187 = tpu.matmul %185, %186, %cst_54 {dimension_numbers = #tpu.dot_dimension_numbers<[1], [0], [0], [1], [0, 0, 1, 1], [], []>} : vector<16x16xbf16>, vector<16x8xbf16>, vector<16x8xf32> -> vector<16x8xf32>
    %188 = vector.extract_strided_slice %172 {offsets = [48, 0], sizes = [16, 16], strides = [1, 1]} : vector<64x16xf32> to vector<16x16xf32>
    %189 = vector.extract_strided_slice %138 {offsets = [0, 24], sizes = [16, 8], strides = [1, 1]} : vector<16x32xf32> to vector<16x8xf32>
    %190 = arith.truncf %188 : vector<16x16xf32> to vector<16x16xbf16>
    %191 = arith.truncf %189 : vector<16x8xf32> to vector<16x8xbf16>
    %cst_55 = arith.constant dense<0.000000e+00> : vector<16x8xf32>
    %192 = tpu.matmul %190, %191, %cst_55 {dimension_numbers = #tpu.dot_dimension_numbers<[1], [0], [0], [1], [0, 0, 1, 1], [], []>} : vector<16x16xbf16>, vector<16x8xbf16>, vector<16x8xf32> -> vector<16x8xf32>
    %193 = tpu.concatenate %177, %182, %187, %192 in 1 : vector<16x8xf32>, vector<16x8xf32>, vector<16x8xf32>, vector<16x8xf32> -> vector<16x32xf32>
    %194 = arith.truncf %193 : vector<16x32xf32> to vector<16x32xbf16>
    %195 = arith.truncf %139 : vector<32x32xf32> to vector<32x32xbf16>
    %cst_56 = arith.constant dense<0.000000e+00> : vector<16x32xf32>
    %196 = tpu.matmul %194, %195, %cst_56 {dimension_numbers = #tpu.dot_dimension_numbers<[1], [0], [0], [1], [0, 0, 1, 1], [], []>} : vector<16x32xbf16>, vector<32x32xbf16>, vector<16x32xf32> -> vector<16x32xf32>
    %197 = arith.addf %118, %196 : vector<16x32xf32>
    %c579 = arith.constant 579 : index
    %c0_57 = arith.constant 0 : index
    %198 = vector.load %arg4[%c579, %c0_57] : memref<588x32xf32, #tpu.memory_space<vmem>>, vector<1x32xf32>
    %199 = arith.mulf %197, %197 : vector<16x32xf32>
    %cst_58 = arith.constant dense<0.000000e+00> : vector<16xf32>
    %200 = vector.multi_reduction <add>, %199, %cst_58 [1] : vector<16x32xf32> to vector<16xf32>
    %201 = vector.shape_cast %200 : vector<16xf32> to vector<16x1xf32>
    %cst_59 = arith.constant 3.200000e+01 : f32
    %202 = vector.broadcast %cst_59 : f32 to vector<16x1xf32>
    %203 = arith.divf %201, %202 : vector<16x1xf32>
    %cst_60 = arith.constant 9.99999997E-7 : f32
    %204 = vector.broadcast %cst_60 : f32 to vector<16x1xf32>
    %205 = arith.addf %203, %204 : vector<16x1xf32>
    %206 = math.rsqrt %205 : vector<16x1xf32>
    %207 = vector.broadcast %206 : vector<16x1xf32> to vector<16x32xf32>
    %208 = arith.mulf %197, %207 : vector<16x32xf32>
    %209 = vector.broadcast %198 : vector<1x32xf32> to vector<16x32xf32>
    %210 = arith.mulf %208, %209 : vector<16x32xf32>
    %c32_61 = arith.constant 32 : index
    %c0_62 = arith.constant 0 : index
    %211 = vector.load %arg3[%c32_61, %c0_62] : memref<224x64xf32, #tpu.memory_space<vmem>>, vector<32x64xf32>
    %c192_63 = arith.constant 192 : index
    %c0_64 = arith.constant 0 : index
    %212 = vector.load %arg4[%c192_63, %c0_64] : memref<588x32xf32, #tpu.memory_space<vmem>>, vector<64x32xf32>
    %213 = arith.truncf %210 : vector<16x32xf32> to vector<16x32xbf16>
    %214 = arith.truncf %211 : vector<32x64xf32> to vector<32x64xbf16>
    %cst_65 = arith.constant dense<0.000000e+00> : vector<16x64xf32>
    %215 = tpu.matmul %213, %214, %cst_65 {dimension_numbers = #tpu.dot_dimension_numbers<[1], [0], [0], [1], [0, 0, 1, 1], [], []>} : vector<16x32xbf16>, vector<32x64xbf16>, vector<16x64xf32> -> vector<16x64xf32>
    %cst_66 = arith.constant 0.000000e+00 : f32
    %216 = vector.broadcast %cst_66 : f32 to vector<16x64xf32>
    %217 = arith.maximumf %215, %216 : vector<16x64xf32>
    %218 = arith.truncf %217 : vector<16x64xf32> to vector<16x64xbf16>
    %219 = arith.truncf %212 : vector<64x32xf32> to vector<64x32xbf16>
    %cst_67 = arith.constant dense<0.000000e+00> : vector<16x32xf32>
    %220 = tpu.matmul %218, %219, %cst_67 {dimension_numbers = #tpu.dot_dimension_numbers<[1], [0], [0], [1], [0, 0, 1, 1], [], []>} : vector<16x64xbf16>, vector<64x32xbf16>, vector<16x32xf32> -> vector<16x32xf32>
    %221 = arith.addf %197, %220 : vector<16x32xf32>
    %c580 = arith.constant 580 : index
    %c0_68 = arith.constant 0 : index
    %222 = vector.load %arg4[%c580, %c0_68] : memref<588x32xf32, #tpu.memory_space<vmem>>, vector<1x32xf32>
    %223 = arith.mulf %221, %221 : vector<16x32xf32>
    %cst_69 = arith.constant dense<0.000000e+00> : vector<16xf32>
    %224 = vector.multi_reduction <add>, %223, %cst_69 [1] : vector<16x32xf32> to vector<16xf32>
    %225 = vector.shape_cast %224 : vector<16xf32> to vector<16x1xf32>
    %cst_70 = arith.constant 3.200000e+01 : f32
    %226 = vector.broadcast %cst_70 : f32 to vector<16x1xf32>
    %227 = arith.divf %225, %226 : vector<16x1xf32>
    %cst_71 = arith.constant 9.99999997E-7 : f32
    %228 = vector.broadcast %cst_71 : f32 to vector<16x1xf32>
    %229 = arith.addf %227, %228 : vector<16x1xf32>
    %230 = math.rsqrt %229 : vector<16x1xf32>
    %231 = vector.broadcast %230 : vector<16x1xf32> to vector<16x32xf32>
    %232 = arith.mulf %221, %231 : vector<16x32xf32>
    %233 = vector.broadcast %222 : vector<1x32xf32> to vector<16x32xf32>
    %234 = arith.mulf %232, %233 : vector<16x32xf32>
    %c581 = arith.constant 581 : index
    %c0_72 = arith.constant 0 : index
    %235 = vector.load %arg4[%c581, %c0_72] : memref<588x32xf32, #tpu.memory_space<vmem>>, vector<1x32xf32>
    %236 = arith.mulf %12, %12 : vector<16x32xf32>
    %cst_73 = arith.constant dense<0.000000e+00> : vector<16xf32>
    %237 = vector.multi_reduction <add>, %236, %cst_73 [1] : vector<16x32xf32> to vector<16xf32>
    %238 = vector.shape_cast %237 : vector<16xf32> to vector<16x1xf32>
    %cst_74 = arith.constant 3.200000e+01 : f32
    %239 = vector.broadcast %cst_74 : f32 to vector<16x1xf32>
    %240 = arith.divf %238, %239 : vector<16x1xf32>
    %cst_75 = arith.constant 9.99999997E-7 : f32
    %241 = vector.broadcast %cst_75 : f32 to vector<16x1xf32>
    %242 = arith.addf %240, %241 : vector<16x1xf32>
    %243 = math.rsqrt %242 : vector<16x1xf32>
    %244 = vector.broadcast %243 : vector<16x1xf32> to vector<16x32xf32>
    %245 = arith.mulf %12, %244 : vector<16x32xf32>
    %246 = vector.broadcast %235 : vector<1x32xf32> to vector<16x32xf32>
    %247 = arith.mulf %245, %246 : vector<16x32xf32>
    %c64_76 = arith.constant 64 : index
    %c0_77 = arith.constant 0 : index
    %248 = vector.load %arg2[%c64_76, %c0_77] : memref<128x96xf32, #tpu.memory_space<vmem>>, vector<32x96xf32>
    %249 = arith.truncf %247 : vector<16x32xf32> to vector<16x32xbf16>
    %250 = arith.truncf %248 : vector<32x96xf32> to vector<32x96xbf16>
    %cst_78 = arith.constant dense<0.000000e+00> : vector<16x96xf32>
    %251 = tpu.matmul %249, %250, %cst_78 {dimension_numbers = #tpu.dot_dimension_numbers<[1], [0], [0], [1], [0, 0, 1, 1], [], []>} : vector<16x32xbf16>, vector<32x96xbf16>, vector<16x96xf32> -> vector<16x96xf32>
    %252 = vector.extract_strided_slice %251 {offsets = [0, 0], sizes = [16, 32], strides = [1, 1]} : vector<16x96xf32> to vector<16x32xf32>
    %253 = vector.extract_strided_slice %251 {offsets = [0, 32], sizes = [16, 32], strides = [1, 1]} : vector<16x96xf32> to vector<16x32xf32>
    %254 = vector.extract_strided_slice %251 {offsets = [0, 64], sizes = [16, 32], strides = [1, 1]} : vector<16x96xf32> to vector<16x32xf32>
    %c256 = arith.constant 256 : index
    %c0_79 = arith.constant 0 : index
    %255 = vector.load %arg4[%c256, %c0_79] : memref<588x32xf32, #tpu.memory_space<vmem>>, vector<32x32xf32>
    %256 = tpu.transpose %253, [1, 0] : vector<16x32xf32> -> vector<32x16xf32>
    %257 = vector.extract_strided_slice %252 {offsets = [0, 0], sizes = [16, 8], strides = [1, 1]} : vector<16x32xf32> to vector<16x8xf32>
    %258 = vector.extract_strided_slice %256 {offsets = [0, 0], sizes = [8, 16], strides = [1, 1]} : vector<32x16xf32> to vector<8x16xf32>
    %259 = arith.truncf %257 : vector<16x8xf32> to vector<16x8xbf16>
    %260 = arith.truncf %258 : vector<8x16xf32> to vector<8x16xbf16>
    %cst_80 = arith.constant dense<0.000000e+00> : vector<16x16xf32>
    %261 = tpu.matmul %259, %260, %cst_80 {dimension_numbers = #tpu.dot_dimension_numbers<[1], [0], [0], [1], [0, 0, 1, 1], [], []>} : vector<16x8xbf16>, vector<8x16xbf16>, vector<16x16xf32> -> vector<16x16xf32>
    %262 = vector.extract_strided_slice %252 {offsets = [0, 8], sizes = [16, 8], strides = [1, 1]} : vector<16x32xf32> to vector<16x8xf32>
    %263 = vector.extract_strided_slice %256 {offsets = [8, 0], sizes = [8, 16], strides = [1, 1]} : vector<32x16xf32> to vector<8x16xf32>
    %264 = arith.truncf %262 : vector<16x8xf32> to vector<16x8xbf16>
    %265 = arith.truncf %263 : vector<8x16xf32> to vector<8x16xbf16>
    %cst_81 = arith.constant dense<0.000000e+00> : vector<16x16xf32>
    %266 = tpu.matmul %264, %265, %cst_81 {dimension_numbers = #tpu.dot_dimension_numbers<[1], [0], [0], [1], [0, 0, 1, 1], [], []>} : vector<16x8xbf16>, vector<8x16xbf16>, vector<16x16xf32> -> vector<16x16xf32>
    %267 = vector.extract_strided_slice %252 {offsets = [0, 16], sizes = [16, 8], strides = [1, 1]} : vector<16x32xf32> to vector<16x8xf32>
    %268 = vector.extract_strided_slice %256 {offsets = [16, 0], sizes = [8, 16], strides = [1, 1]} : vector<32x16xf32> to vector<8x16xf32>
    %269 = arith.truncf %267 : vector<16x8xf32> to vector<16x8xbf16>
    %270 = arith.truncf %268 : vector<8x16xf32> to vector<8x16xbf16>
    %cst_82 = arith.constant dense<0.000000e+00> : vector<16x16xf32>
    %271 = tpu.matmul %269, %270, %cst_82 {dimension_numbers = #tpu.dot_dimension_numbers<[1], [0], [0], [1], [0, 0, 1, 1], [], []>} : vector<16x8xbf16>, vector<8x16xbf16>, vector<16x16xf32> -> vector<16x16xf32>
    %272 = vector.extract_strided_slice %252 {offsets = [0, 24], sizes = [16, 8], strides = [1, 1]} : vector<16x32xf32> to vector<16x8xf32>
    %273 = vector.extract_strided_slice %256 {offsets = [24, 0], sizes = [8, 16], strides = [1, 1]} : vector<32x16xf32> to vector<8x16xf32>
    %274 = arith.truncf %272 : vector<16x8xf32> to vector<16x8xbf16>
    %275 = arith.truncf %273 : vector<8x16xf32> to vector<8x16xbf16>
    %cst_83 = arith.constant dense<0.000000e+00> : vector<16x16xf32>
    %276 = tpu.matmul %274, %275, %cst_83 {dimension_numbers = #tpu.dot_dimension_numbers<[1], [0], [0], [1], [0, 0, 1, 1], [], []>} : vector<16x8xbf16>, vector<8x16xbf16>, vector<16x16xf32> -> vector<16x16xf32>
    %277 = tpu.concatenate %261, %266, %271, %276 in 0 : vector<16x16xf32>, vector<16x16xf32>, vector<16x16xf32>, vector<16x16xf32> -> vector<64x16xf32>
    %278 = arith.addf %277, %14 : vector<64x16xf32>
    %cst_84 = arith.constant dense<0xFF800000> : vector<64xf32>
    %279 = vector.multi_reduction <maximumf>, %278, %cst_84 [1] : vector<64x16xf32> to vector<64xf32>
    %280 = vector.shape_cast %279 : vector<64xf32> to vector<64x1xf32>
    %281 = vector.broadcast %280 : vector<64x1xf32> to vector<64x16xf32>
    %282 = arith.subf %278, %281 : vector<64x16xf32>
    %283 = math.exp %282 : vector<64x16xf32>
    %cst_85 = arith.constant dense<0.000000e+00> : vector<64xf32>
    %284 = vector.multi_reduction <add>, %283, %cst_85 [1] : vector<64x16xf32> to vector<64xf32>
    %285 = vector.shape_cast %284 : vector<64xf32> to vector<64x1xf32>
    %286 = tpu.reciprocal %285 {approx = true} : vector<64x1xf32> -> vector<64x1xf32>
    %287 = vector.broadcast %286 : vector<64x1xf32> to vector<64x16xf32>
    %288 = arith.mulf %283, %287 : vector<64x16xf32>
    %289 = vector.extract_strided_slice %288 {offsets = [0, 0], sizes = [16, 16], strides = [1, 1]} : vector<64x16xf32> to vector<16x16xf32>
    %290 = vector.extract_strided_slice %254 {offsets = [0, 0], sizes = [16, 8], strides = [1, 1]} : vector<16x32xf32> to vector<16x8xf32>
    %291 = arith.truncf %289 : vector<16x16xf32> to vector<16x16xbf16>
    %292 = arith.truncf %290 : vector<16x8xf32> to vector<16x8xbf16>
    %cst_86 = arith.constant dense<0.000000e+00> : vector<16x8xf32>
    %293 = tpu.matmul %291, %292, %cst_86 {dimension_numbers = #tpu.dot_dimension_numbers<[1], [0], [0], [1], [0, 0, 1, 1], [], []>} : vector<16x16xbf16>, vector<16x8xbf16>, vector<16x8xf32> -> vector<16x8xf32>
    %294 = vector.extract_strided_slice %288 {offsets = [16, 0], sizes = [16, 16], strides = [1, 1]} : vector<64x16xf32> to vector<16x16xf32>
    %295 = vector.extract_strided_slice %254 {offsets = [0, 8], sizes = [16, 8], strides = [1, 1]} : vector<16x32xf32> to vector<16x8xf32>
    %296 = arith.truncf %294 : vector<16x16xf32> to vector<16x16xbf16>
    %297 = arith.truncf %295 : vector<16x8xf32> to vector<16x8xbf16>
    %cst_87 = arith.constant dense<0.000000e+00> : vector<16x8xf32>
    %298 = tpu.matmul %296, %297, %cst_87 {dimension_numbers = #tpu.dot_dimension_numbers<[1], [0], [0], [1], [0, 0, 1, 1], [], []>} : vector<16x16xbf16>, vector<16x8xbf16>, vector<16x8xf32> -> vector<16x8xf32>
    %299 = vector.extract_strided_slice %288 {offsets = [32, 0], sizes = [16, 16], strides = [1, 1]} : vector<64x16xf32> to vector<16x16xf32>
    %300 = vector.extract_strided_slice %254 {offsets = [0, 16], sizes = [16, 8], strides = [1, 1]} : vector<16x32xf32> to vector<16x8xf32>
    %301 = arith.truncf %299 : vector<16x16xf32> to vector<16x16xbf16>
    %302 = arith.truncf %300 : vector<16x8xf32> to vector<16x8xbf16>
    %cst_88 = arith.constant dense<0.000000e+00> : vector<16x8xf32>
    %303 = tpu.matmul %301, %302, %cst_88 {dimension_numbers = #tpu.dot_dimension_numbers<[1], [0], [0], [1], [0, 0, 1, 1], [], []>} : vector<16x16xbf16>, vector<16x8xbf16>, vector<16x8xf32> -> vector<16x8xf32>
    %304 = vector.extract_strided_slice %288 {offsets = [48, 0], sizes = [16, 16], strides = [1, 1]} : vector<64x16xf32> to vector<16x16xf32>
    %305 = vector.extract_strided_slice %254 {offsets = [0, 24], sizes = [16, 8], strides = [1, 1]} : vector<16x32xf32> to vector<16x8xf32>
    %306 = arith.truncf %304 : vector<16x16xf32> to vector<16x16xbf16>
    %307 = arith.truncf %305 : vector<16x8xf32> to vector<16x8xbf16>
    %cst_89 = arith.constant dense<0.000000e+00> : vector<16x8xf32>
    %308 = tpu.matmul %306, %307, %cst_89 {dimension_numbers = #tpu.dot_dimension_numbers<[1], [0], [0], [1], [0, 0, 1, 1], [], []>} : vector<16x16xbf16>, vector<16x8xbf16>, vector<16x8xf32> -> vector<16x8xf32>
    %309 = tpu.concatenate %293, %298, %303, %308 in 1 : vector<16x8xf32>, vector<16x8xf32>, vector<16x8xf32>, vector<16x8xf32> -> vector<16x32xf32>
    %310 = arith.truncf %309 : vector<16x32xf32> to vector<16x32xbf16>
    %311 = arith.truncf %255 : vector<32x32xf32> to vector<32x32xbf16>
    %cst_90 = arith.constant dense<0.000000e+00> : vector<16x32xf32>
    %312 = tpu.matmul %310, %311, %cst_90 {dimension_numbers = #tpu.dot_dimension_numbers<[1], [0], [0], [1], [0, 0, 1, 1], [], []>} : vector<16x32xbf16>, vector<32x32xbf16>, vector<16x32xf32> -> vector<16x32xf32>
    %313 = arith.addf %12, %312 : vector<16x32xf32>
    %c583 = arith.constant 583 : index
    %c0_91 = arith.constant 0 : index
    %314 = vector.load %arg4[%c583, %c0_91] : memref<588x32xf32, #tpu.memory_space<vmem>>, vector<1x32xf32>
    %315 = arith.mulf %313, %313 : vector<16x32xf32>
    %cst_92 = arith.constant dense<0.000000e+00> : vector<16xf32>
    %316 = vector.multi_reduction <add>, %315, %cst_92 [1] : vector<16x32xf32> to vector<16xf32>
    %317 = vector.shape_cast %316 : vector<16xf32> to vector<16x1xf32>
    %cst_93 = arith.constant 3.200000e+01 : f32
    %318 = vector.broadcast %cst_93 : f32 to vector<16x1xf32>
    %319 = arith.divf %317, %318 : vector<16x1xf32>
    %cst_94 = arith.constant 9.99999997E-7 : f32
    %320 = vector.broadcast %cst_94 : f32 to vector<16x1xf32>
    %321 = arith.addf %319, %320 : vector<16x1xf32>
    %322 = math.rsqrt %321 : vector<16x1xf32>
    %323 = vector.broadcast %322 : vector<16x1xf32> to vector<16x32xf32>
    %324 = arith.mulf %313, %323 : vector<16x32xf32>
    %325 = vector.broadcast %314 : vector<1x32xf32> to vector<16x32xf32>
    %326 = arith.mulf %324, %325 : vector<16x32xf32>
    %c320 = arith.constant 320 : index
    %c0_95 = arith.constant 0 : index
    %327 = vector.load %arg4[%c320, %c0_95] : memref<588x32xf32, #tpu.memory_space<vmem>>, vector<32x32xf32>
    %328 = arith.truncf %326 : vector<16x32xf32> to vector<16x32xbf16>
    %329 = arith.truncf %327 : vector<32x32xf32> to vector<32x32xbf16>
    %cst_96 = arith.constant dense<0.000000e+00> : vector<16x32xf32>
    %330 = tpu.matmul %328, %329, %cst_96 {dimension_numbers = #tpu.dot_dimension_numbers<[1], [0], [0], [1], [0, 0, 1, 1], [], []>} : vector<16x32xbf16>, vector<32x32xbf16>, vector<16x32xf32> -> vector<16x32xf32>
    %c128_97 = arith.constant 128 : index
    %c0_98 = arith.constant 0 : index
    %331 = vector.load %arg3[%c128_97, %c0_98] : memref<224x64xf32, #tpu.memory_space<vmem>>, vector<32x64xf32>
    %332 = arith.truncf %234 : vector<16x32xf32> to vector<16x32xbf16>
    %333 = arith.truncf %331 : vector<32x64xf32> to vector<32x64xbf16>
    %cst_99 = arith.constant dense<0.000000e+00> : vector<16x64xf32>
    %334 = tpu.matmul %332, %333, %cst_99 {dimension_numbers = #tpu.dot_dimension_numbers<[1], [0], [0], [1], [0, 0, 1, 1], [], []>} : vector<16x32xbf16>, vector<32x64xbf16>, vector<16x64xf32> -> vector<16x64xf32>
    %335 = vector.extract_strided_slice %334 {offsets = [0, 0], sizes = [16, 32], strides = [1, 1]} : vector<16x64xf32> to vector<16x32xf32>
    %336 = vector.extract_strided_slice %334 {offsets = [0, 32], sizes = [16, 32], strides = [1, 1]} : vector<16x64xf32> to vector<16x32xf32>
    %c384 = arith.constant 384 : index
    %c0_100 = arith.constant 0 : index
    %337 = vector.load %arg4[%c384, %c0_100] : memref<588x32xf32, #tpu.memory_space<vmem>>, vector<32x32xf32>
    %338 = tpu.transpose %335, [1, 0] : vector<16x32xf32> -> vector<32x16xf32>
    %339 = vector.extract_strided_slice %330 {offsets = [0, 0], sizes = [16, 8], strides = [1, 1]} : vector<16x32xf32> to vector<16x8xf32>
    %340 = vector.extract_strided_slice %338 {offsets = [0, 0], sizes = [8, 16], strides = [1, 1]} : vector<32x16xf32> to vector<8x16xf32>
    %341 = arith.truncf %339 : vector<16x8xf32> to vector<16x8xbf16>
    %342 = arith.truncf %340 : vector<8x16xf32> to vector<8x16xbf16>
    %cst_101 = arith.constant dense<0.000000e+00> : vector<16x16xf32>
    %343 = tpu.matmul %341, %342, %cst_101 {dimension_numbers = #tpu.dot_dimension_numbers<[1], [0], [0], [1], [0, 0, 1, 1], [], []>} : vector<16x8xbf16>, vector<8x16xbf16>, vector<16x16xf32> -> vector<16x16xf32>
    %344 = vector.extract_strided_slice %330 {offsets = [0, 8], sizes = [16, 8], strides = [1, 1]} : vector<16x32xf32> to vector<16x8xf32>
    %345 = vector.extract_strided_slice %338 {offsets = [8, 0], sizes = [8, 16], strides = [1, 1]} : vector<32x16xf32> to vector<8x16xf32>
    %346 = arith.truncf %344 : vector<16x8xf32> to vector<16x8xbf16>
    %347 = arith.truncf %345 : vector<8x16xf32> to vector<8x16xbf16>
    %cst_102 = arith.constant dense<0.000000e+00> : vector<16x16xf32>
    %348 = tpu.matmul %346, %347, %cst_102 {dimension_numbers = #tpu.dot_dimension_numbers<[1], [0], [0], [1], [0, 0, 1, 1], [], []>} : vector<16x8xbf16>, vector<8x16xbf16>, vector<16x16xf32> -> vector<16x16xf32>
    %349 = vector.extract_strided_slice %330 {offsets = [0, 16], sizes = [16, 8], strides = [1, 1]} : vector<16x32xf32> to vector<16x8xf32>
    %350 = vector.extract_strided_slice %338 {offsets = [16, 0], sizes = [8, 16], strides = [1, 1]} : vector<32x16xf32> to vector<8x16xf32>
    %351 = arith.truncf %349 : vector<16x8xf32> to vector<16x8xbf16>
    %352 = arith.truncf %350 : vector<8x16xf32> to vector<8x16xbf16>
    %cst_103 = arith.constant dense<0.000000e+00> : vector<16x16xf32>
    %353 = tpu.matmul %351, %352, %cst_103 {dimension_numbers = #tpu.dot_dimension_numbers<[1], [0], [0], [1], [0, 0, 1, 1], [], []>} : vector<16x8xbf16>, vector<8x16xbf16>, vector<16x16xf32> -> vector<16x16xf32>
    %354 = vector.extract_strided_slice %330 {offsets = [0, 24], sizes = [16, 8], strides = [1, 1]} : vector<16x32xf32> to vector<16x8xf32>
    %355 = vector.extract_strided_slice %338 {offsets = [24, 0], sizes = [8, 16], strides = [1, 1]} : vector<32x16xf32> to vector<8x16xf32>
    %356 = arith.truncf %354 : vector<16x8xf32> to vector<16x8xbf16>
    %357 = arith.truncf %355 : vector<8x16xf32> to vector<8x16xbf16>
    %cst_104 = arith.constant dense<0.000000e+00> : vector<16x16xf32>
    %358 = tpu.matmul %356, %357, %cst_104 {dimension_numbers = #tpu.dot_dimension_numbers<[1], [0], [0], [1], [0, 0, 1, 1], [], []>} : vector<16x8xbf16>, vector<8x16xbf16>, vector<16x16xf32> -> vector<16x16xf32>
    %359 = tpu.concatenate %343, %348, %353, %358 in 0 : vector<16x16xf32>, vector<16x16xf32>, vector<16x16xf32>, vector<16x16xf32> -> vector<64x16xf32>
    %360 = arith.addf %359, %15 : vector<64x16xf32>
    %cst_105 = arith.constant dense<0xFF800000> : vector<64xf32>
    %361 = vector.multi_reduction <maximumf>, %360, %cst_105 [1] : vector<64x16xf32> to vector<64xf32>
    %362 = vector.shape_cast %361 : vector<64xf32> to vector<64x1xf32>
    %363 = vector.broadcast %362 : vector<64x1xf32> to vector<64x16xf32>
    %364 = arith.subf %360, %363 : vector<64x16xf32>
    %365 = math.exp %364 : vector<64x16xf32>
    %cst_106 = arith.constant dense<0.000000e+00> : vector<64xf32>
    %366 = vector.multi_reduction <add>, %365, %cst_106 [1] : vector<64x16xf32> to vector<64xf32>
    %367 = vector.shape_cast %366 : vector<64xf32> to vector<64x1xf32>
    %368 = tpu.reciprocal %367 {approx = true} : vector<64x1xf32> -> vector<64x1xf32>
    %369 = vector.broadcast %368 : vector<64x1xf32> to vector<64x16xf32>
    %370 = arith.mulf %365, %369 : vector<64x16xf32>
    %371 = vector.extract_strided_slice %370 {offsets = [0, 0], sizes = [16, 16], strides = [1, 1]} : vector<64x16xf32> to vector<16x16xf32>
    %372 = vector.extract_strided_slice %336 {offsets = [0, 0], sizes = [16, 8], strides = [1, 1]} : vector<16x32xf32> to vector<16x8xf32>
    %373 = arith.truncf %371 : vector<16x16xf32> to vector<16x16xbf16>
    %374 = arith.truncf %372 : vector<16x8xf32> to vector<16x8xbf16>
    %cst_107 = arith.constant dense<0.000000e+00> : vector<16x8xf32>
    %375 = tpu.matmul %373, %374, %cst_107 {dimension_numbers = #tpu.dot_dimension_numbers<[1], [0], [0], [1], [0, 0, 1, 1], [], []>} : vector<16x16xbf16>, vector<16x8xbf16>, vector<16x8xf32> -> vector<16x8xf32>
    %376 = vector.extract_strided_slice %370 {offsets = [16, 0], sizes = [16, 16], strides = [1, 1]} : vector<64x16xf32> to vector<16x16xf32>
    %377 = vector.extract_strided_slice %336 {offsets = [0, 8], sizes = [16, 8], strides = [1, 1]} : vector<16x32xf32> to vector<16x8xf32>
    %378 = arith.truncf %376 : vector<16x16xf32> to vector<16x16xbf16>
    %379 = arith.truncf %377 : vector<16x8xf32> to vector<16x8xbf16>
    %cst_108 = arith.constant dense<0.000000e+00> : vector<16x8xf32>
    %380 = tpu.matmul %378, %379, %cst_108 {dimension_numbers = #tpu.dot_dimension_numbers<[1], [0], [0], [1], [0, 0, 1, 1], [], []>} : vector<16x16xbf16>, vector<16x8xbf16>, vector<16x8xf32> -> vector<16x8xf32>
    %381 = vector.extract_strided_slice %370 {offsets = [32, 0], sizes = [16, 16], strides = [1, 1]} : vector<64x16xf32> to vector<16x16xf32>
    %382 = vector.extract_strided_slice %336 {offsets = [0, 16], sizes = [16, 8], strides = [1, 1]} : vector<16x32xf32> to vector<16x8xf32>
    %383 = arith.truncf %381 : vector<16x16xf32> to vector<16x16xbf16>
    %384 = arith.truncf %382 : vector<16x8xf32> to vector<16x8xbf16>
    %cst_109 = arith.constant dense<0.000000e+00> : vector<16x8xf32>
    %385 = tpu.matmul %383, %384, %cst_109 {dimension_numbers = #tpu.dot_dimension_numbers<[1], [0], [0], [1], [0, 0, 1, 1], [], []>} : vector<16x16xbf16>, vector<16x8xbf16>, vector<16x8xf32> -> vector<16x8xf32>
    %386 = vector.extract_strided_slice %370 {offsets = [48, 0], sizes = [16, 16], strides = [1, 1]} : vector<64x16xf32> to vector<16x16xf32>
    %387 = vector.extract_strided_slice %336 {offsets = [0, 24], sizes = [16, 8], strides = [1, 1]} : vector<16x32xf32> to vector<16x8xf32>
    %388 = arith.truncf %386 : vector<16x16xf32> to vector<16x16xbf16>
    %389 = arith.truncf %387 : vector<16x8xf32> to vector<16x8xbf16>
    %cst_110 = arith.constant dense<0.000000e+00> : vector<16x8xf32>
    %390 = tpu.matmul %388, %389, %cst_110 {dimension_numbers = #tpu.dot_dimension_numbers<[1], [0], [0], [1], [0, 0, 1, 1], [], []>} : vector<16x16xbf16>, vector<16x8xbf16>, vector<16x8xf32> -> vector<16x8xf32>
    %391 = tpu.concatenate %375, %380, %385, %390 in 1 : vector<16x8xf32>, vector<16x8xf32>, vector<16x8xf32>, vector<16x8xf32> -> vector<16x32xf32>
    %392 = arith.truncf %391 : vector<16x32xf32> to vector<16x32xbf16>
    %393 = arith.truncf %337 : vector<32x32xf32> to vector<32x32xbf16>
    %cst_111 = arith.constant dense<0.000000e+00> : vector<16x32xf32>
    %394 = tpu.matmul %392, %393, %cst_111 {dimension_numbers = #tpu.dot_dimension_numbers<[1], [0], [0], [1], [0, 0, 1, 1], [], []>} : vector<16x32xbf16>, vector<32x32xbf16>, vector<16x32xf32> -> vector<16x32xf32>
    %395 = arith.addf %313, %394 : vector<16x32xf32>
    %c585 = arith.constant 585 : index
    %c0_112 = arith.constant 0 : index
    %396 = vector.load %arg4[%c585, %c0_112] : memref<588x32xf32, #tpu.memory_space<vmem>>, vector<1x32xf32>
    %397 = arith.mulf %395, %395 : vector<16x32xf32>
    %cst_113 = arith.constant dense<0.000000e+00> : vector<16xf32>
    %398 = vector.multi_reduction <add>, %397, %cst_113 [1] : vector<16x32xf32> to vector<16xf32>
    %399 = vector.shape_cast %398 : vector<16xf32> to vector<16x1xf32>
    %cst_114 = arith.constant 3.200000e+01 : f32
    %400 = vector.broadcast %cst_114 : f32 to vector<16x1xf32>
    %401 = arith.divf %399, %400 : vector<16x1xf32>
    %cst_115 = arith.constant 9.99999997E-7 : f32
    %402 = vector.broadcast %cst_115 : f32 to vector<16x1xf32>
    %403 = arith.addf %401, %402 : vector<16x1xf32>
    %404 = math.rsqrt %403 : vector<16x1xf32>
    %405 = vector.broadcast %404 : vector<16x1xf32> to vector<16x32xf32>
    %406 = arith.mulf %395, %405 : vector<16x32xf32>
    %407 = vector.broadcast %396 : vector<1x32xf32> to vector<16x32xf32>
    %408 = arith.mulf %406, %407 : vector<16x32xf32>
    %c64_116 = arith.constant 64 : index
    %c0_117 = arith.constant 0 : index
    %409 = vector.load %arg3[%c64_116, %c0_117] : memref<224x64xf32, #tpu.memory_space<vmem>>, vector<32x64xf32>
    %c448 = arith.constant 448 : index
    %c0_118 = arith.constant 0 : index
    %410 = vector.load %arg4[%c448, %c0_118] : memref<588x32xf32, #tpu.memory_space<vmem>>, vector<64x32xf32>
    %411 = arith.truncf %408 : vector<16x32xf32> to vector<16x32xbf16>
    %412 = arith.truncf %409 : vector<32x64xf32> to vector<32x64xbf16>
    %cst_119 = arith.constant dense<0.000000e+00> : vector<16x64xf32>
    %413 = tpu.matmul %411, %412, %cst_119 {dimension_numbers = #tpu.dot_dimension_numbers<[1], [0], [0], [1], [0, 0, 1, 1], [], []>} : vector<16x32xbf16>, vector<32x64xbf16>, vector<16x64xf32> -> vector<16x64xf32>
    %cst_120 = arith.constant 0.000000e+00 : f32
    %414 = vector.broadcast %cst_120 : f32 to vector<16x64xf32>
    %415 = arith.maximumf %413, %414 : vector<16x64xf32>
    %416 = arith.truncf %415 : vector<16x64xf32> to vector<16x64xbf16>
    %417 = arith.truncf %410 : vector<64x32xf32> to vector<64x32xbf16>
    %cst_121 = arith.constant dense<0.000000e+00> : vector<16x32xf32>
    %418 = tpu.matmul %416, %417, %cst_121 {dimension_numbers = #tpu.dot_dimension_numbers<[1], [0], [0], [1], [0, 0, 1, 1], [], []>} : vector<16x64xbf16>, vector<64x32xbf16>, vector<16x32xf32> -> vector<16x32xf32>
    %419 = arith.addf %395, %418 : vector<16x32xf32>
    %c582 = arith.constant 582 : index
    %c0_122 = arith.constant 0 : index
    %420 = vector.load %arg4[%c582, %c0_122] : memref<588x32xf32, #tpu.memory_space<vmem>>, vector<1x32xf32>
    %421 = arith.mulf %419, %419 : vector<16x32xf32>
    %cst_123 = arith.constant dense<0.000000e+00> : vector<16xf32>
    %422 = vector.multi_reduction <add>, %421, %cst_123 [1] : vector<16x32xf32> to vector<16xf32>
    %423 = vector.shape_cast %422 : vector<16xf32> to vector<16x1xf32>
    %cst_124 = arith.constant 3.200000e+01 : f32
    %424 = vector.broadcast %cst_124 : f32 to vector<16x1xf32>
    %425 = arith.divf %423, %424 : vector<16x1xf32>
    %cst_125 = arith.constant 9.99999997E-7 : f32
    %426 = vector.broadcast %cst_125 : f32 to vector<16x1xf32>
    %427 = arith.addf %425, %426 : vector<16x1xf32>
    %428 = math.rsqrt %427 : vector<16x1xf32>
    %429 = vector.broadcast %428 : vector<16x1xf32> to vector<16x32xf32>
    %430 = arith.mulf %419, %429 : vector<16x32xf32>
    %431 = vector.broadcast %420 : vector<1x32xf32> to vector<16x32xf32>
    %432 = arith.mulf %430, %431 : vector<16x32xf32>
    %c96_126 = arith.constant 96 : index
    %c0_127 = arith.constant 0 : index
    %433 = vector.load %arg2[%c96_126, %c0_127] : memref<128x96xf32, #tpu.memory_space<vmem>>, vector<32x96xf32>
    %434 = arith.truncf %432 : vector<16x32xf32> to vector<16x32xbf16>
    %435 = arith.truncf %433 : vector<32x96xf32> to vector<32x96xbf16>
    %cst_128 = arith.constant dense<0.000000e+00> : vector<16x96xf32>
    %436 = tpu.matmul %434, %435, %cst_128 {dimension_numbers = #tpu.dot_dimension_numbers<[1], [0], [0], [1], [0, 0, 1, 1], [], []>} : vector<16x32xbf16>, vector<32x96xbf16>, vector<16x96xf32> -> vector<16x96xf32>
    %437 = vector.extract_strided_slice %436 {offsets = [0, 0], sizes = [16, 32], strides = [1, 1]} : vector<16x96xf32> to vector<16x32xf32>
    %438 = vector.extract_strided_slice %436 {offsets = [0, 32], sizes = [16, 32], strides = [1, 1]} : vector<16x96xf32> to vector<16x32xf32>
    %439 = vector.extract_strided_slice %436 {offsets = [0, 64], sizes = [16, 32], strides = [1, 1]} : vector<16x96xf32> to vector<16x32xf32>
    %c288 = arith.constant 288 : index
    %c0_129 = arith.constant 0 : index
    %440 = vector.load %arg4[%c288, %c0_129] : memref<588x32xf32, #tpu.memory_space<vmem>>, vector<32x32xf32>
    %441 = tpu.transpose %438, [1, 0] : vector<16x32xf32> -> vector<32x16xf32>
    %442 = vector.extract_strided_slice %437 {offsets = [0, 0], sizes = [16, 8], strides = [1, 1]} : vector<16x32xf32> to vector<16x8xf32>
    %443 = vector.extract_strided_slice %441 {offsets = [0, 0], sizes = [8, 16], strides = [1, 1]} : vector<32x16xf32> to vector<8x16xf32>
    %444 = arith.truncf %442 : vector<16x8xf32> to vector<16x8xbf16>
    %445 = arith.truncf %443 : vector<8x16xf32> to vector<8x16xbf16>
    %cst_130 = arith.constant dense<0.000000e+00> : vector<16x16xf32>
    %446 = tpu.matmul %444, %445, %cst_130 {dimension_numbers = #tpu.dot_dimension_numbers<[1], [0], [0], [1], [0, 0, 1, 1], [], []>} : vector<16x8xbf16>, vector<8x16xbf16>, vector<16x16xf32> -> vector<16x16xf32>
    %447 = vector.extract_strided_slice %437 {offsets = [0, 8], sizes = [16, 8], strides = [1, 1]} : vector<16x32xf32> to vector<16x8xf32>
    %448 = vector.extract_strided_slice %441 {offsets = [8, 0], sizes = [8, 16], strides = [1, 1]} : vector<32x16xf32> to vector<8x16xf32>
    %449 = arith.truncf %447 : vector<16x8xf32> to vector<16x8xbf16>
    %450 = arith.truncf %448 : vector<8x16xf32> to vector<8x16xbf16>
    %cst_131 = arith.constant dense<0.000000e+00> : vector<16x16xf32>
    %451 = tpu.matmul %449, %450, %cst_131 {dimension_numbers = #tpu.dot_dimension_numbers<[1], [0], [0], [1], [0, 0, 1, 1], [], []>} : vector<16x8xbf16>, vector<8x16xbf16>, vector<16x16xf32> -> vector<16x16xf32>
    %452 = vector.extract_strided_slice %437 {offsets = [0, 16], sizes = [16, 8], strides = [1, 1]} : vector<16x32xf32> to vector<16x8xf32>
    %453 = vector.extract_strided_slice %441 {offsets = [16, 0], sizes = [8, 16], strides = [1, 1]} : vector<32x16xf32> to vector<8x16xf32>
    %454 = arith.truncf %452 : vector<16x8xf32> to vector<16x8xbf16>
    %455 = arith.truncf %453 : vector<8x16xf32> to vector<8x16xbf16>
    %cst_132 = arith.constant dense<0.000000e+00> : vector<16x16xf32>
    %456 = tpu.matmul %454, %455, %cst_132 {dimension_numbers = #tpu.dot_dimension_numbers<[1], [0], [0], [1], [0, 0, 1, 1], [], []>} : vector<16x8xbf16>, vector<8x16xbf16>, vector<16x16xf32> -> vector<16x16xf32>
    %457 = vector.extract_strided_slice %437 {offsets = [0, 24], sizes = [16, 8], strides = [1, 1]} : vector<16x32xf32> to vector<16x8xf32>
    %458 = vector.extract_strided_slice %441 {offsets = [24, 0], sizes = [8, 16], strides = [1, 1]} : vector<32x16xf32> to vector<8x16xf32>
    %459 = arith.truncf %457 : vector<16x8xf32> to vector<16x8xbf16>
    %460 = arith.truncf %458 : vector<8x16xf32> to vector<8x16xbf16>
    %cst_133 = arith.constant dense<0.000000e+00> : vector<16x16xf32>
    %461 = tpu.matmul %459, %460, %cst_133 {dimension_numbers = #tpu.dot_dimension_numbers<[1], [0], [0], [1], [0, 0, 1, 1], [], []>} : vector<16x8xbf16>, vector<8x16xbf16>, vector<16x16xf32> -> vector<16x16xf32>
    %462 = tpu.concatenate %446, %451, %456, %461 in 0 : vector<16x16xf32>, vector<16x16xf32>, vector<16x16xf32>, vector<16x16xf32> -> vector<64x16xf32>
    %463 = arith.addf %462, %14 : vector<64x16xf32>
    %cst_134 = arith.constant dense<0xFF800000> : vector<64xf32>
    %464 = vector.multi_reduction <maximumf>, %463, %cst_134 [1] : vector<64x16xf32> to vector<64xf32>
    %465 = vector.shape_cast %464 : vector<64xf32> to vector<64x1xf32>
    %466 = vector.broadcast %465 : vector<64x1xf32> to vector<64x16xf32>
    %467 = arith.subf %463, %466 : vector<64x16xf32>
    %468 = math.exp %467 : vector<64x16xf32>
    %cst_135 = arith.constant dense<0.000000e+00> : vector<64xf32>
    %469 = vector.multi_reduction <add>, %468, %cst_135 [1] : vector<64x16xf32> to vector<64xf32>
    %470 = vector.shape_cast %469 : vector<64xf32> to vector<64x1xf32>
    %471 = tpu.reciprocal %470 {approx = true} : vector<64x1xf32> -> vector<64x1xf32>
    %472 = vector.broadcast %471 : vector<64x1xf32> to vector<64x16xf32>
    %473 = arith.mulf %468, %472 : vector<64x16xf32>
    %474 = vector.extract_strided_slice %473 {offsets = [0, 0], sizes = [16, 16], strides = [1, 1]} : vector<64x16xf32> to vector<16x16xf32>
    %475 = vector.extract_strided_slice %439 {offsets = [0, 0], sizes = [16, 8], strides = [1, 1]} : vector<16x32xf32> to vector<16x8xf32>
    %476 = arith.truncf %474 : vector<16x16xf32> to vector<16x16xbf16>
    %477 = arith.truncf %475 : vector<16x8xf32> to vector<16x8xbf16>
    %cst_136 = arith.constant dense<0.000000e+00> : vector<16x8xf32>
    %478 = tpu.matmul %476, %477, %cst_136 {dimension_numbers = #tpu.dot_dimension_numbers<[1], [0], [0], [1], [0, 0, 1, 1], [], []>} : vector<16x16xbf16>, vector<16x8xbf16>, vector<16x8xf32> -> vector<16x8xf32>
    %479 = vector.extract_strided_slice %473 {offsets = [16, 0], sizes = [16, 16], strides = [1, 1]} : vector<64x16xf32> to vector<16x16xf32>
    %480 = vector.extract_strided_slice %439 {offsets = [0, 8], sizes = [16, 8], strides = [1, 1]} : vector<16x32xf32> to vector<16x8xf32>
    %481 = arith.truncf %479 : vector<16x16xf32> to vector<16x16xbf16>
    %482 = arith.truncf %480 : vector<16x8xf32> to vector<16x8xbf16>
    %cst_137 = arith.constant dense<0.000000e+00> : vector<16x8xf32>
    %483 = tpu.matmul %481, %482, %cst_137 {dimension_numbers = #tpu.dot_dimension_numbers<[1], [0], [0], [1], [0, 0, 1, 1], [], []>} : vector<16x16xbf16>, vector<16x8xbf16>, vector<16x8xf32> -> vector<16x8xf32>
    %484 = vector.extract_strided_slice %473 {offsets = [32, 0], sizes = [16, 16], strides = [1, 1]} : vector<64x16xf32> to vector<16x16xf32>
    %485 = vector.extract_strided_slice %439 {offsets = [0, 16], sizes = [16, 8], strides = [1, 1]} : vector<16x32xf32> to vector<16x8xf32>
    %486 = arith.truncf %484 : vector<16x16xf32> to vector<16x16xbf16>
    %487 = arith.truncf %485 : vector<16x8xf32> to vector<16x8xbf16>
    %cst_138 = arith.constant dense<0.000000e+00> : vector<16x8xf32>
    %488 = tpu.matmul %486, %487, %cst_138 {dimension_numbers = #tpu.dot_dimension_numbers<[1], [0], [0], [1], [0, 0, 1, 1], [], []>} : vector<16x16xbf16>, vector<16x8xbf16>, vector<16x8xf32> -> vector<16x8xf32>
    %489 = vector.extract_strided_slice %473 {offsets = [48, 0], sizes = [16, 16], strides = [1, 1]} : vector<64x16xf32> to vector<16x16xf32>
    %490 = vector.extract_strided_slice %439 {offsets = [0, 24], sizes = [16, 8], strides = [1, 1]} : vector<16x32xf32> to vector<16x8xf32>
    %491 = arith.truncf %489 : vector<16x16xf32> to vector<16x16xbf16>
    %492 = arith.truncf %490 : vector<16x8xf32> to vector<16x8xbf16>
    %cst_139 = arith.constant dense<0.000000e+00> : vector<16x8xf32>
    %493 = tpu.matmul %491, %492, %cst_139 {dimension_numbers = #tpu.dot_dimension_numbers<[1], [0], [0], [1], [0, 0, 1, 1], [], []>} : vector<16x16xbf16>, vector<16x8xbf16>, vector<16x8xf32> -> vector<16x8xf32>
    %494 = tpu.concatenate %478, %483, %488, %493 in 1 : vector<16x8xf32>, vector<16x8xf32>, vector<16x8xf32>, vector<16x8xf32> -> vector<16x32xf32>
    %495 = arith.truncf %494 : vector<16x32xf32> to vector<16x32xbf16>
    %496 = arith.truncf %440 : vector<32x32xf32> to vector<32x32xbf16>
    %cst_140 = arith.constant dense<0.000000e+00> : vector<16x32xf32>
    %497 = tpu.matmul %495, %496, %cst_140 {dimension_numbers = #tpu.dot_dimension_numbers<[1], [0], [0], [1], [0, 0, 1, 1], [], []>} : vector<16x32xbf16>, vector<32x32xbf16>, vector<16x32xf32> -> vector<16x32xf32>
    %498 = arith.addf %419, %497 : vector<16x32xf32>
    %c584 = arith.constant 584 : index
    %c0_141 = arith.constant 0 : index
    %499 = vector.load %arg4[%c584, %c0_141] : memref<588x32xf32, #tpu.memory_space<vmem>>, vector<1x32xf32>
    %500 = arith.mulf %498, %498 : vector<16x32xf32>
    %cst_142 = arith.constant dense<0.000000e+00> : vector<16xf32>
    %501 = vector.multi_reduction <add>, %500, %cst_142 [1] : vector<16x32xf32> to vector<16xf32>
    %502 = vector.shape_cast %501 : vector<16xf32> to vector<16x1xf32>
    %cst_143 = arith.constant 3.200000e+01 : f32
    %503 = vector.broadcast %cst_143 : f32 to vector<16x1xf32>
    %504 = arith.divf %502, %503 : vector<16x1xf32>
    %cst_144 = arith.constant 9.99999997E-7 : f32
    %505 = vector.broadcast %cst_144 : f32 to vector<16x1xf32>
    %506 = arith.addf %504, %505 : vector<16x1xf32>
    %507 = math.rsqrt %506 : vector<16x1xf32>
    %508 = vector.broadcast %507 : vector<16x1xf32> to vector<16x32xf32>
    %509 = arith.mulf %498, %508 : vector<16x32xf32>
    %510 = vector.broadcast %499 : vector<1x32xf32> to vector<16x32xf32>
    %511 = arith.mulf %509, %510 : vector<16x32xf32>
    %c352 = arith.constant 352 : index
    %c0_145 = arith.constant 0 : index
    %512 = vector.load %arg4[%c352, %c0_145] : memref<588x32xf32, #tpu.memory_space<vmem>>, vector<32x32xf32>
    %513 = arith.truncf %511 : vector<16x32xf32> to vector<16x32xbf16>
    %514 = arith.truncf %512 : vector<32x32xf32> to vector<32x32xbf16>
    %cst_146 = arith.constant dense<0.000000e+00> : vector<16x32xf32>
    %515 = tpu.matmul %513, %514, %cst_146 {dimension_numbers = #tpu.dot_dimension_numbers<[1], [0], [0], [1], [0, 0, 1, 1], [], []>} : vector<16x32xbf16>, vector<32x32xbf16>, vector<16x32xf32> -> vector<16x32xf32>
    %c160 = arith.constant 160 : index
    %c0_147 = arith.constant 0 : index
    %516 = vector.load %arg3[%c160, %c0_147] : memref<224x64xf32, #tpu.memory_space<vmem>>, vector<32x64xf32>
    %517 = arith.truncf %234 : vector<16x32xf32> to vector<16x32xbf16>
    %518 = arith.truncf %516 : vector<32x64xf32> to vector<32x64xbf16>
    %cst_148 = arith.constant dense<0.000000e+00> : vector<16x64xf32>
    %519 = tpu.matmul %517, %518, %cst_148 {dimension_numbers = #tpu.dot_dimension_numbers<[1], [0], [0], [1], [0, 0, 1, 1], [], []>} : vector<16x32xbf16>, vector<32x64xbf16>, vector<16x64xf32> -> vector<16x64xf32>
    %520 = vector.extract_strided_slice %519 {offsets = [0, 0], sizes = [16, 32], strides = [1, 1]} : vector<16x64xf32> to vector<16x32xf32>
    %521 = vector.extract_strided_slice %519 {offsets = [0, 32], sizes = [16, 32], strides = [1, 1]} : vector<16x64xf32> to vector<16x32xf32>
    %c416 = arith.constant 416 : index
    %c0_149 = arith.constant 0 : index
    %522 = vector.load %arg4[%c416, %c0_149] : memref<588x32xf32, #tpu.memory_space<vmem>>, vector<32x32xf32>
    %523 = tpu.transpose %520, [1, 0] : vector<16x32xf32> -> vector<32x16xf32>
    %524 = vector.extract_strided_slice %515 {offsets = [0, 0], sizes = [16, 8], strides = [1, 1]} : vector<16x32xf32> to vector<16x8xf32>
    %525 = vector.extract_strided_slice %523 {offsets = [0, 0], sizes = [8, 16], strides = [1, 1]} : vector<32x16xf32> to vector<8x16xf32>
    %526 = arith.truncf %524 : vector<16x8xf32> to vector<16x8xbf16>
    %527 = arith.truncf %525 : vector<8x16xf32> to vector<8x16xbf16>
    %cst_150 = arith.constant dense<0.000000e+00> : vector<16x16xf32>
    %528 = tpu.matmul %526, %527, %cst_150 {dimension_numbers = #tpu.dot_dimension_numbers<[1], [0], [0], [1], [0, 0, 1, 1], [], []>} : vector<16x8xbf16>, vector<8x16xbf16>, vector<16x16xf32> -> vector<16x16xf32>
    %529 = vector.extract_strided_slice %515 {offsets = [0, 8], sizes = [16, 8], strides = [1, 1]} : vector<16x32xf32> to vector<16x8xf32>
    %530 = vector.extract_strided_slice %523 {offsets = [8, 0], sizes = [8, 16], strides = [1, 1]} : vector<32x16xf32> to vector<8x16xf32>
    %531 = arith.truncf %529 : vector<16x8xf32> to vector<16x8xbf16>
    %532 = arith.truncf %530 : vector<8x16xf32> to vector<8x16xbf16>
    %cst_151 = arith.constant dense<0.000000e+00> : vector<16x16xf32>
    %533 = tpu.matmul %531, %532, %cst_151 {dimension_numbers = #tpu.dot_dimension_numbers<[1], [0], [0], [1], [0, 0, 1, 1], [], []>} : vector<16x8xbf16>, vector<8x16xbf16>, vector<16x16xf32> -> vector<16x16xf32>
    %534 = vector.extract_strided_slice %515 {offsets = [0, 16], sizes = [16, 8], strides = [1, 1]} : vector<16x32xf32> to vector<16x8xf32>
    %535 = vector.extract_strided_slice %523 {offsets = [16, 0], sizes = [8, 16], strides = [1, 1]} : vector<32x16xf32> to vector<8x16xf32>
    %536 = arith.truncf %534 : vector<16x8xf32> to vector<16x8xbf16>
    %537 = arith.truncf %535 : vector<8x16xf32> to vector<8x16xbf16>
    %cst_152 = arith.constant dense<0.000000e+00> : vector<16x16xf32>
    %538 = tpu.matmul %536, %537, %cst_152 {dimension_numbers = #tpu.dot_dimension_numbers<[1], [0], [0], [1], [0, 0, 1, 1], [], []>} : vector<16x8xbf16>, vector<8x16xbf16>, vector<16x16xf32> -> vector<16x16xf32>
    %539 = vector.extract_strided_slice %515 {offsets = [0, 24], sizes = [16, 8], strides = [1, 1]} : vector<16x32xf32> to vector<16x8xf32>
    %540 = vector.extract_strided_slice %523 {offsets = [24, 0], sizes = [8, 16], strides = [1, 1]} : vector<32x16xf32> to vector<8x16xf32>
    %541 = arith.truncf %539 : vector<16x8xf32> to vector<16x8xbf16>
    %542 = arith.truncf %540 : vector<8x16xf32> to vector<8x16xbf16>
    %cst_153 = arith.constant dense<0.000000e+00> : vector<16x16xf32>
    %543 = tpu.matmul %541, %542, %cst_153 {dimension_numbers = #tpu.dot_dimension_numbers<[1], [0], [0], [1], [0, 0, 1, 1], [], []>} : vector<16x8xbf16>, vector<8x16xbf16>, vector<16x16xf32> -> vector<16x16xf32>
    %544 = tpu.concatenate %528, %533, %538, %543 in 0 : vector<16x16xf32>, vector<16x16xf32>, vector<16x16xf32>, vector<16x16xf32> -> vector<64x16xf32>
    %545 = arith.addf %544, %15 : vector<64x16xf32>
    %cst_154 = arith.constant dense<0xFF800000> : vector<64xf32>
    %546 = vector.multi_reduction <maximumf>, %545, %cst_154 [1] : vector<64x16xf32> to vector<64xf32>
    %547 = vector.shape_cast %546 : vector<64xf32> to vector<64x1xf32>
    %548 = vector.broadcast %547 : vector<64x1xf32> to vector<64x16xf32>
    %549 = arith.subf %545, %548 : vector<64x16xf32>
    %550 = math.exp %549 : vector<64x16xf32>
    %cst_155 = arith.constant dense<0.000000e+00> : vector<64xf32>
    %551 = vector.multi_reduction <add>, %550, %cst_155 [1] : vector<64x16xf32> to vector<64xf32>
    %552 = vector.shape_cast %551 : vector<64xf32> to vector<64x1xf32>
    %553 = tpu.reciprocal %552 {approx = true} : vector<64x1xf32> -> vector<64x1xf32>
    %554 = vector.broadcast %553 : vector<64x1xf32> to vector<64x16xf32>
    %555 = arith.mulf %550, %554 : vector<64x16xf32>
    %556 = vector.extract_strided_slice %555 {offsets = [0, 0], sizes = [16, 16], strides = [1, 1]} : vector<64x16xf32> to vector<16x16xf32>
    %557 = vector.extract_strided_slice %521 {offsets = [0, 0], sizes = [16, 8], strides = [1, 1]} : vector<16x32xf32> to vector<16x8xf32>
    %558 = arith.truncf %556 : vector<16x16xf32> to vector<16x16xbf16>
    %559 = arith.truncf %557 : vector<16x8xf32> to vector<16x8xbf16>
    %cst_156 = arith.constant dense<0.000000e+00> : vector<16x8xf32>
    %560 = tpu.matmul %558, %559, %cst_156 {dimension_numbers = #tpu.dot_dimension_numbers<[1], [0], [0], [1], [0, 0, 1, 1], [], []>} : vector<16x16xbf16>, vector<16x8xbf16>, vector<16x8xf32> -> vector<16x8xf32>
    %561 = vector.extract_strided_slice %555 {offsets = [16, 0], sizes = [16, 16], strides = [1, 1]} : vector<64x16xf32> to vector<16x16xf32>
    %562 = vector.extract_strided_slice %521 {offsets = [0, 8], sizes = [16, 8], strides = [1, 1]} : vector<16x32xf32> to vector<16x8xf32>
    %563 = arith.truncf %561 : vector<16x16xf32> to vector<16x16xbf16>
    %564 = arith.truncf %562 : vector<16x8xf32> to vector<16x8xbf16>
    %cst_157 = arith.constant dense<0.000000e+00> : vector<16x8xf32>
    %565 = tpu.matmul %563, %564, %cst_157 {dimension_numbers = #tpu.dot_dimension_numbers<[1], [0], [0], [1], [0, 0, 1, 1], [], []>} : vector<16x16xbf16>, vector<16x8xbf16>, vector<16x8xf32> -> vector<16x8xf32>
    %566 = vector.extract_strided_slice %555 {offsets = [32, 0], sizes = [16, 16], strides = [1, 1]} : vector<64x16xf32> to vector<16x16xf32>
    %567 = vector.extract_strided_slice %521 {offsets = [0, 16], sizes = [16, 8], strides = [1, 1]} : vector<16x32xf32> to vector<16x8xf32>
    %568 = arith.truncf %566 : vector<16x16xf32> to vector<16x16xbf16>
    %569 = arith.truncf %567 : vector<16x8xf32> to vector<16x8xbf16>
    %cst_158 = arith.constant dense<0.000000e+00> : vector<16x8xf32>
    %570 = tpu.matmul %568, %569, %cst_158 {dimension_numbers = #tpu.dot_dimension_numbers<[1], [0], [0], [1], [0, 0, 1, 1], [], []>} : vector<16x16xbf16>, vector<16x8xbf16>, vector<16x8xf32> -> vector<16x8xf32>
    %571 = vector.extract_strided_slice %555 {offsets = [48, 0], sizes = [16, 16], strides = [1, 1]} : vector<64x16xf32> to vector<16x16xf32>
    %572 = vector.extract_strided_slice %521 {offsets = [0, 24], sizes = [16, 8], strides = [1, 1]} : vector<16x32xf32> to vector<16x8xf32>
    %573 = arith.truncf %571 : vector<16x16xf32> to vector<16x16xbf16>
    %574 = arith.truncf %572 : vector<16x8xf32> to vector<16x8xbf16>
    %cst_159 = arith.constant dense<0.000000e+00> : vector<16x8xf32>
    %575 = tpu.matmul %573, %574, %cst_159 {dimension_numbers = #tpu.dot_dimension_numbers<[1], [0], [0], [1], [0, 0, 1, 1], [], []>} : vector<16x16xbf16>, vector<16x8xbf16>, vector<16x8xf32> -> vector<16x8xf32>
    %576 = tpu.concatenate %560, %565, %570, %575 in 1 : vector<16x8xf32>, vector<16x8xf32>, vector<16x8xf32>, vector<16x8xf32> -> vector<16x32xf32>
    %577 = arith.truncf %576 : vector<16x32xf32> to vector<16x32xbf16>
    %578 = arith.truncf %522 : vector<32x32xf32> to vector<32x32xbf16>
    %cst_160 = arith.constant dense<0.000000e+00> : vector<16x32xf32>
    %579 = tpu.matmul %577, %578, %cst_160 {dimension_numbers = #tpu.dot_dimension_numbers<[1], [0], [0], [1], [0, 0, 1, 1], [], []>} : vector<16x32xbf16>, vector<32x32xbf16>, vector<16x32xf32> -> vector<16x32xf32>
    %580 = arith.addf %498, %579 : vector<16x32xf32>
    %c586 = arith.constant 586 : index
    %c0_161 = arith.constant 0 : index
    %581 = vector.load %arg4[%c586, %c0_161] : memref<588x32xf32, #tpu.memory_space<vmem>>, vector<1x32xf32>
    %582 = arith.mulf %580, %580 : vector<16x32xf32>
    %cst_162 = arith.constant dense<0.000000e+00> : vector<16xf32>
    %583 = vector.multi_reduction <add>, %582, %cst_162 [1] : vector<16x32xf32> to vector<16xf32>
    %584 = vector.shape_cast %583 : vector<16xf32> to vector<16x1xf32>
    %cst_163 = arith.constant 3.200000e+01 : f32
    %585 = vector.broadcast %cst_163 : f32 to vector<16x1xf32>
    %586 = arith.divf %584, %585 : vector<16x1xf32>
    %cst_164 = arith.constant 9.99999997E-7 : f32
    %587 = vector.broadcast %cst_164 : f32 to vector<16x1xf32>
    %588 = arith.addf %586, %587 : vector<16x1xf32>
    %589 = math.rsqrt %588 : vector<16x1xf32>
    %590 = vector.broadcast %589 : vector<16x1xf32> to vector<16x32xf32>
    %591 = arith.mulf %580, %590 : vector<16x32xf32>
    %592 = vector.broadcast %581 : vector<1x32xf32> to vector<16x32xf32>
    %593 = arith.mulf %591, %592 : vector<16x32xf32>
    %c96_165 = arith.constant 96 : index
    %c0_166 = arith.constant 0 : index
    %594 = vector.load %arg3[%c96_165, %c0_166] : memref<224x64xf32, #tpu.memory_space<vmem>>, vector<32x64xf32>
    %c512 = arith.constant 512 : index
    %c0_167 = arith.constant 0 : index
    %595 = vector.load %arg4[%c512, %c0_167] : memref<588x32xf32, #tpu.memory_space<vmem>>, vector<64x32xf32>
    %596 = arith.truncf %593 : vector<16x32xf32> to vector<16x32xbf16>
    %597 = arith.truncf %594 : vector<32x64xf32> to vector<32x64xbf16>
    %cst_168 = arith.constant dense<0.000000e+00> : vector<16x64xf32>
    %598 = tpu.matmul %596, %597, %cst_168 {dimension_numbers = #tpu.dot_dimension_numbers<[1], [0], [0], [1], [0, 0, 1, 1], [], []>} : vector<16x32xbf16>, vector<32x64xbf16>, vector<16x64xf32> -> vector<16x64xf32>
    %cst_169 = arith.constant 0.000000e+00 : f32
    %599 = vector.broadcast %cst_169 : f32 to vector<16x64xf32>
    %600 = arith.maximumf %598, %599 : vector<16x64xf32>
    %601 = arith.truncf %600 : vector<16x64xf32> to vector<16x64xbf16>
    %602 = arith.truncf %595 : vector<64x32xf32> to vector<64x32xbf16>
    %cst_170 = arith.constant dense<0.000000e+00> : vector<16x32xf32>
    %603 = tpu.matmul %601, %602, %cst_170 {dimension_numbers = #tpu.dot_dimension_numbers<[1], [0], [0], [1], [0, 0, 1, 1], [], []>} : vector<16x64xbf16>, vector<64x32xbf16>, vector<16x32xf32> -> vector<16x32xf32>
    %604 = arith.addf %580, %603 : vector<16x32xf32>
    %c587 = arith.constant 587 : index
    %c0_171 = arith.constant 0 : index
    %605 = vector.load %arg4[%c587, %c0_171] : memref<588x32xf32, #tpu.memory_space<vmem>>, vector<1x32xf32>
    %606 = arith.mulf %604, %604 : vector<16x32xf32>
    %cst_172 = arith.constant dense<0.000000e+00> : vector<16xf32>
    %607 = vector.multi_reduction <add>, %606, %cst_172 [1] : vector<16x32xf32> to vector<16xf32>
    %608 = vector.shape_cast %607 : vector<16xf32> to vector<16x1xf32>
    %cst_173 = arith.constant 3.200000e+01 : f32
    %609 = vector.broadcast %cst_173 : f32 to vector<16x1xf32>
    %610 = arith.divf %608, %609 : vector<16x1xf32>
    %cst_174 = arith.constant 9.99999997E-7 : f32
    %611 = vector.broadcast %cst_174 : f32 to vector<16x1xf32>
    %612 = arith.addf %610, %611 : vector<16x1xf32>
    %613 = math.rsqrt %612 : vector<16x1xf32>
    %614 = vector.broadcast %613 : vector<16x1xf32> to vector<16x32xf32>
    %615 = arith.mulf %604, %614 : vector<16x32xf32>
    %616 = vector.broadcast %605 : vector<1x32xf32> to vector<16x32xf32>
    %617 = arith.mulf %615, %616 : vector<16x32xf32>
    %cst_175 = arith.constant 0.176776692 : f32
    %618 = vector.broadcast %cst_175 : f32 to vector<16x32xf32>
    %619 = arith.mulf %617, %618 : vector<16x32xf32>
    %620 = arith.truncf %619 : vector<16x32xf32> to vector<16x32xbf16>
    %621 = arith.truncf %1 : vector<32x64xf32> to vector<32x64xbf16>
    %cst_176 = arith.constant dense<0.000000e+00> : vector<16x64xf32>
    %622 = tpu.matmul %620, %621, %cst_176 {dimension_numbers = #tpu.dot_dimension_numbers<[1], [0], [0], [1], [0, 0, 1, 1], [], []>} : vector<16x32xbf16>, vector<32x64xbf16>, vector<16x64xf32> -> vector<16x64xf32>
    %c32_177 = arith.constant 32 : index
    %c0_178 = arith.constant 0 : index
    %623 = vector.load %arg0[%c32_177, %c0_178] : memref<48x1xi32, #tpu.memory_space<vmem>>, vector<16x1xi32>
    %cst_179 = arith.constant dense<0xFF800000> : vector<16xf32>
    %624 = vector.multi_reduction <maximumf>, %622, %cst_179 [1] : vector<16x64xf32> to vector<16xf32>
    %625 = vector.shape_cast %624 : vector<16xf32> to vector<16x1xf32>
    %626 = vector.broadcast %625 : vector<16x1xf32> to vector<16x64xf32>
    %627 = arith.subf %622, %626 : vector<16x64xf32>
    %628 = math.exp %627 : vector<16x64xf32>
    %cst_180 = arith.constant dense<0.000000e+00> : vector<16xf32>
    %629 = vector.multi_reduction <add>, %628, %cst_180 [1] : vector<16x64xf32> to vector<16xf32>
    %630 = vector.shape_cast %629 : vector<16xf32> to vector<16x1xf32>
    %631 = math.log %630 : vector<16x1xf32>
    %632 = arith.addf %631, %625 : vector<16x1xf32>
    %633 = tpu.iota {dimensions = array<i32: 1>} : vector<16x64xi32>
    %634 = vector.broadcast %623 : vector<16x1xi32> to vector<16x64xi32>
    %635 = arith.cmpi eq, %633, %634 : vector<16x64xi32>
    %cst_181 = arith.constant 0.000000e+00 : f32
    %636 = vector.broadcast %cst_181 : f32 to vector<16x64xf32>
    %637 = arith.select %635, %622, %636 : vector<16x64xi1>, vector<16x64xf32>
    %cst_182 = arith.constant dense<0.000000e+00> : vector<16xf32>
    %638 = vector.multi_reduction <add>, %637, %cst_182 [1] : vector<16x64xf32> to vector<16xf32>
    %639 = vector.shape_cast %638 : vector<16xf32> to vector<16x1xf32>
    %c-100_i32 = arith.constant -100 : i32
    %640 = vector.broadcast %c-100_i32 : i32 to vector<16x1xi32>
    %641 = arith.cmpi ne, %623, %640 : vector<16x1xi32>
    %642 = arith.extui %641 : vector<16x1xi1> to vector<16x1xi32>
    %643 = arith.sitofp %642 : vector<16x1xi32> to vector<16x1xf32>
    %644 = arith.subf %632, %639 : vector<16x1xf32>
    %645 = arith.mulf %644, %643 : vector<16x1xf32>
    %cst_183 = arith.constant dense<0.000000e+00> : vector<1xf32>
    %646 = vector.multi_reduction <add>, %645, %cst_183 [0] : vector<16x1xf32> to vector<1xf32>
    %647 = vector.shape_cast %646 : vector<1xf32> to vector<1x1xf32>
    %cst_184 = arith.constant dense<0.000000e+00> : vector<1xf32>
    %648 = vector.multi_reduction <add>, %643, %cst_184 [0] : vector<16x1xf32> to vector<1xf32>
    %649 = vector.shape_cast %648 : vector<1xf32> to vector<1x1xf32>
    %cst_185 = arith.constant 1.000000e+00 : f32
    %650 = vector.broadcast %cst_185 : f32 to vector<1x1xf32>
    %651 = arith.maximumf %649, %650 : vector<1x1xf32>
    %652 = arith.divf %647, %651 : vector<1x1xf32>
    %c0_186 = arith.constant 0 : index
    %c0_187 = arith.constant 0 : index
    %653 = vector.load %arg5[%c0_186, %c0_187] : memref<1x1xf32, #tpu.memory_space<vmem>>, vector<1x1xf32>
    tpu.vector_store %arg5[%c0_186, %c0_187], %652 {strides = array<i32>} : memref<1x1xf32, #tpu.memory_space<vmem>>, vector<1x1xf32>,
    return
  }
}

</mosaic_0001>

<bundles_post_ra>
// kernel: t5_forward.1
= control target key start
LH: loop header
LB: loop body
LE: loop exit
PB: predicated region body
PF: predicated region fallthrough
CT: control target
= control target key end

     0   :  { %v6247_v2 = vmov 0   ;;  %v6248_v13 = vmov 0.0   ;;  %s7637_s0 = inlined_call_operand.vmem [shape: s32[48,1], index: 0, kind: input, shape index: {}]   ;;  %s7638_s1 = inlined_call_operand.vmem [shape: f32[192,16], index: 1, kind: input, shape index: {}]   ;;  %s7639_s2 = inlined_call_operand.vmem [shape: f32[128,96], index: 2, kind: input, shape index: {}]   ;;  %s7640_s3 = inlined_call_operand.vmem [shape: f32[224,64], index: 3, kind: input, shape index: {}]   ;;  %s7641_s4 = inlined_call_operand.vmem [shape: f32[588,32], index: 4, kind: input, shape index: {}]   ;;  %s7642_s5 = inlined_call_operand.hbm [shape: f32[1,1], index: 5, kind: output, shape index: {}]  }
   0x1   :  { %v36_v0 = vld [vmem:[%s7637_s0 + $0x10] sm:$0xff]  ;;  %v34_v1 = vld [vmem:[%s7637_s0] sm:$0xff]  ;;  %5866 = vset.pattern.permute.xlu1 %v6247_v2  ;;  %5865 = vset.pattern.permute.xlu0 %v6247_v2  ;;  %v37_v3 = vld [vmem:[%s7637_s0 + $0x18] sm:$0xff] }
   0x2   :  { %v22_v4 = vld [vmem:[%s7641_s4] sm:$0xff]  ;;  %v23_v5 = vld [vmem:[%s7641_s4 + $0x8] sm:$0xff]  ;;  %47 = vperm.xlu1 %5866, %v36_v0   ;;  %41 = vperm.xlu0 %5865, %v34_v1   ;;  %v24_v8 = vld [vmem:[%s7641_s4 + $0x10] sm:$0xff] }
   0x3   :  { %v35_v6 = vld [vmem:[%s7637_s0 + $0x8] sm:$0xff]  ;;  %v66_v7 = vpack.c.bf16 %v23_v5, %v22_v4  ;;  %v25_v9 = vld [vmem:[%s7641_s4 + $0x18] sm:$0xff]  ;;  %v26_v11 = vld [vmem:[%s7641_s4 + $0x20] sm:$0xff]  ;;  %5359 = vmatprep.subr.bf16.mxu1 %v6248_v13 }
   0x4   :  { %v67_v10 = vpack.c.bf16 %v25_v9, %v24_v8  ;;  %v27_v12 = vld [vmem:[%s7641_s4 + $0x28] sm:$0xff] }
   0x5   :  { %10 = vsyncpa [#allocation3], 0  ;;  %5347 = vmatprep.subr.bf16.mxu0 %v66_v7  ;;  %v68_v14 = vpack.c.bf16 %v27_v12, %v26_v11  ;;  %v28_v15 = vld [vmem:[%s7641_s4 + $0x30] sm:$0xff]  ;;  %v29_v16 = vld [vmem:[%s7641_s4 + $0x38] sm:$0xff]  ;;  %v38_v18 = vlaneseq  ;;  %vm70_vm4 = vcmask 523264   ;;  %vm153_vm5 = vcmask 261120  }
   0x6   :  { %5348 = vmatpush3.bf16.msra.mxu0 %v66_v7  ;;  %50 = vperm.xlu1 %5866, %v37_v3   ;;  %v69_v17 = vpack.c.bf16 %v29_v16, %v28_v15  ;;  %v175_v38 = vld [vmem:[%s7639_s2] sm:$0xff]  ;;  %v176_v39 = vld [vmem:[%s7639_s2 + $0x8] sm:$0xff]  ;;  %v177_v40 = vld [vmem:[%s7639_s2 + $0x10] sm:$0xff]  ;;  %vm6249_vm6 = vmmov 0   ;;  %s6250_s27 = smov 96   ;;  %s6251_s28 = smov 120  }
   0x7   :  { %44 = vperm.xlu0 %5865, %v35_v6   ;;  %5349 = vmatprep.subr.bf16.mxu0 %v67_v10  ;;  %v6333_v19 = vand.u32 127, %v38_v18  ;;  %v180_v41 = vpack.c.bf16 %v176_v39, %v175_v38  ;;  %v178_v42 = vld [vmem:[%s7639_s2 + $0x18] sm:$0xff]  ;;  %v5083_v53 = vld [vmem:[%s7641_s4 + $0x240] ss:$0 sm:$0xff]  ;;  %s6252_s29 = smov 112   ;;  %s6253_s30 = smov 104  }
   0x8   :  { %5363 = vmatprep.mubr.msk.bf16.mxu1 %vm6249_vm6, %v6248_v13  ;;  %v181_v43 = vpack.c.bf16 %v178_v42, %v177_v40  ;;  %vm276_vm7 = vcmask 1043456   ;;  %vm272_vm8 = vcmask 64512   ;;  %vm480_vm9 = vcmask 130048   ;;  %v6444_v39 = vld [vmem:[%s7638_s1 + $0x18] sm:$0xff]  ;;  %s6254_s22 = smov 56   ;;  %s6255_s23 = smov 48  }
   0x9   :  { %5360 = vmatpush3.bf16.msra.mxu1 %v180_v41  ;;  %s6256_s24 = smov 64   ;;  %s6257_s25 = smov 40   ;;  %vm789_vm10 = vcmask 195584   ;;  %vm5039_vm15 = vcmask 7168  }
   0xa   :  { %5350 = vmatpush3.bf16.msra.mxu0 %v67_v10  ;;  %5361 = vmatprep.subr.bf16.mxu1 %v6248_v13  ;;  %s6258_s9 = smov 8   ;;  %s6259_s14 = smov 16  }
   0xb   :  { %5351 = vmatprep.subr.bf16.mxu0 %v68_v14  ;;  %s6260_s15 = smov 24   ;;  %s6261_s16 = smov 88  }
   0xc   :  { %s6262_s17 = smov 80   ;;  %s6263_s18 = smov 72  }
   0xd   :  { %5362 = vmatpush3.bf16.msra.mxu1 %v181_v43 }
   0xe   :  { %5352 = vmatpush3.bf16.msra.mxu0 %v68_v14  ;;  %5367 = vmatprep.subr.bf16.mxu1 %v6248_v13 }
   0xf   :  { %5353 = vmatprep.subr.bf16.mxu0 %v69_v17 }
  0x12   :  { %5354 = vmatpush3.bf16.msra.mxu0 %v69_v17  ;;  %v6419_v17 = vld [vmem:[%s7638_s1] sm:$0xff] }
  0x13   :  { %5373 = vmatprep.subr.bf16.mxu0 %v6248_v13 }
  0x81   :  { %v48_v20 = vpop.permute.xlu1 %47  ;;  %v42_v21 = vpop.permute.xlu0 %41 }
  0x82   :  { %vm54_vm0 = vcmp.eq.s32.totalorder %v6333_v19, %v48_v20  ;;  %vm52_vm1 = vcmp.eq.s32.totalorder %v6333_v19, %v42_v21  ;;  %v6424_v20 = vld [vmem:[%s7638_s1 + $0x8] sm:$0xff] }
  0x83   :  { %v5079_v24 = vsel %vm54_vm0, 1.0, %v6248_v13  ;;  %v5077_v26 = vsel %vm52_vm1, 1.0, %v6248_v13  ;;  %vm5061_vm0 = vcmask 0  }
  0x85   :  { %v51_v22 = vpop.permute.xlu1 %50 }
  0x86   :  { %v45_v23 = vpop.permute.xlu0 %44  ;;  %vm55_vm2 = vcmp.eq.s32.totalorder %v6333_v19, %v51_v22 }
  0x87   :  { %vm53_vm3 = vcmp.eq.s32.totalorder %v6333_v19, %v45_v23  ;;  %v5080_v25 = vsel %vm55_vm2, 1.0, %v6248_v13 }
  0x88   :  { %v5078_v27 = vsel %vm53_vm3, 1.0, %v6248_v13  ;;  %v65_v28 = vpack.c.bf16 %v5080_v25, %v5079_v24 }
  0x89   :  { %v64_v29 = vpack.c.bf16 %v5078_v27, %v5077_v26  ;;  %v6432_v27 = vld [vmem:[%s7638_s1 + $0x10] sm:$0xff] }
  0x8b   :  { %5355 = vmatprep.mubr.msk.bf16.mxu0 %vm70_vm4, %v64_v29 }
  0x8c   :  { %5356 = vmatmul.mubr.msk.bf16.vlgmr.msra.gmra.mrb[0].mxu0 %vm70_vm4, %v65_v28 }
  0x8d   :  { %5375 = vmatprep.mubr.msk.bf16.mxu0 %vm6249_vm6, %v6248_v13 }
 0x15f   :  { %v6345_v30 = vpop.f32.mrb[0].mxu0 }
 0x160   :  { %v6347_v31 = vpop.f32.mrb[1].mxu0 }
 0x161   :  { %v6349_v32 = vpop.f32.mrb[2].mxu0  ;;  %v151_v33 = vmul.f32 %v6347_v31, %v6347_v31 }
 0x162   :  { %v6353_v34 = vpop.f32.mrb[3].mxu0 }
 0x163   :  { %v154_v35 = vsel %vm153_vm5, %v151_v33, 0.0  ;;  %v152_v36 = vmul.f32 %v6353_v34, %v6353_v34 }
 0x164   :  { %155 = vadd.xlane.f32.xlu0 %v154_v35  ;;  %v6437_v35 = vld [vmem:[%s7638_s1 + $0x20] sm:$0xff] }
 0x165   :  { %v157_v37 = vsel %vm153_vm5, %v152_v36, 0.0 }
 0x166   :  { %158 = vadd.xlane.f32.xlu1 %v157_v37 }
 0x1f1   :  { %v156_v44 = vpop.xlane.xlu0 %155 }
 0x1f2   :  { %v161_v45 = vmul.f32 0.03125, %v156_v44 }
 0x1f3   :  { %v159_v46 = vpop.xlane.xlu1 %158 }
 0x1f4   :  { %v163_v47 = vadd.f32 1e-06, %v161_v45  ;;  %v162_v48 = vmul.f32 0.03125, %v159_v46 }
 0x1f6   :  { %5957 = vrsqrt.f32 %v163_v47  ;;  %v164_v49 = vadd.f32 1e-06, %v162_v48  ;;  %v6453_v48 = vld [vmem:[%s7638_s1 + $0x28] sm:$0xff] }
 0x1f8   :  { %5959 = vrsqrt.f32 %v164_v49 }
 0x200   :  { %v5958_v50 = vpop.eup %5957 }
 0x201   :  { %v167_v51 = vmul.f32 %v5958_v50, %v6347_v31 }
 0x202   :  { %v5960_v52 = vpop.eup %5959 }
 0x203   :  { %v168_v54 = vmul.f32 %v5960_v52, %v6353_v34  ;;  %v173_v55 = vmul.f32 %v5083_v53, %v167_v51 }
 0x205   :  { %v174_v56 = vmul.f32 %v5083_v53, %v168_v54 }
 0x207   :  { %v179_v57 = vpack.c.bf16 %v174_v56, %v173_v55  ;;  %v6460_v55 = vld [vmem:[%s7638_s1 + $0x30] sm:$0xff] }
 0x209   :  { %5364 = vmatmul.mubr.msk.bf16.vlgmr.msra.gmra.mrb[0].mxu1 %vm153_vm5, %v179_v57 }
 0x20a   :  { %5369 = vmatprep.mubr.msk.bf16.mxu1 %vm6249_vm6, %v6248_v13 }
 0x2dc   :  { %v219_v58 = vpop.f32.mrb[0].mxu1 }
 0x2dd   :  { %232 = vrot.lane.b32.xlu0 %v219_v58, %s6250_s27  ;;  %v5365_v59 = vpop.f32.mrb[1].mxu1 }
 0x2de   :  { %v222_v60 = vpop.f32.mrb[2].mxu1 }
 0x2df   :  { %v6386_v61 = vpack.c.bf16 %v222_v60, %v219_v58  ;;  %234 = vrot.lane.b32.xlu1 %v222_v60, %s6250_s27  ;;  %v5366_v62 = vpop.f32.mrb[3].mxu1  ;;  %v6467_v58 = vld [vmem:[%s7638_s1 + $0x38] sm:$0xff] }
 0x2e1   :  { %323 = vrot.lane.b32.xlu0 %v6386_v61, %s6251_s28 }
 0x2e3   :  { %373 = vrot.lane.b32.xlu1 %v6386_v61, %s6252_s29 }
 0x2e5   :  { %423 = vrot.lane.b32.xlu0 %v6386_v61, %s6253_s30 }
 0x34f   :  { %v233_v63 = vpop.permute.xlu0 %232 }
 0x350   :  { %238 = vxpose.xlu1.b32.start [1/2] (short) (narrow) %v233_v63, 32 }
 0x351   :  { %v235_v0 = vpop.permute.xlu1 %234 }
 0x353   :  { %v324_v10 = vpop.permute.xlu0 %323 }
 0x354   :  { %239 = vxpose.xlu1.b32.end [2/2] (short) (narrow) %v235_v0, 32 }
 0x355   :  { %v374_v1 = vpop.permute.xlu1 %373 }
 0x357   :  { %v424_v16 = vpop.permute.xlu0 %423 }
 0x3d0   :  { %v254_v2 = vpop.trf.xlu1 }
 0x3d1   :  { %v271_v3 = vpack.c.bf16 %v254_v2, %v254_v2 }
 0x3d3   :  { %v278_v4 = vsel %vm276_vm7, %v271_v3, 0 }
 0x3d4   :  { %5368 = vmatpush3.bf16.msra.mxu1 %v278_v4  ;;  %v255_v5 = vpop.trf.xlu1 }
 0x3d5   :  { %v321_v6 = vpack.c.bf16 %v255_v5, %v255_v5  ;;  %5379 = vmatprep.subr.bf16.mxu1 %v6248_v13 }
 0x3d7   :  { %5370 = vmatmul.mubr.msk.bf16.vlgmr.msra.gmra.mrb[4].mxu1 %vm272_vm8, %v6386_v61  ;;  %v329_v7 = vsel %vm276_vm7, %v321_v6, 0 }
 0x3d8   :  { %5374 = vmatpush3.bf16.msra.mxu0 %v329_v7  ;;  %v256_v8 = vpop.trf.xlu1  ;;  %5381 = vmatprep.mubr.msk.bf16.mxu1 %vm6249_vm6, %v6248_v13 }
 0x3d9   :  { %v372_v9 = vpack.c.bf16 %v256_v8, %v256_v8  ;;  %5385 = vmatprep.subr.bf16.mxu0 %v6248_v13 }
 0x3db   :  { %v379_v11 = vsel %vm276_vm7, %v372_v9, 0  ;;  %5376 = vmatmul.mubr.msk.bf16.vlgmr.msra.gmra.mrb[4].mxu0 %vm272_vm8, %v324_v10 }
 0x3dc   :  { %5380 = vmatpush3.bf16.msra.mxu1 %v379_v11  ;;  %v257_v12 = vpop.trf.xlu1  ;;  %5387 = vmatprep.mubr.msk.bf16.mxu0 %vm6249_vm6, %v6248_v13 }
 0x3dd   :  { %v422_v14 = vpack.c.bf16 %v257_v12, %v257_v12  ;;  %5391 = vmatprep.subr.bf16.mxu1 %v6248_v13 }
 0x3df   :  { %v429_v15 = vsel %vm276_vm7, %v422_v14, 0  ;;  %5382 = vmatmul.mubr.msk.bf16.vlgmr.msra.gmra.mrb[8].mxu1 %vm272_vm8, %v374_v1 }
 0x3e0   :  { %5386 = vmatpush3.bf16.msra.mxu0 %v429_v15  ;;  %5393 = vmatprep.mubr.msk.bf16.mxu1 %vm6249_vm6, %v6248_v13 }
 0x3e1   :  { %5397 = vmatprep.subr.bf16.mxu0 %v6248_v13 }
 0x3e3   :  { %5388 = vmatmul.mubr.msk.bf16.vlgmr.msra.gmra.mrb[8].mxu0 %vm272_vm8, %v424_v16 }
 0x3e4   :  { %5399 = vmatprep.mubr.msk.bf16.mxu0 %vm6249_vm6, %v6248_v13 }
 0x4aa   :  { %v314_v18 = vpop.f32.mrb[4].mxu1 }
 0x4ab   :  { %v472_v21 = vadd.f32 %v314_v18, %v6419_v17  ;;  %v5371_v22 = vpop.f32.mrb[5].mxu1 }
 0x4ac   :  { %v317_v23 = vpop.f32.mrb[6].mxu1 }
 0x4ad   :  { %v473_v24 = vadd.f32 %v317_v23, %v6424_v20  ;;  %v5372_v25 = vpop.f32.mrb[7].mxu1  ;;  %v481_v26 = vsel %vm480_vm9, %v472_v21, -inf }
 0x4ae   :  { %v365_v28 = vpop.f32.mrb[4].mxu0  ;;  %482 = vmax.xlane.f32.xlu0 %v481_v26 }
 0x4af   :  { %v5377_v29 = vpop.f32.mrb[5].mxu0  ;;  %v474_v36 = vadd.f32 %v365_v28, %v6432_v27  ;;  %v484_v38 = vsel %vm480_vm9, %v473_v24, -inf }
 0x4b0   :  { %v368_v33 = vpop.f32.mrb[6].mxu0 }
 0x4b1   :  { %v5378_v37 = vpop.f32.mrb[7].mxu0  ;;  %v475_v44 = vadd.f32 %v368_v33, %v6444_v39  ;;  %v487_v46 = vsel %vm480_vm9, %v474_v36, -inf }
 0x4b2   :  { %485 = vmax.xlane.f32.xlu0 %v484_v38  ;;  %v415_v40 = vpop.f32.mrb[8].mxu1 }
 0x4b3   :  { %v476_v41 = vadd.f32 %v415_v40, %v6437_v35  ;;  %v5383_v42 = vpop.f32.mrb[9].mxu1  ;;  %v490_v54 = vsel %vm480_vm9, %v475_v44, -inf }
 0x4b4   :  { %v418_v43 = vpop.f32.mrb[10].mxu1 }
 0x4b5   :  { %v5384_v45 = vpop.f32.mrb[11].mxu1  ;;  %v493_v47 = vsel %vm480_vm9, %v476_v41, -inf  ;;  %v477_v52 = vadd.f32 %v418_v43, %v6453_v48 }
 0x4b6   :  { %v465_v49 = vpop.f32.mrb[8].mxu0  ;;  %488 = vmax.xlane.f32.xlu0 %v487_v46  ;;  %494 = vmax.xlane.f32.xlu1 %v493_v47 }
 0x4b7   :  { %v5389_v50 = vpop.f32.mrb[9].mxu0  ;;  %v478_v56 = vadd.f32 %v465_v49, %v6460_v55  ;;  %v496_v57 = vsel %vm480_vm9, %v477_v52, -inf }
 0x4b8   :  { %v468_v51 = vpop.f32.mrb[10].mxu0 }
 0x4b9   :  { %v5390_v53 = vpop.f32.mrb[11].mxu0  ;;  %v479_v59 = vadd.f32 %v468_v51, %v6467_v58  ;;  %v499_v60 = vsel %vm480_vm9, %v478_v56, -inf }
 0x4ba   :  { %491 = vmax.xlane.f32.xlu0 %v490_v54 }
 0x4bb   :  { %v502_v62 = vsel %vm480_vm9, %v479_v59, -inf }
 0x4be   :  { %497 = vmax.xlane.f32.xlu0 %v496_v57 }
 0x4c2   :  { %500 = vmax.xlane.f32.xlu0 %v499_v60 }
 0x4c6   :  { %503 = vmax.xlane.f32.xlu0 %v502_v62 }
 0x4c7   :  { %618 = vrot.lane.b32.xlu1 %v6386_v61, %s6254_s22 }
 0x4cb   :  { %666 = vrot.lane.b32.xlu1 %v6386_v61, %s6255_s23 }
 0x4dc   :  { %570 = vrot.lane.b32.xlu0 %v6386_v61, %s6256_s24 }
 0x53b   :  { %v483_v63 = vpop.xlane.xlu0 %482 }
 0x53c   :  { %v505_v0 = vsub.f32 %v472_v21, %v483_v63 }
 0x53e   :  { %v513_v1 = vmul.f32 1.442695, %v505_v0 }
 0x53f   :  { %v486_v2 = vpop.xlane.xlu0 %485 }
 0x540   :  { %5961 = vpow2.f32 %v513_v1  ;;  %v506_v3 = vsub.f32 %v473_v24, %v486_v2 }
 0x542   :  { %v515_v4 = vmul.f32 1.442695, %v506_v3 }
 0x543   :  { %v489_v5 = vpop.xlane.xlu0 %488  ;;  %v495_v6 = vpop.xlane.xlu1 %494 }
 0x544   :  { %5963 = vpow2.f32 %v515_v4  ;;  %v507_v7 = vsub.f32 %v474_v36, %v489_v5  ;;  %v509_v9 = vsub.f32 %v476_v41, %v495_v6 }
 0x546   :  { %v517_v8 = vmul.f32 1.442695, %v507_v7  ;;  %v521_v15 = vmul.f32 1.442695, %v509_v9 }
 0x547   :  { %v492_v10 = vpop.xlane.xlu0 %491  ;;  %v619_v11 = vpop.permute.xlu1 %618 }
 0x548   :  { %5965 = vpow2.f32 %v517_v8  ;;  %v508_v12 = vsub.f32 %v475_v44, %v492_v10  ;;  %5398 = vmatpush3.bf16.msra.mxu0 %v619_v11 }
 0x549   :  { %5409 = vmatprep.subr.bf16.mxu0 %v6248_v13 }
 0x54a   :  { %v5962_v14 = vpop.eup %5961  ;;  %v519_v16 = vmul.f32 1.442695, %v508_v12 }
 0x54b   :  { %v498_v18 = vpop.xlane.xlu0 %497  ;;  %v529_v21 = vsel %vm480_vm9, %v5962_v14, 0.0  ;;  %v667_v2 = vpop.permute.xlu1 %666 }
 0x54c   :  { %5967 = vpow2.f32 %v519_v16  ;;  %v510_v22 = vsub.f32 %v477_v52, %v498_v18  ;;  %530 = vadd.xlane.f32.xlu0 %v529_v21 }
 0x54d   :  { %5969 = vpow2.f32 %v521_v15 }
 0x54e   :  { %v5964_v23 = vpop.eup %5963  ;;  %v523_v24 = vmul.f32 1.442695, %v510_v22 }
 0x54f   :  { %v501_v25 = vpop.xlane.xlu0 %500  ;;  %v532_v26 = vsel %vm480_vm9, %v5964_v23, 0.0 }
 0x550   :  { %v511_v28 = vsub.f32 %v478_v56, %v501_v25  ;;  %533 = vadd.xlane.f32.xlu0 %v532_v26  ;;  %5971 = vpow2.f32 %v523_v24 }
 0x552   :  { %v5966_v29 = vpop.eup %5965  ;;  %v525_v33 = vmul.f32 1.442695, %v511_v28 }
 0x553   :  { %v504_v36 = vpop.xlane.xlu0 %503  ;;  %v535_v37 = vsel %vm480_vm9, %v5966_v29, 0.0 }
 0x554   :  { %v512_v38 = vsub.f32 %v479_v59, %v504_v36  ;;  %536 = vadd.xlane.f32.xlu0 %v535_v37  ;;  %5973 = vpow2.f32 %v525_v33 }
 0x556   :  { %v5968_v40 = vpop.eup %5967  ;;  %v527_v41 = vmul.f32 1.442695, %v512_v38  ;;  %v226_v38 = vld [vmem:[%s7641_s4 + $0x40] sm:$0xff] }
 0x557   :  { %v571_v42 = vpop.permute.xlu0 %570  ;;  %v538_v43 = vsel %vm480_vm9, %v5968_v40, 0.0  ;;  %v5970_v44 = vpop.eup %5969 }
 0x558   :  { %539 = vadd.xlane.f32.xlu0 %v538_v43  ;;  %5392 = vmatpush3.bf16.msra.mxu1 %v571_v42  ;;  %5975 = vpow2.f32 %v527_v41  ;;  %v541_v45 = vsel %vm480_vm9, %v5970_v44, 0.0 }
 0x559   :  { %5403 = vmatprep.subr.bf16.mxu1 %v6248_v13 }
 0x55a   :  { %v5972_v46 = vpop.eup %5971 }
 0x55b   :  { %v544_v47 = vsel %vm480_vm9, %v5972_v46, 0.0 }
 0x55c   :  { %542 = vadd.xlane.f32.xlu0 %v541_v45  ;;  %v228_v45 = vld [vmem:[%s7641_s4 + $0x50] sm:$0xff] }
 0x55e   :  { %v5974_v49 = vpop.eup %5973 }
 0x55f   :  { %v547_v50 = vsel %vm480_vm9, %v5974_v49, 0.0 }
 0x560   :  { %545 = vadd.xlane.f32.xlu0 %v544_v47 }
 0x562   :  { %v5976_v51 = vpop.eup %5975 }
 0x563   :  { %v550_v52 = vsel %vm480_vm9, %v5976_v51, 0.0 }
 0x564   :  { %548 = vadd.xlane.f32.xlu0 %v547_v50 }
 0x568   :  { %551 = vadd.xlane.f32.xlu0 %v550_v52 }
 0x57e   :  { %714 = vrot.lane.b32.xlu0 %v6386_v61, %s6257_s25 }
 0x5d9   :  { %v531_v53 = vpop.xlane.xlu0 %530 }
 0x5da   :  { %5977 = vrcp.f32 %v531_v53 }
 0x5dd   :  { %v534_v54 = vpop.xlane.xlu0 %533 }
 0x5de   :  { %5979 = vrcp.f32 %v534_v54 }
 0x5e1   :  { %v537_v56 = vpop.xlane.xlu0 %536 }
 0x5e2   :  { %5981 = vrcp.f32 %v537_v56 }
 0x5e4   :  { %v5978_v59 = vpop.eup %5977 }
 0x5e5   :  { %v540_v57 = vpop.xlane.xlu0 %539  ;;  %v561_v62 = vmul.f32 %v5978_v59, %v5962_v14 }
 0x5e6   :  { %5983 = vrcp.f32 %v540_v57 }
 0x5e8   :  { %v5980_v60 = vpop.eup %5979 }
 0x5e9   :  { %v562_v63 = vmul.f32 %v5980_v60, %v5964_v23  ;;  %v543_v0 = vpop.xlane.xlu0 %542 }
 0x5ea   :  { %5985 = vrcp.f32 %v543_v0 }
 0x5eb   :  { %v569_v1 = vpack.c.bf16 %v562_v63, %v561_v62 }
 0x5ec   :  { %v5982_v61 = vpop.eup %5981 }
 0x5ed   :  { %5394 = vmatmul.mubr.msk.bf16.vlgmr.msra.gmra.mrb[12].mxu1 %vm480_vm9, %v569_v1  ;;  %v546_v3 = vpop.xlane.xlu0 %545  ;;  %v563_v5 = vmul.f32 %v5982_v61, %v5966_v29 }
 0x5ee   :  { %5404 = vmatpush3.bf16.msra.mxu1 %v667_v2  ;;  %5987 = vrcp.f32 %v546_v3  ;;  %5405 = vmatprep.mubr.msk.bf16.mxu1 %vm6249_vm6, %v6248_v13 }
 0x5ef   :  { %5415 = vmatprep.subr.bf16.mxu1 %v6248_v13 }
 0x5f0   :  { %v5984_v4 = vpop.eup %5983 }
 0x5f1   :  { %v564_v6 = vmul.f32 %v5984_v4, %v5968_v40  ;;  %v549_v7 = vpop.xlane.xlu0 %548  ;;  %v227_v40 = vld [vmem:[%s7641_s4 + $0x48] sm:$0xff] }
 0x5f2   :  { %5989 = vrcp.f32 %v549_v7  ;;  %v793_v43 = vpack.c.bf16 %v227_v40, %v226_v38  ;;  %v870_v38 = vld [vmem:[%s7641_s4 + $0x90] sm:$0xff] }
 0x5f3   :  { %v617_v8 = vpack.c.bf16 %v564_v6, %v563_v5 }
 0x5f4   :  { %v5986_v10 = vpop.eup %5985 }
 0x5f5   :  { %5400 = vmatmul.mubr.msk.bf16.vlgmr.msra.gmra.mrb[12].mxu0 %vm480_vm9, %v617_v8  ;;  %v552_v9 = vpop.xlane.xlu0 %551  ;;  %v565_v12 = vmul.f32 %v5986_v10, %v5970_v44 }
 0x5f6   :  { %5991 = vrcp.f32 %v552_v9  ;;  %5411 = vmatprep.mubr.msk.bf16.mxu0 %vm6249_vm6, %v6248_v13 }
 0x5f8   :  { %v5988_v11 = vpop.eup %5987 }
 0x5f9   :  { %v566_v14 = vmul.f32 %v5988_v11, %v5972_v46  ;;  %v715_v15 = vpop.permute.xlu0 %714  ;;  %v229_v46 = vld [vmem:[%s7641_s4 + $0x58] sm:$0xff] }
 0x5fa   :  { %5410 = vmatpush3.bf16.msra.mxu0 %v715_v15 }
 0x5fb   :  { %v665_v16 = vpack.c.bf16 %v566_v14, %v565_v12  ;;  %5423 = vmatprep.subr.bf16.mxu0 %v6248_v13 }
 0x5fc   :  { %v5990_v18 = vpop.eup %5989 }
 0x5fd   :  { %5406 = vmatmul.mubr.msk.bf16.vlgmr.msra.gmra.mrb[16].mxu1 %vm480_vm9, %v665_v16  ;;  %v567_v22 = vmul.f32 %v5990_v18, %v5974_v49  ;;  %v794_v49 = vpack.c.bf16 %v229_v46, %v228_v45 }
 0x5fe   :  { %5419 = vmatprep.mubr.msk.bf16.mxu1 %vm6249_vm6, %v6248_v13  ;;  %5416 = vmatpush3.bf16.msra.mxu1 %v793_v43 }
 0x5ff   :  { %5417 = vmatprep.subr.bf16.mxu1 %v6248_v13 }
 0x600   :  { %v5992_v21 = vpop.eup %5991 }
 0x601   :  { %v568_v23 = vmul.f32 %v5992_v21, %v5976_v51 }
 0x602   :  { %5418 = vmatpush3.bf16.msra.mxu1 %v794_v49 }
 0x603   :  { %v713_v24 = vpack.c.bf16 %v568_v23, %v567_v22  ;;  %5431 = vmatprep.subr.bf16.mxu1 %v6248_v13 }
 0x605   :  { %5412 = vmatmul.mubr.msk.bf16.vlgmr.msra.gmra.mrb[16].mxu0 %vm480_vm9, %v713_v24 }
 0x606   :  { %5427 = vmatprep.mubr.msk.bf16.mxu0 %vm6249_vm6, %v6248_v13 }
 0x6c0   :  { %v610_v25 = vpop.f32.mrb[12].mxu1 }
 0x6c1   :  { %v5395_v26 = vpop.f32.mrb[13].mxu1 }
 0x6c2   :  { %v613_v28 = vpop.f32.mrb[14].mxu1 }
 0x6c3   :  { %v5396_v29 = vpop.f32.mrb[15].mxu1 }
 0x6c4   :  { %v867_v29 = vld [vmem:[%s7640_s3 + $0x18] sm:$0xff] }
 0x6c8   :  { %v658_v33 = vpop.f32.mrb[12].mxu0 }
 0x6c9   :  { %v5401_v36 = vpop.f32.mrb[13].mxu0 }
 0x6ca   :  { %v661_v37 = vpop.f32.mrb[14].mxu0  ;;  %v868_v36 = vld [vmem:[%s7641_s4 + $0x80] sm:$0xff] }
 0x6cb   :  { %v5867_v41 = vpack.i.bf16 %v661_v37, %v658_v33  ;;  %v5402_v42 = vpop.f32.mrb[15].mxu0  ;;  %v869_v37 = vld [vmem:[%s7641_s4 + $0x88] sm:$0xff] }
 0x6cc   :  { %v926_v40 = vpack.c.bf16 %v869_v37, %v868_v36 }
 0x6cd   :  { %5868 = vrot.lane.b32.xlu1 %v5867_v41, %s6258_s9  ;;  %v871_v41 = vld [vmem:[%s7641_s4 + $0x98] sm:$0xff] }
 0x6ce   :  { %v927_v42 = vpack.c.bf16 %v871_v41, %v870_v38 }
 0x6d0   :  { %v706_v44 = vpop.f32.mrb[16].mxu1 }
 0x6d1   :  { %v5407_v47 = vpop.f32.mrb[17].mxu1 }
 0x6d2   :  { %v709_v50 = vpop.f32.mrb[18].mxu1 }
 0x6d3   :  { %v5872_v51 = vpack.i.bf16 %v709_v50, %v706_v44  ;;  %v5408_v52 = vpop.f32.mrb[19].mxu1 }
 0x6d5   :  { %5873 = vrot.lane.b32.xlu0 %v5872_v51, %s6259_s14 }
 0x6d8   :  { %v754_v53 = vpop.f32.mrb[16].mxu0 }
 0x6d9   :  { %v5413_v54 = vpop.f32.mrb[17].mxu0 }
 0x6da   :  { %v757_v56 = vpop.f32.mrb[18].mxu0 }
 0x6db   :  { %v5877_v57 = vpack.i.bf16 %v757_v56, %v754_v53  ;;  %v5414_v59 = vpop.f32.mrb[19].mxu0  ;;  %v5094_v53 = vld [vmem:[%s7641_s4 + $0x242] ss:$0 sm:$0xff] }
 0x6dd   :  { %5878 = vrot.lane.b32.xlu1 %v5877_v57, %s6260_s15 }
 0x73f   :  { %v5869_v60 = vpop.permute.xlu1 %5868 }
 0x740   :  { %v5871_v63 = vunpack.i.h.bf16 %v5869_v60  ;;  %v5870_v0 = vunpack.i.l.bf16 %v5869_v60  ;;  %v872_v60 = vld [vmem:[%s7641_s4 + $0xa0] sm:$0xff] }
 0x742   :  { %v785_v61 = vsel %vm272_vm8, %v610_v25, %v5870_v0  ;;  %v786_v4 = vsel %vm272_vm8, %v613_v28, %v5871_v63  ;;  %v866_v28 = vld [vmem:[%s7640_s3 + $0x10] sm:$0xff] }
 0x743   :  { %v878_v33 = vpack.c.bf16 %v867_v29, %v866_v28  ;;  %v874_v0 = vld [vmem:[%s7641_s4 + $0xb0] sm:$0xff] }
 0x747   :  { %v5874_v62 = vpop.permute.xlu0 %5873 }
 0x748   :  { %v5876_v1 = vunpack.i.h.bf16 %v5874_v62  ;;  %v5875_v2 = vunpack.i.l.bf16 %v5874_v62  ;;  %v873_v62 = vld [vmem:[%s7641_s4 + $0xa8] sm:$0xff] }
 0x749   :  { %v928_v63 = vpack.c.bf16 %v873_v62, %v872_v60 }
 0x74a   :  { %v788_v7 = vsel %vm480_vm9, %v786_v4, %v5876_v1  ;;  %v787_v8 = vsel %vm480_vm9, %v785_v61, %v5875_v2  ;;  %v875_v1 = vld [vmem:[%s7641_s4 + $0xb8] sm:$0xff] }
 0x74b   :  { %v929_v2 = vpack.c.bf16 %v875_v1, %v874_v0 }
 0x74f   :  { %v5879_v3 = vpop.permute.xlu1 %5878 }
 0x750   :  { %v5881_v5 = vunpack.i.h.bf16 %v5879_v3  ;;  %v5880_v6 = vunpack.i.l.bf16 %v5879_v3 }
 0x752   :  { %v790_v9 = vsel %vm789_vm10, %v787_v8, %v5880_v6  ;;  %v791_v10 = vsel %vm789_vm10, %v788_v7, %v5881_v5 }
 0x753   :  { %v792_v11 = vpack.c.bf16 %v791_v10, %v790_v9 }
 0x755   :  { %5420 = vmatmul.mubr.msk.bf16.vlgmr.msra.gmra.mrb[20].mxu1 %vm153_vm5, %v792_v11 }
 0x756   :  { %5439 = vmatprep.mubr.msk.bf16.mxu1 %vm6249_vm6, %v6248_v13  ;;  %5432 = vmatpush3.bf16.msra.mxu1 %v926_v40 }
 0x757   :  { %5433 = vmatprep.subr.bf16.mxu1 %v6248_v13 }
 0x75a   :  { %5434 = vmatpush3.bf16.msra.mxu1 %v927_v42 }
 0x75b   :  { %5435 = vmatprep.subr.bf16.mxu1 %v6248_v13 }
 0x75e   :  { %5436 = vmatpush3.bf16.msra.mxu1 %v928_v63 }
 0x75f   :  { %5437 = vmatprep.subr.bf16.mxu1 %v6248_v13 }
 0x762   :  { %5438 = vmatpush3.bf16.msra.mxu1 %v929_v2 }
 0x763   :  { %5457 = vmatprep.subr.bf16.mxu1 %v6248_v13 }
 0x828   :  { %v832_v12 = vpop.f32.mrb[20].mxu1 }
 0x829   :  { %v6531_v14 = vadd.f32 %v832_v12, %v6347_v31  ;;  %v5421_v15 = vpop.f32.mrb[21].mxu1  ;;  %v864_v31 = vld [vmem:[%s7640_s3] sm:$0xff] }
 0x82a   :  { %v835_v16 = vpop.f32.mrb[22].mxu1 }
 0x82b   :  { %v6534_v18 = vadd.f32 %v835_v16, %v6353_v34  ;;  %v5422_v21 = vpop.f32.mrb[23].mxu1  ;;  %v842_v22 = vmul.f32 %v6531_v14, %v6531_v14  ;;  %v865_v34 = vld [vmem:[%s7640_s3 + $0x8] sm:$0xff] }
 0x82c   :  { %v877_v26 = vpack.c.bf16 %v865_v34, %v864_v31  ;;  %v1001_v31 = vld [vmem:[%s7639_s2 + $0x30] sm:$0xff]  ;;  %v1002_v34 = vld [vmem:[%s7639_s2 + $0x38] sm:$0xff] }
 0x82d   :  { %v844_v23 = vsel %vm153_vm5, %v842_v22, 0.0  ;;  %v843_v24 = vmul.f32 %v6534_v18, %v6534_v18 }
 0x82e   :  { %845 = vadd.xlane.f32.xlu0 %v844_v23  ;;  %5424 = vmatpush3.bf16.msra.mxu0 %v877_v26  ;;  %v1005_v26 = vpack.c.bf16 %v1002_v34, %v1001_v31 }
 0x82f   :  { %v847_v25 = vsel %vm153_vm5, %v843_v24, 0.0  ;;  %5425 = vmatprep.subr.bf16.mxu0 %v6248_v13 }
 0x830   :  { %848 = vadd.xlane.f32.xlu1 %v847_v25 }
 0x832   :  { %5426 = vmatpush3.bf16.msra.mxu0 %v878_v33 }
 0x833   :  { %5443 = vmatprep.subr.bf16.mxu0 %v6248_v13 }
 0x8bb   :  { %v846_v43 = vpop.xlane.xlu0 %845 }
 0x8bc   :  { %v850_v44 = vmul.f32 0.03125, %v846_v43  ;;  %v5097_v43 = vld [vmem:[%s7641_s4 + $0x241] ss:$0 sm:$0xff] }
 0x8bd   :  { %v849_v45 = vpop.xlane.xlu1 %848 }
 0x8be   :  { %v852_v46 = vadd.f32 1e-06, %v850_v44  ;;  %v851_v47 = vmul.f32 0.03125, %v849_v45 }
 0x8c0   :  { %5993 = vrsqrt.f32 %v852_v46  ;;  %v853_v49 = vadd.f32 1e-06, %v851_v47 }
 0x8c2   :  { %5995 = vrsqrt.f32 %v853_v49 }
 0x8ca   :  { %v5994_v50 = vpop.eup %5993 }
 0x8cb   :  { %v856_v51 = vmul.f32 %v5994_v50, %v6531_v14 }
 0x8cc   :  { %v5996_v52 = vpop.eup %5995 }
 0x8cd   :  { %v857_v54 = vmul.f32 %v5996_v52, %v6534_v18  ;;  %v862_v56 = vmul.f32 %v5094_v53, %v856_v51 }
 0x8cf   :  { %v863_v57 = vmul.f32 %v5094_v53, %v857_v54 }
 0x8d1   :  { %v876_v59 = vpack.c.bf16 %v863_v57, %v862_v56 }
 0x8d3   :  { %5428 = vmatmul.mubr.msk.bf16.vlgmr.msra.gmra.mrb[20].mxu0 %vm153_vm5, %v876_v59 }
 0x8d4   :  { %5447 = vmatprep.mubr.msk.bf16.mxu0 %vm6249_vm6, %v6248_v13 }
 0x9a6   :  { %v916_v3 = vpop.f32.mrb[20].mxu0 }
 0x9a7   :  { %v5429_v61 = vpop.f32.mrb[21].mxu0  ;;  %v923_v5 = vmax.f32 %v916_v3, 0.0 }
 0x9a8   :  { %v919_v4 = vpop.f32.mrb[22].mxu0 }
 0x9a9   :  { %v924_v6 = vmax.f32 %v919_v4, 0.0  ;;  %v5430_v7 = vpop.f32.mrb[23].mxu0 }
 0x9ab   :  { %v925_v8 = vpack.c.bf16 %v924_v6, %v923_v5 }
 0x9ad   :  { %5440 = vmatmul.mubr.msk.bf16.vlgmr.msra.gmra.mrb[24].mxu1 %vm70_vm4, %v925_v8 }
 0x9ae   :  { %5459 = vmatprep.mubr.msk.bf16.mxu1 %vm6249_vm6, %v6248_v13 }
 0xa80   :  { %v967_v9 = vpop.f32.mrb[24].mxu1 }
 0xa81   :  { %v6596_v10 = vadd.f32 %v967_v9, %v6531_v14  ;;  %v5441_v11 = vpop.f32.mrb[25].mxu1  ;;  %v999_v14 = vld [vmem:[%s7639_s2 + $0x20] sm:$0xff] }
 0xa82   :  { %v970_v12 = vpop.f32.mrb[26].mxu1 }
 0xa83   :  { %v6599_v15 = vadd.f32 %v970_v12, %v6534_v18  ;;  %v5442_v16 = vpop.f32.mrb[27].mxu1  ;;  %v977_v21 = vmul.f32 %v6596_v10, %v6596_v10  ;;  %v1000_v18 = vld [vmem:[%s7639_s2 + $0x28] sm:$0xff] }
 0xa84   :  { %v1004_v25 = vpack.c.bf16 %v1000_v18, %v999_v14 }
 0xa85   :  { %v979_v22 = vsel %vm153_vm5, %v977_v21, 0.0  ;;  %v978_v23 = vmul.f32 %v6599_v15, %v6599_v15 }
 0xa86   :  { %980 = vadd.xlane.f32.xlu0 %v979_v22  ;;  %5444 = vmatpush3.bf16.msra.mxu0 %v1004_v25 }
 0xa87   :  { %v982_v24 = vsel %vm153_vm5, %v978_v23, 0.0  ;;  %5445 = vmatprep.subr.bf16.mxu0 %v6248_v13 }
 0xa8a   :  { %983 = vadd.xlane.f32.xlu0 %v982_v24  ;;  %5446 = vmatpush3.bf16.msra.mxu0 %v1005_v26 }
 0xa8b   :  { %5451 = vmatprep.subr.bf16.mxu0 %v6248_v13 }
 0xb13   :  { %v981_v28 = vpop.xlane.xlu0 %980 }
 0xb14   :  { %v985_v29 = vmul.f32 0.03125, %v981_v28 }
 0xb16   :  { %v987_v33 = vadd.f32 1e-06, %v985_v29 }
 0xb17   :  { %v984_v36 = vpop.xlane.xlu0 %983 }
 0xb18   :  { %5997 = vrsqrt.f32 %v987_v33  ;;  %v986_v37 = vmul.f32 0.03125, %v984_v36 }
 0xb1a   :  { %v988_v38 = vadd.f32 1e-06, %v986_v37 }
 0xb1c   :  { %5999 = vrsqrt.f32 %v988_v38 }
 0xb22   :  { %v5998_v40 = vpop.eup %5997 }
 0xb23   :  { %v991_v41 = vmul.f32 %v5998_v40, %v6596_v10 }
 0xb25   :  { %v997_v45 = vmul.f32 %v5097_v43, %v991_v41 }
 0xb26   :  { %v6000_v42 = vpop.eup %5999 }
 0xb27   :  { %v992_v44 = vmul.f32 %v6000_v42, %v6599_v15 }
 0xb29   :  { %v998_v46 = vmul.f32 %v5097_v43, %v992_v44 }
 0xb2b   :  { %v1003_v47 = vpack.c.bf16 %v998_v46, %v997_v45 }
 0xb2d   :  { %5448 = vmatmul.mubr.msk.bf16.vlgmr.msra.gmra.mrb[24].mxu0 %vm153_vm5, %v1003_v47 }
 0xb2e   :  { %5453 = vmatprep.mubr.msk.bf16.mxu0 %vm6249_vm6, %v6248_v13 }
 0xc00   :  { %v1043_v49 = vpop.f32.mrb[24].mxu0 }
 0xc01   :  { %1056 = vrot.lane.b32.xlu1 %v1043_v49, %s6250_s27  ;;  %v5449_v50 = vpop.f32.mrb[25].mxu0 }
 0xc02   :  { %v1046_v51 = vpop.f32.mrb[26].mxu0 }
 0xc03   :  { %v6630_v52 = vpack.c.bf16 %v1046_v51, %v1043_v49  ;;  %1058 = vrot.lane.b32.xlu0 %v1046_v51, %s6250_s27  ;;  %v5450_v53 = vpop.f32.mrb[27].mxu0 }
 0xc05   :  { %1145 = vrot.lane.b32.xlu1 %v6630_v52, %s6251_s28 }
 0xc07   :  { %1245 = vrot.lane.b32.xlu0 %v6630_v52, %s6253_s30 }
 0xc09   :  { %1195 = vrot.lane.b32.xlu1 %v6630_v52, %s6252_s29 }
 0xc73   :  { %v1057_v54 = vpop.permute.xlu1 %1056 }
 0xc74   :  { %1062 = vxpose.xlu1.b32.start [1/2] (short) (narrow) %v1057_v54, 32 }
 0xc75   :  { %v1059_v56 = vpop.permute.xlu0 %1058 }
 0xc77   :  { %v1146_v57 = vpop.permute.xlu1 %1145 }
 0xc78   :  { %1063 = vxpose.xlu1.b32.end [2/2] (short) (narrow) %v1059_v56, 32 }
 0xc79   :  { %v1246_v8 = vpop.permute.xlu0 %1245 }
 0xc7b   :  { %v1196_v59 = vpop.permute.xlu1 %1195 }
 0xcf4   :  { %v1078_v60 = vpop.trf.xlu1 }
 0xcf5   :  { %v1095_v62 = vpack.c.bf16 %v1078_v60, %v1078_v60 }
 0xcf7   :  { %v1100_v63 = vsel %vm276_vm7, %v1095_v62, 0 }
 0xcf8   :  { %5452 = vmatpush3.bf16.msra.mxu0 %v1100_v63  ;;  %v1079_v0 = vpop.trf.xlu1 }
 0xcf9   :  { %v1143_v1 = vpack.c.bf16 %v1079_v0, %v1079_v0  ;;  %5463 = vmatprep.subr.bf16.mxu0 %v6248_v13 }
 0xcfb   :  { %v1151_v2 = vsel %vm276_vm7, %v1143_v1, 0  ;;  %5454 = vmatmul.mubr.msk.bf16.vlgmr.msra.gmra.mrb[28].mxu0 %vm272_vm8, %v6630_v52 }
 0xcfc   :  { %5458 = vmatpush3.bf16.msra.mxu1 %v1151_v2  ;;  %v1080_v3 = vpop.trf.xlu1  ;;  %5465 = vmatprep.mubr.msk.bf16.mxu0 %vm6249_vm6, %v6248_v13 }
 0xcfd   :  { %v1194_v61 = vpack.c.bf16 %v1080_v3, %v1080_v3  ;;  %5469 = vmatprep.subr.bf16.mxu1 %v6248_v13 }
 0xcff   :  { %v1201_v4 = vsel %vm276_vm7, %v1194_v61, 0  ;;  %5460 = vmatmul.mubr.msk.bf16.vlgmr.msra.gmra.mrb[28].mxu1 %vm272_vm8, %v1146_v57 }
 0xd00   :  { %5464 = vmatpush3.bf16.msra.mxu0 %v1201_v4  ;;  %v1081_v5 = vpop.trf.xlu1  ;;  %5471 = vmatprep.mubr.msk.bf16.mxu1 %vm6249_vm6, %v6248_v13 }
 0xd01   :  { %v1244_v6 = vpack.c.bf16 %v1081_v5, %v1081_v5  ;;  %5475 = vmatprep.subr.bf16.mxu0 %v6248_v13 }
 0xd03   :  { %5466 = vmatmul.mubr.msk.bf16.vlgmr.msra.gmra.mrb[32].mxu0 %vm272_vm8, %v1196_v59  ;;  %v1251_v7 = vsel %vm276_vm7, %v1244_v6, 0 }
 0xd04   :  { %5470 = vmatpush3.bf16.msra.mxu1 %v1251_v7  ;;  %5477 = vmatprep.mubr.msk.bf16.mxu0 %vm6249_vm6, %v6248_v13 }
 0xd05   :  { %5481 = vmatprep.subr.bf16.mxu1 %v6248_v13 }
 0xd07   :  { %5472 = vmatmul.mubr.msk.bf16.vlgmr.msra.gmra.mrb[32].mxu1 %vm272_vm8, %v1246_v8 }
 0xd08   :  { %5483 = vmatprep.mubr.msk.bf16.mxu1 %vm6249_vm6, %v6248_v13 }
 0xdce   :  { %v1136_v9 = vpop.f32.mrb[28].mxu0 }
 0xdcf   :  { %v1294_v11 = vadd.f32 %v1136_v9, %v6419_v17  ;;  %v5455_v12 = vpop.f32.mrb[29].mxu0 }
 0xdd0   :  { %v1139_v16 = vpop.f32.mrb[30].mxu0 }
 0xdd1   :  { %v1295_v21 = vadd.f32 %v1139_v16, %v6424_v20  ;;  %v5456_v22 = vpop.f32.mrb[31].mxu0  ;;  %v1302_v23 = vsel %vm480_vm9, %v1294_v11, -inf }
 0xdd2   :  { %1303 = vmax.xlane.f32.xlu0 %v1302_v23  ;;  %v1187_v24 = vpop.f32.mrb[28].mxu1 }
 0xdd3   :  { %v5461_v14 = vpop.f32.mrb[29].mxu1  ;;  %v1296_v25 = vadd.f32 %v1187_v24, %v6432_v27  ;;  %v1305_v34 = vsel %vm480_vm9, %v1295_v21, -inf }
 0xdd4   :  { %v1190_v18 = vpop.f32.mrb[30].mxu1 }
 0xdd5   :  { %v5462_v31 = vpop.f32.mrb[31].mxu1  ;;  %v1297_v20 = vadd.f32 %v1190_v18, %v6444_v39  ;;  %v1308_v37 = vsel %vm480_vm9, %v1296_v25, -inf }
 0xdd6   :  { %1306 = vmax.xlane.f32.xlu0 %v1305_v34  ;;  %v1237_v26 = vpop.f32.mrb[32].mxu0 }
 0xdd7   :  { %v1298_v17 = vadd.f32 %v1237_v26, %v6437_v35  ;;  %v5467_v28 = vpop.f32.mrb[33].mxu0  ;;  %v1311_v43 = vsel %vm480_vm9, %v1297_v20, -inf }
 0xdd8   :  { %v1240_v29 = vpop.f32.mrb[34].mxu0 }
 0xdd9   :  { %v5468_v33 = vpop.f32.mrb[35].mxu0  ;;  %v1314_v36 = vsel %vm480_vm9, %v1298_v17, -inf  ;;  %v1299_v41 = vadd.f32 %v1240_v29, %v6453_v48 }
 0xdda   :  { %1315 = vmax.xlane.f32.xlu1 %v1314_v36  ;;  %1309 = vmax.xlane.f32.xlu0 %v1308_v37  ;;  %v1287_v38 = vpop.f32.mrb[32].mxu1 }
 0xddb   :  { %v5473_v27 = vpop.f32.mrb[33].mxu1  ;;  %v1300_v35 = vadd.f32 %v1287_v38, %v6460_v55  ;;  %v1317_v39 = vsel %vm480_vm9, %v1299_v41, -inf }
 0xddc   :  { %v1290_v40 = vpop.f32.mrb[34].mxu1 }
 0xddd   :  { %v5474_v42 = vpop.f32.mrb[35].mxu1  ;;  %v1301_v44 = vadd.f32 %v1290_v40, %v6467_v58  ;;  %v1320_v45 = vsel %vm480_vm9, %v1300_v35, -inf }
 0xdde   :  { %1312 = vmax.xlane.f32.xlu0 %v1311_v43 }
 0xddf   :  { %v1323_v46 = vsel %vm480_vm9, %v1301_v44, -inf }
 0xde2   :  { %1318 = vmax.xlane.f32.xlu0 %v1317_v39 }
 0xde6   :  { %1321 = vmax.xlane.f32.xlu0 %v1320_v45 }
 0xdea   :  { %1324 = vmax.xlane.f32.xlu0 %v1323_v46 }
 0xdeb   :  { %1439 = vrot.lane.b32.xlu1 %v6630_v52, %s6254_s22 }
 0xdef   :  { %1487 = vrot.lane.b32.xlu1 %v6630_v52, %s6255_s23 }
 0xe00   :  { %1391 = vrot.lane.b32.xlu0 %v6630_v52, %s6256_s24 }
 0xe5f   :  { %v1304_v48 = vpop.xlane.xlu0 %1303 }
 0xe60   :  { %v1326_v55 = vsub.f32 %v1294_v11, %v1304_v48 }
 0xe62   :  { %v1334_v47 = vmul.f32 1.442695, %v1326_v55 }
 0xe63   :  { %v1307_v49 = vpop.xlane.xlu0 %1306 }
 0xe64   :  { %6001 = vpow2.f32 %v1334_v47  ;;  %v1327_v58 = vsub.f32 %v1295_v21, %v1307_v49 }
 0xe66   :  { %v1336_v50 = vmul.f32 1.442695, %v1327_v58 }
 0xe67   :  { %v1316_v51 = vpop.xlane.xlu1 %1315  ;;  %v1310_v53 = vpop.xlane.xlu0 %1309 }
 0xe68   :  { %6003 = vpow2.f32 %v1336_v50  ;;  %v1328_v54 = vsub.f32 %v1296_v25, %v1310_v53  ;;  %v1330_v57 = vsub.f32 %v1298_v17, %v1316_v51 }
 0xe6a   :  { %v1338_v56 = vmul.f32 1.442695, %v1328_v54  ;;  %v1342_v1 = vmul.f32 1.442695, %v1330_v57 }
 0xe6b   :  { %v1440_v59 = vpop.permute.xlu1 %1439  ;;  %v1313_v60 = vpop.xlane.xlu0 %1312 }
 0xe6c   :  { %v1329_v62 = vsub.f32 %v1297_v20, %v1313_v60  ;;  %5482 = vmatpush3.bf16.msra.mxu1 %v1440_v59  ;;  %6005 = vpow2.f32 %v1338_v56 }
 0xe6d   :  { %5493 = vmatprep.subr.bf16.mxu1 %v6248_v13 }
 0xe6e   :  { %v6002_v63 = vpop.eup %6001  ;;  %v1340_v0 = vmul.f32 1.442695, %v1329_v62 }
 0xe6f   :  { %v1319_v2 = vpop.xlane.xlu0 %1318  ;;  %v1350_v3 = vsel %vm480_vm9, %v6002_v63, 0.0 }
 0xe70   :  { %6007 = vpow2.f32 %v1340_v0  ;;  %v1331_v61 = vsub.f32 %v1299_v41, %v1319_v2  ;;  %1351 = vadd.xlane.f32.xlu0 %v1350_v3 }
 0xe71   :  { %6009 = vpow2.f32 %v1342_v1 }
 0xe72   :  { %v6004_v4 = vpop.eup %6003  ;;  %v1344_v5 = vmul.f32 1.442695, %v1331_v61 }
 0xe73   :  { %v1322_v6 = vpop.xlane.xlu0 %1321  ;;  %v1353_v7 = vsel %vm480_vm9, %v6004_v4, 0.0 }
 0xe74   :  { %v1332_v8 = vsub.f32 %v1300_v35, %v1322_v6  ;;  %1354 = vadd.xlane.f32.xlu0 %v1353_v7  ;;  %6011 = vpow2.f32 %v1344_v5  ;;  %v1488_v35 = vpop.permute.xlu1 %1487  ;;  %v1050_v5 = vld [vmem:[%s7641_s4 + $0x60] sm:$0xff]  ;;  %v1051_v6 = vld [vmem:[%s7641_s4 + $0x68] sm:$0xff] }
 0xe76   :  { %v6006_v9 = vpop.eup %6005  ;;  %v1346_v11 = vmul.f32 1.442695, %v1332_v8 }
 0xe77   :  { %v1325_v12 = vpop.xlane.xlu0 %1324  ;;  %v1356_v21 = vsel %vm480_vm9, %v6006_v9, 0.0 }
 0xe78   :  { %v1333_v16 = vsub.f32 %v1301_v44, %v1325_v12  ;;  %1357 = vadd.xlane.f32.xlu0 %v1356_v21  ;;  %6013 = vpow2.f32 %v1346_v11  ;;  %v1052_v11 = vld [vmem:[%s7641_s4 + $0x70] sm:$0xff]  ;;  %v1053_v12 = vld [vmem:[%s7641_s4 + $0x78] sm:$0xff] }
 0xe79   :  { %v1614_v21 = vpack.c.bf16 %v1053_v12, %v1052_v11 }
 0xe7a   :  { %v6008_v22 = vpop.eup %6007  ;;  %v1348_v23 = vmul.f32 1.442695, %v1333_v16 }
 0xe7b   :  { %v1392_v24 = vpop.permute.xlu0 %1391  ;;  %v1359_v14 = vsel %vm480_vm9, %v6008_v22, 0.0  ;;  %v6010_v18 = vpop.eup %6009 }
 0xe7c   :  { %5476 = vmatpush3.bf16.msra.mxu0 %v1392_v24  ;;  %1360 = vadd.xlane.f32.xlu0 %v1359_v14  ;;  %6015 = vpow2.f32 %v1348_v23  ;;  %v1362_v25 = vsel %vm480_vm9, %v6010_v18, 0.0 }
 0xe7d   :  { %5487 = vmatprep.subr.bf16.mxu0 %v6248_v13 }
 0xe7e   :  { %v6012_v31 = vpop.eup %6011 }
 0xe7f   :  { %v1365_v34 = vsel %vm480_vm9, %v6012_v31, 0.0 }
 0xe80   :  { %1363 = vadd.xlane.f32.xlu0 %v1362_v25 }
 0xe82   :  { %v6014_v26 = vpop.eup %6013 }
 0xe83   :  { %v1368_v17 = vsel %vm480_vm9, %v6014_v26, 0.0 }
 0xe84   :  { %1366 = vadd.xlane.f32.xlu0 %v1365_v34 }
 0xe86   :  { %v6016_v28 = vpop.eup %6015 }
 0xe87   :  { %v1371_v29 = vsel %vm480_vm9, %v6016_v28, 0.0 }
 0xe88   :  { %1369 = vadd.xlane.f32.xlu0 %v1368_v17 }
 0xe8c   :  { %1372 = vadd.xlane.f32.xlu0 %v1371_v29 }
 0xea2   :  { %1535 = vrot.lane.b32.xlu0 %v6630_v52, %s6257_s25 }
 0xefd   :  { %v1352_v20 = vpop.xlane.xlu0 %1351 }
 0xefe   :  { %6017 = vrcp.f32 %v1352_v20 }
 0xf01   :  { %v1355_v33 = vpop.xlane.xlu0 %1354 }
 0xf02   :  { %6019 = vrcp.f32 %v1355_v33 }
 0xf05   :  { %v1358_v36 = vpop.xlane.xlu0 %1357 }
 0xf06   :  { %6021 = vrcp.f32 %v1358_v36 }
 0xf08   :  { %v6018_v37 = vpop.eup %6017 }
 0xf09   :  { %v1361_v38 = vpop.xlane.xlu0 %1360  ;;  %v1382_v40 = vmul.f32 %v6018_v37, %v6002_v63 }
 0xf0a   :  { %6023 = vrcp.f32 %v1361_v38 }
 0xf0c   :  { %v6020_v27 = vpop.eup %6019 }
 0xf0d   :  { %v1383_v41 = vmul.f32 %v6020_v27, %v6004_v4  ;;  %v1364_v42 = vpop.xlane.xlu0 %1363 }
 0xf0e   :  { %6025 = vrcp.f32 %v1364_v42 }
 0xf0f   :  { %v1390_v43 = vpack.c.bf16 %v1383_v41, %v1382_v40 }
 0xf10   :  { %v6022_v39 = vpop.eup %6021 }
 0xf11   :  { %5478 = vmatmul.mubr.msk.bf16.vlgmr.msra.gmra.mrb[36].mxu0 %vm480_vm9, %v1390_v43  ;;  %v1367_v52 = vpop.xlane.xlu0 %1366  ;;  %v1384_v45 = vmul.f32 %v6022_v39, %v6006_v9  ;;  %v1613_v9 = vpack.c.bf16 %v1051_v6, %v1050_v5 }
 0xf12   :  { %5488 = vmatpush3.bf16.msra.mxu0 %v1488_v35  ;;  %5489 = vmatprep.mubr.msk.bf16.mxu0 %vm6249_vm6, %v6248_v13  ;;  %6027 = vrcp.f32 %v1367_v52 }
 0xf13   :  { %5499 = vmatprep.subr.bf16.mxu0 %v6248_v13 }
 0xf14   :  { %v6024_v44 = vpop.eup %6023 }
 0xf15   :  { %v1385_v46 = vmul.f32 %v6024_v44, %v6008_v22  ;;  %v1370_v48 = vpop.xlane.xlu0 %1369 }
 0xf16   :  { %6029 = vrcp.f32 %v1370_v48 }
 0xf17   :  { %v1438_v55 = vpack.c.bf16 %v1385_v46, %v1384_v45 }
 0xf18   :  { %v6026_v49 = vpop.eup %6025 }
 0xf19   :  { %5484 = vmatmul.mubr.msk.bf16.vlgmr.msra.gmra.mrb[36].mxu1 %vm480_vm9, %v1438_v55  ;;  %v1373_v47 = vpop.xlane.xlu0 %1372  ;;  %v1386_v50 = vmul.f32 %v6026_v49, %v6010_v18 }
 0xf1a   :  { %6031 = vrcp.f32 %v1373_v47  ;;  %5495 = vmatprep.mubr.msk.bf16.mxu1 %vm6249_vm6, %v6248_v13 }
 0xf1c   :  { %v6028_v58 = vpop.eup %6027 }
 0xf1d   :  { %v1387_v51 = vmul.f32 %v6028_v58, %v6012_v31  ;;  %v1536_v53 = vpop.permute.xlu0 %1535 }
 0xf1e   :  { %5494 = vmatpush3.bf16.msra.mxu1 %v1536_v53 }
 0xf1f   :  { %v1486_v54 = vpack.c.bf16 %v1387_v51, %v1386_v50  ;;  %5507 = vmatprep.subr.bf16.mxu1 %v6248_v13  ;;  %v1820_v51 = vmul.f32 %v6345_v30, %v6345_v30 }
 0xf20   :  { %v6030_v56 = vpop.eup %6029 }
 0xf21   :  { %5490 = vmatmul.mubr.msk.bf16.vlgmr.msra.gmra.mrb[40].mxu0 %vm480_vm9, %v1486_v54  ;;  %v1388_v59 = vmul.f32 %v6030_v56, %v6014_v26  ;;  %v1822_v53 = vsel %vm153_vm5, %v1820_v51, 0.0  ;;  %v1684_v56 = vld [vmem:[%s7640_s3 + $0x20] sm:$0xff] }
 0xf22   :  { %5503 = vmatprep.mubr.msk.bf16.mxu0 %vm6249_vm6, %v6248_v13  ;;  %5500 = vmatpush3.bf16.msra.mxu0 %v1613_v9 }
 0xf23   :  { %5501 = vmatprep.subr.bf16.mxu0 %v6248_v13 }
 0xf24   :  { %v6032_v57 = vpop.eup %6031 }
 0xf25   :  { %v1389_v60 = vmul.f32 %v6032_v57, %v6016_v28  ;;  %v1685_v57 = vld [vmem:[%s7640_s3 + $0x28] sm:$0xff] }
 0xf26   :  { %5502 = vmatpush3.bf16.msra.mxu0 %v1614_v21 }
 0xf27   :  { %v1534_v62 = vpack.c.bf16 %v1389_v60, %v1388_v59  ;;  %5515 = vmatprep.subr.bf16.mxu0 %v6248_v13  ;;  %v1697_v59 = vpack.c.bf16 %v1685_v57, %v1684_v56  ;;  %v1686_v60 = vld [vmem:[%s7640_s3 + $0x30] sm:$0xff] }
 0xf29   :  { %5496 = vmatmul.mubr.msk.bf16.vlgmr.msra.gmra.mrb[40].mxu1 %vm480_vm9, %v1534_v62  ;;  %v1687_v62 = vld [vmem:[%s7640_s3 + $0x38] sm:$0xff] }
 0xf2a   :  { %5511 = vmatprep.mubr.msk.bf16.mxu1 %vm6249_vm6, %v6248_v13  ;;  %5508 = vmatpush3.bf16.msra.mxu1 %v1697_v59 }
 0xf2b   :  { %5509 = vmatprep.subr.bf16.mxu1 %v6248_v13 }
 0xfe4   :  { %v1431_v63 = vpop.f32.mrb[36].mxu0 }
 0xfe5   :  { %v5479_v0 = vpop.f32.mrb[37].mxu0 }
 0xfe6   :  { %v1434_v1 = vpop.f32.mrb[38].mxu0  ;;  %v1688_v0 = vld [vmem:[%s7641_s4 + $0xc0] sm:$0xff] }
 0xfe7   :  { %v5480_v2 = vpop.f32.mrb[39].mxu0 }
 0xfe8   :  { %v1690_v2 = vld [vmem:[%s7641_s4 + $0xd0] sm:$0xff] }
 0xfec   :  { %v1479_v3 = vpop.f32.mrb[36].mxu1 }
 0xfed   :  { %v5485_v61 = vpop.f32.mrb[37].mxu1 }
 0xfee   :  { %v1482_v4 = vpop.f32.mrb[38].mxu1  ;;  %v1691_v61 = vld [vmem:[%s7641_s4 + $0xd8] sm:$0xff] }
 0xfef   :  { %v5882_v7 = vpack.i.bf16 %v1482_v4, %v1479_v3  ;;  %v5486_v8 = vpop.f32.mrb[39].mxu1  ;;  %v1747_v4 = vpack.c.bf16 %v1691_v61, %v1690_v2 }
 0xff1   :  { %5883 = vrot.lane.b32.xlu1 %v5882_v7, %s6258_s9 }
 0xff4   :  { %v1527_v16 = vpop.f32.mrb[40].mxu0 }
 0xff5   :  { %v5491_v22 = vpop.f32.mrb[41].mxu0 }
 0xff6   :  { %v1530_v23 = vpop.f32.mrb[42].mxu0 }
 0xff7   :  { %v5887_v24 = vpack.i.bf16 %v1530_v23, %v1527_v16  ;;  %v5492_v14 = vpop.f32.mrb[43].mxu0 }
 0xff9   :  { %5888 = vrot.lane.b32.xlu0 %v5887_v24, %s6259_s14 }
 0xffc   :  { %v1575_v18 = vpop.f32.mrb[40].mxu1 }
 0xffd   :  { %v5497_v25 = vpop.f32.mrb[41].mxu1 }
 0xffe   :  { %v1578_v31 = vpop.f32.mrb[42].mxu1 }
 0xfff   :  { %v5892_v34 = vpack.i.bf16 %v1578_v31, %v1575_v18  ;;  %v5498_v26 = vpop.f32.mrb[43].mxu1  ;;  %v5108_v31 = vld [vmem:[%s7641_s4 + $0x243] ss:$0 sm:$0xff] }
0x1000   :  { %v1842_v26 = vld [vmem:[%s7639_s2 + $0x40] sm:$0xff] }
0x1001   :  { %5893 = vrot.lane.b32.xlu1 %v5892_v34, %s6260_s15 }
0x1063   :  { %v5884_v17 = vpop.permute.xlu1 %5883 }
0x1064   :  { %v5886_v29 = vunpack.i.h.bf16 %v5884_v17  ;;  %v5885_v20 = vunpack.i.l.bf16 %v5884_v17  ;;  %v1843_v17 = vld [vmem:[%s7639_s2 + $0x48] sm:$0xff] }
0x1066   :  { %v1607_v38 = vsel %vm272_vm8, %v1434_v1, %v5886_v29  ;;  %v1606_v27 = vsel %vm272_vm8, %v1431_v63, %v5885_v20  ;;  %v1698_v63 = vpack.c.bf16 %v1687_v62, %v1686_v60  ;;  %v1689_v1 = vld [vmem:[%s7641_s4 + $0xc8] sm:$0xff] }
0x1067   :  { %v1746_v3 = vpack.c.bf16 %v1689_v1, %v1688_v0 }
0x1068   :  { %5510 = vmatpush3.bf16.msra.mxu1 %v1698_v63 }
0x1069   :  { %5527 = vmatprep.subr.bf16.mxu1 %v6248_v13 }
0x106b   :  { %v5889_v28 = vpop.permute.xlu0 %5888 }
0x106c   :  { %v5891_v33 = vunpack.i.h.bf16 %v5889_v28  ;;  %v5890_v36 = vunpack.i.l.bf16 %v5889_v28 }
0x106e   :  { %v1608_v42 = vsel %vm480_vm9, %v1606_v27, %v5890_v36  ;;  %v1609_v43 = vsel %vm480_vm9, %v1607_v38, %v5891_v33  ;;  %v1847_v33 = vpack.c.bf16 %v1843_v17, %v1842_v26  ;;  %v1844_v38 = vld [vmem:[%s7639_s2 + $0x50] sm:$0xff]  ;;  %v1845_v27 = vld [vmem:[%s7639_s2 + $0x58] sm:$0xff]  ;;  %v135_v26 = vld [vmem:[%s7638_s1 + $0x48] sm:$0xff] }
0x1073   :  { %v5894_v37 = vpop.permute.xlu1 %5893 }
0x1074   :  { %v5896_v40 = vunpack.i.h.bf16 %v5894_v37  ;;  %v5895_v41 = vunpack.i.l.bf16 %v5894_v37 }
0x1076   :  { %v1611_v35 = vsel %vm789_vm10, %v1609_v43, %v5896_v40  ;;  %v1610_v52 = vsel %vm789_vm10, %v1608_v42, %v5895_v41  ;;  %v5112_v41 = vld [vmem:[%s7641_s4 + $0x245] ss:$0 sm:$0xff]  ;;  %v1848_v43 = vpack.c.bf16 %v1845_v27, %v1844_v38 }
0x1077   :  { %v1612_v39 = vpack.c.bf16 %v1611_v35, %v1610_v52 }
0x1079   :  { %5504 = vmatmul.mubr.msk.bf16.vlgmr.msra.gmra.mrb[44].mxu0 %vm153_vm5, %v1612_v39 }
0x107a   :  { %5523 = vmatprep.mubr.msk.bf16.mxu0 %vm6249_vm6, %v6248_v13  ;;  %5516 = vmatpush3.bf16.msra.mxu0 %v1746_v3 }
0x107b   :  { %5517 = vmatprep.subr.bf16.mxu0 %v6248_v13 }
0x107e   :  { %5518 = vmatpush3.bf16.msra.mxu0 %v1747_v4 }
0x107f   :  { %5519 = vmatprep.subr.bf16.mxu0 %v6248_v13 }
0x114c   :  { %v1652_v44 = vpop.f32.mrb[44].mxu0 }
0x114d   :  { %v6735_v45 = vadd.f32 %v1652_v44, %v6596_v10  ;;  %v5505_v46 = vpop.f32.mrb[45].mxu0  ;;  %v1692_v44 = vld [vmem:[%s7641_s4 + $0xe0] sm:$0xff] }
0x114e   :  { %v1655_v48 = vpop.f32.mrb[46].mxu0  ;;  %v1693_v46 = vld [vmem:[%s7641_s4 + $0xe8] sm:$0xff] }
0x114f   :  { %v6738_v55 = vadd.f32 %v1655_v48, %v6599_v15  ;;  %v5506_v47 = vpop.f32.mrb[47].mxu0  ;;  %v1662_v49 = vmul.f32 %v6735_v45, %v6735_v45  ;;  %v1821_v15 = vmul.f32 %v6349_v32, %v6349_v32  ;;  %v1748_v48 = vpack.c.bf16 %v1693_v46, %v1692_v44 }
0x1150   :  { %v1694_v47 = vld [vmem:[%s7641_s4 + $0xf0] sm:$0xff] }
0x1151   :  { %v1664_v58 = vsel %vm153_vm5, %v1662_v49, 0.0  ;;  %v1663_v50 = vmul.f32 %v6738_v55, %v6738_v55  ;;  %v1825_v54 = vsel %vm153_vm5, %v1821_v15, 0.0  ;;  %5520 = vmatpush3.bf16.msra.mxu0 %v1748_v48  ;;  %v1695_v49 = vld [vmem:[%s7641_s4 + $0xf8] sm:$0xff] }
0x1152   :  { %1665 = vadd.xlane.f32.xlu0 %v1664_v58  ;;  %5521 = vmatprep.subr.bf16.mxu0 %v6248_v13  ;;  %v1749_v58 = vpack.c.bf16 %v1695_v49, %v1694_v47 }
0x1153   :  { %v1667_v10 = vsel %vm153_vm5, %v1663_v50, 0.0 }
0x1154   :  { %1668 = vadd.xlane.f32.xlu1 %v1667_v10 }
0x1155   :  { %5522 = vmatpush3.bf16.msra.mxu0 %v1749_v58 }
0x1156   :  { %1823 = vadd.xlane.f32.xlu0 %v1822_v53  ;;  %5541 = vmatprep.subr.bf16.mxu0 %v6248_v13 }
0x115a   :  { %1826 = vadd.xlane.f32.xlu0 %v1825_v54 }
0x11df   :  { %v1666_v5 = vpop.xlane.xlu0 %1665 }
0x11e0   :  { %v1670_v6 = vmul.f32 0.03125, %v1666_v5 }
0x11e1   :  { %v1669_v7 = vpop.xlane.xlu1 %1668 }
0x11e2   :  { %v1672_v8 = vadd.f32 1e-06, %v1670_v6  ;;  %v1671_v9 = vmul.f32 0.03125, %v1669_v7 }
0x11e3   :  { %v1824_v11 = vpop.xlane.xlu0 %1823 }
0x11e4   :  { %6033 = vrsqrt.f32 %v1672_v8  ;;  %v1673_v12 = vadd.f32 1e-06, %v1671_v9  ;;  %v1828_v16 = vmul.f32 0.03125, %v1824_v11 }
0x11e6   :  { %6035 = vrsqrt.f32 %v1673_v12  ;;  %v1830_v21 = vadd.f32 1e-06, %v1828_v16 }
0x11e7   :  { %v1827_v22 = vpop.xlane.xlu0 %1826 }
0x11e8   :  { %6037 = vrsqrt.f32 %v1830_v21  ;;  %v1829_v23 = vmul.f32 0.03125, %v1827_v22 }
0x11ea   :  { %v1831_v24 = vadd.f32 1e-06, %v1829_v23 }
0x11ec   :  { %6039 = vrsqrt.f32 %v1831_v24 }
0x11ee   :  { %v6034_v14 = vpop.eup %6033 }
0x11ef   :  { %v1676_v18 = vmul.f32 %v6034_v14, %v6735_v45 }
0x11f0   :  { %v6036_v25 = vpop.eup %6035 }
0x11f1   :  { %v1677_v34 = vmul.f32 %v6036_v25, %v6738_v55  ;;  %v1682_v29 = vmul.f32 %v5108_v31, %v1676_v18 }
0x11f2   :  { %v6038_v28 = vpop.eup %6037 }
0x11f3   :  { %v1683_v20 = vmul.f32 %v5108_v31, %v1677_v34  ;;  %v1834_v36 = vmul.f32 %v6038_v28, %v6345_v30  ;;  %v134_v31 = vld [vmem:[%s7638_s1 + $0x40] sm:$0xff] }
0x11f5   :  { %v1696_v37 = vpack.c.bf16 %v1683_v20, %v1682_v29  ;;  %v1840_v35 = vmul.f32 %v5112_v41, %v1834_v36 }
0x11f6   :  { %v6040_v40 = vpop.eup %6039 }
0x11f7   :  { %v1835_v42 = vmul.f32 %v6040_v40, %v6349_v32  ;;  %5512 = vmatmul.mubr.msk.bf16.vlgmr.msra.gmra.mrb[44].mxu1 %vm153_vm5, %v1696_v37  ;;  %v136_v37 = vld [vmem:[%s7638_s1 + $0x50] sm:$0xff] }
0x11f8   :  { %5528 = vmatpush3.bf16.msra.mxu1 %v1847_v33  ;;  %5531 = vmatprep.mubr.msk.bf16.mxu1 %vm6249_vm6, %v6248_v13 }
0x11f9   :  { %5529 = vmatprep.subr.bf16.mxu1 %v6248_v13  ;;  %v1841_v52 = vmul.f32 %v5112_v41, %v1835_v42  ;;  %v138_v41 = vld [vmem:[%s7638_s1 + $0x60] sm:$0xff] }
0x11fb   :  { %v1846_v39 = vpack.c.bf16 %v1841_v52, %v1840_v35  ;;  %v137_v52 = vld [vmem:[%s7638_s1 + $0x58] sm:$0xff] }
0x11fc   :  { %5530 = vmatpush3.bf16.msra.mxu1 %v1848_v43 }
0x11fd   :  { %5535 = vmatprep.subr.bf16.mxu1 %v6248_v13 }
0x11ff   :  { %5532 = vmatmul.mubr.msk.bf16.vlgmr.msra.gmra.mrb[48].mxu1 %vm153_vm5, %v1846_v39 }
0x1200   :  { %5537 = vmatprep.mubr.msk.bf16.mxu1 %vm6249_vm6, %v6248_v13 }
0x12ca   :  { %v1736_v50 = vpop.f32.mrb[44].mxu1 }
0x12cb   :  { %v5513_v51 = vpop.f32.mrb[45].mxu1  ;;  %v1743_v15 = vmax.f32 %v1736_v50, 0.0 }
0x12cc   :  { %v1739_v10 = vpop.f32.mrb[46].mxu1  ;;  %v139_v51 = vld [vmem:[%s7638_s1 + $0x68] sm:$0xff] }
0x12cd   :  { %v1744_v53 = vmax.f32 %v1739_v10, 0.0  ;;  %v5514_v54 = vpop.f32.mrb[47].mxu1 }
0x12cf   :  { %v1745_v56 = vpack.c.bf16 %v1744_v53, %v1743_v15 }
0x12d1   :  { %5524 = vmatmul.mubr.msk.bf16.vlgmr.msra.gmra.mrb[48].mxu0 %vm70_vm4, %v1745_v56 }
0x12d2   :  { %v1886_v57 = vpop.f32.mrb[48].mxu1  ;;  %5543 = vmatprep.mubr.msk.bf16.mxu0 %vm6249_vm6, %v6248_v13 }
0x12d3   :  { %1899 = vrot.lane.b32.xlu1 %v1886_v57, %s6250_s27  ;;  %v5533_v59 = vpop.f32.mrb[49].mxu1 }
0x12d4   :  { %v1889_v60 = vpop.f32.mrb[50].mxu1  ;;  %v140_v59 = vld [vmem:[%s7638_s1 + $0x70] sm:$0xff] }
0x12d5   :  { %v6828_v62 = vpack.c.bf16 %v1889_v60, %v1886_v57  ;;  %1901 = vrot.lane.b32.xlu0 %v1889_v60, %s6250_s27  ;;  %v5534_v63 = vpop.f32.mrb[51].mxu1 }
0x12d7   :  { %1988 = vrot.lane.b32.xlu1 %v6828_v62, %s6251_s28 }
0x12d9   :  { %2088 = vrot.lane.b32.xlu0 %v6828_v62, %s6253_s30 }
0x12db   :  { %2038 = vrot.lane.b32.xlu1 %v6828_v62, %s6252_s29 }
0x1345   :  { %v1900_v0 = vpop.permute.xlu1 %1899 }
0x1346   :  { %1905 = vxpose.xlu1.b32.start [1/2] (short) (narrow) %v1900_v0, 32  ;;  %v141_v0 = vld [vmem:[%s7638_s1 + $0x78] sm:$0xff] }
0x1347   :  { %v1902_v1 = vpop.permute.xlu0 %1901 }
0x1349   :  { %v1989_v5 = vpop.permute.xlu1 %1988 }
0x134a   :  { %1906 = vxpose.xlu1.b32.end [2/2] (short) (narrow) %v1902_v1, 32 }
0x134b   :  { %v2089_v25 = vpop.permute.xlu0 %2088 }
0x134d   :  { %v2039_v6 = vpop.permute.xlu1 %2038 }
0x13a4   :  { %v6837_v2 = vpop.f32.mrb[48].mxu0 }
0x13a5   :  { %v5525_v3 = vpop.f32.mrb[49].mxu0 }
0x13a6   :  { %v6839_v61 = vpop.f32.mrb[50].mxu0 }
0x13a7   :  { %v5526_v4 = vpop.f32.mrb[51].mxu0 }
0x13c6   :  { %v1921_v7 = vpop.trf.xlu1 }
0x13c7   :  { %v1938_v8 = vpack.c.bf16 %v1921_v7, %v1921_v7 }
0x13c9   :  { %v1943_v9 = vsel %vm276_vm7, %v1938_v8, 0 }
0x13ca   :  { %5536 = vmatpush3.bf16.msra.mxu1 %v1943_v9  ;;  %v1922_v11 = vpop.trf.xlu1 }
0x13cb   :  { %v1986_v12 = vpack.c.bf16 %v1922_v11, %v1922_v11  ;;  %5547 = vmatprep.subr.bf16.mxu1 %v6248_v13 }
0x13cd   :  { %v1994_v16 = vsel %vm276_vm7, %v1986_v12, 0  ;;  %5538 = vmatmul.mubr.msk.bf16.vlgmr.msra.gmra.mrb[52].mxu1 %vm272_vm8, %v6828_v62 }
0x13ce   :  { %5542 = vmatpush3.bf16.msra.mxu0 %v1994_v16  ;;  %v1923_v21 = vpop.trf.xlu1  ;;  %5549 = vmatprep.mubr.msk.bf16.mxu1 %vm6249_vm6, %v6248_v13 }
0x13cf   :  { %v2037_v22 = vpack.c.bf16 %v1923_v21, %v1923_v21  ;;  %5553 = vmatprep.subr.bf16.mxu0 %v6248_v13 }
0x13d1   :  { %v2044_v23 = vsel %vm276_vm7, %v2037_v22, 0  ;;  %5544 = vmatmul.mubr.msk.bf16.vlgmr.msra.gmra.mrb[52].mxu0 %vm272_vm8, %v1989_v5 }
0x13d2   :  { %5548 = vmatpush3.bf16.msra.mxu1 %v2044_v23  ;;  %v1924_v24 = vpop.trf.xlu1  ;;  %5555 = vmatprep.mubr.msk.bf16.mxu0 %vm6249_vm6, %v6248_v13 }
0x13d3   :  { %v2087_v14 = vpack.c.bf16 %v1924_v24, %v1924_v24  ;;  %5559 = vmatprep.subr.bf16.mxu1 %v6248_v13 }
0x13d5   :  { %v2094_v18 = vsel %vm276_vm7, %v2087_v14, 0  ;;  %5550 = vmatmul.mubr.msk.bf16.vlgmr.msra.gmra.mrb[56].mxu1 %vm272_vm8, %v2039_v6 }
0x13d6   :  { %5554 = vmatpush3.bf16.msra.mxu0 %v2094_v18  ;;  %5561 = vmatprep.mubr.msk.bf16.mxu1 %vm6249_vm6, %v6248_v13 }
0x13d7   :  { %5565 = vmatprep.subr.bf16.mxu0 %v6248_v13 }
0x13d9   :  { %5556 = vmatmul.mubr.msk.bf16.vlgmr.msra.gmra.mrb[56].mxu0 %vm272_vm8, %v2089_v25 }
0x13da   :  { %5567 = vmatprep.mubr.msk.bf16.mxu0 %vm6249_vm6, %v6248_v13 }
0x14a0   :  { %v1979_v34 = vpop.f32.mrb[52].mxu1 }
0x14a1   :  { %v2137_v17 = vadd.f32 %v1979_v34, %v134_v31  ;;  %v5539_v28 = vpop.f32.mrb[53].mxu1 }
0x14a2   :  { %v1982_v29 = vpop.f32.mrb[54].mxu1 }
0x14a3   :  { %v2138_v20 = vadd.f32 %v1982_v29, %v135_v26  ;;  %v5540_v33 = vpop.f32.mrb[55].mxu1  ;;  %v2145_v36 = vsel %vm480_vm9, %v2137_v17, -inf }
0x14a4   :  { %v2030_v38 = vpop.f32.mrb[52].mxu0  ;;  %2146 = vmax.xlane.f32.xlu0 %v2145_v36 }
0x14a5   :  { %v5545_v27 = vpop.f32.mrb[53].mxu0  ;;  %v2139_v42 = vadd.f32 %v2030_v38, %v136_v37  ;;  %v2148_v35 = vsel %vm480_vm9, %v2138_v20, -inf }
0x14a6   :  { %v2033_v40 = vpop.f32.mrb[54].mxu0 }
0x14a7   :  { %v5546_v43 = vpop.f32.mrb[55].mxu0  ;;  %v2140_v47 = vadd.f32 %v2033_v40, %v137_v52  ;;  %v2151_v58 = vsel %vm480_vm9, %v2139_v42, -inf }
0x14a8   :  { %2149 = vmax.xlane.f32.xlu0 %v2148_v35  ;;  %v2080_v39 = vpop.f32.mrb[56].mxu1 }
0x14a9   :  { %v2141_v44 = vadd.f32 %v2080_v39, %v138_v41  ;;  %v5551_v46 = vpop.f32.mrb[57].mxu1  ;;  %v2154_v57 = vsel %vm480_vm9, %v2140_v47, -inf }
0x14aa   :  { %v2083_v48 = vpop.f32.mrb[58].mxu1 }
0x14ab   :  { %v5552_v49 = vpop.f32.mrb[59].mxu1  ;;  %v2157_v50 = vsel %vm480_vm9, %v2141_v44, -inf  ;;  %v2142_v54 = vadd.f32 %v2083_v48, %v139_v51 }
0x14ac   :  { %v2130_v10 = vpop.f32.mrb[56].mxu0  ;;  %2152 = vmax.xlane.f32.xlu0 %v2151_v58  ;;  %2158 = vmax.xlane.f32.xlu1 %v2157_v50 }
0x14ad   :  { %v5557_v15 = vpop.f32.mrb[57].mxu0  ;;  %v2143_v60 = vadd.f32 %v2130_v10, %v140_v59  ;;  %v2160_v63 = vsel %vm480_vm9, %v2142_v54, -inf }
0x14ae   :  { %v2133_v53 = vpop.f32.mrb[58].mxu0 }
0x14af   :  { %v5558_v56 = vpop.f32.mrb[59].mxu0  ;;  %v2144_v1 = vadd.f32 %v2133_v53, %v141_v0  ;;  %v2163_v3 = vsel %vm480_vm9, %v2143_v60, -inf }
0x14b0   :  { %2155 = vmax.xlane.f32.xlu0 %v2154_v57 }
0x14b1   :  { %v2166_v4 = vsel %vm480_vm9, %v2144_v1, -inf }
0x14b4   :  { %2161 = vmax.xlane.f32.xlu0 %v2160_v63 }
0x14b8   :  { %2164 = vmax.xlane.f32.xlu0 %v2163_v3 }
0x14bc   :  { %2167 = vmax.xlane.f32.xlu0 %v2166_v4 }
0x14bd   :  { %2282 = vrot.lane.b32.xlu1 %v6828_v62, %s6254_s22 }
0x14c1   :  { %2330 = vrot.lane.b32.xlu1 %v6828_v62, %s6255_s23 }
0x14d2   :  { %2234 = vrot.lane.b32.xlu0 %v6828_v62, %s6256_s24 }
0x1531   :  { %v2147_v5 = vpop.xlane.xlu0 %2146 }
0x1532   :  { %v2169_v6 = vsub.f32 %v2137_v17, %v2147_v5 }
0x1534   :  { %v2177_v7 = vmul.f32 1.442695, %v2169_v6 }
0x1535   :  { %v2150_v8 = vpop.xlane.xlu0 %2149 }
0x1536   :  { %6041 = vpow2.f32 %v2177_v7  ;;  %v2170_v9 = vsub.f32 %v2138_v20, %v2150_v8 }
0x1538   :  { %v2179_v11 = vmul.f32 1.442695, %v2170_v9 }
0x1539   :  { %v2153_v12 = vpop.xlane.xlu0 %2152  ;;  %v2159_v16 = vpop.xlane.xlu1 %2158 }
0x153a   :  { %6043 = vpow2.f32 %v2179_v11  ;;  %v2171_v21 = vsub.f32 %v2139_v42, %v2153_v12  ;;  %v2173_v23 = vsub.f32 %v2141_v44, %v2159_v16 }
0x153c   :  { %v2181_v22 = vmul.f32 1.442695, %v2171_v21  ;;  %v2185_v31 = vmul.f32 1.442695, %v2173_v23 }
0x153d   :  { %v2156_v24 = vpop.xlane.xlu0 %2155  ;;  %v2283_v14 = vpop.permute.xlu1 %2282 }
0x153e   :  { %6045 = vpow2.f32 %v2181_v22  ;;  %v2172_v18 = vsub.f32 %v2140_v47, %v2156_v24  ;;  %5566 = vmatpush3.bf16.msra.mxu0 %v2283_v14 }
0x153f   :  { %5577 = vmatprep.subr.bf16.mxu0 %v6248_v13 }
0x1540   :  { %v6042_v25 = vpop.eup %6041  ;;  %v2183_v34 = vmul.f32 1.442695, %v2172_v18 }
0x1541   :  { %v2162_v26 = vpop.xlane.xlu0 %2161  ;;  %v2193_v17 = vsel %vm480_vm9, %v6042_v25, 0.0 }
0x1542   :  { %6047 = vpow2.f32 %v2183_v34  ;;  %v2174_v28 = vsub.f32 %v2142_v54, %v2162_v26  ;;  %2194 = vadd.xlane.f32.xlu0 %v2193_v17 }
0x1543   :  { %6049 = vpow2.f32 %v2185_v31 }
0x1544   :  { %v6044_v29 = vpop.eup %6043  ;;  %v2187_v20 = vmul.f32 1.442695, %v2174_v28 }
0x1545   :  { %v2165_v33 = vpop.xlane.xlu0 %2164  ;;  %v2196_v36 = vsel %vm480_vm9, %v6044_v29, 0.0 }
0x1546   :  { %v2175_v37 = vsub.f32 %v2143_v60, %v2165_v33  ;;  %2197 = vadd.xlane.f32.xlu0 %v2196_v36  ;;  %6051 = vpow2.f32 %v2187_v20  ;;  %v1893_v36 = vld [vmem:[%s7641_s4 + $0x100] sm:$0xff] }
0x1548   :  { %v6046_v38 = vpop.eup %6045  ;;  %v2189_v27 = vmul.f32 1.442695, %v2175_v37  ;;  %v1894_v37 = vld [vmem:[%s7641_s4 + $0x108] sm:$0xff] }
0x1549   :  { %v2168_v40 = vpop.xlane.xlu0 %2167  ;;  %v2199_v41 = vsel %vm480_vm9, %v6046_v38, 0.0 }
0x154a   :  { %v2176_v42 = vsub.f32 %v2144_v1, %v2168_v40  ;;  %2200 = vadd.xlane.f32.xlu0 %v2199_v41  ;;  %6053 = vpow2.f32 %v2189_v27  ;;  %v2331_v1 = vpop.permute.xlu1 %2330  ;;  %v2456_v40 = vpack.c.bf16 %v1894_v37, %v1893_v36 }
0x154c   :  { %v6048_v43 = vpop.eup %6047  ;;  %v2191_v35 = vmul.f32 1.442695, %v2176_v42  ;;  %v1895_v42 = vld [vmem:[%s7641_s4 + $0x110] sm:$0xff] }
0x154d   :  { %v2235_v52 = vpop.permute.xlu0 %2234  ;;  %v2202_v39 = vsel %vm480_vm9, %v6048_v43, 0.0  ;;  %v6050_v44 = vpop.eup %6049 }
0x154e   :  { %2203 = vadd.xlane.f32.xlu0 %v2202_v39  ;;  %5560 = vmatpush3.bf16.msra.mxu1 %v2235_v52  ;;  %6055 = vpow2.f32 %v2191_v35  ;;  %v2205_v46 = vsel %vm480_vm9, %v6050_v44, 0.0 }
0x154f   :  { %5571 = vmatprep.subr.bf16.mxu1 %v6248_v13 }
0x1550   :  { %v6052_v48 = vpop.eup %6051 }
0x1551   :  { %v2208_v47 = vsel %vm480_vm9, %v6052_v48, 0.0 }
0x1552   :  { %2206 = vadd.xlane.f32.xlu0 %v2205_v46 }
0x1554   :  { %v6054_v49 = vpop.eup %6053 }
0x1555   :  { %v2211_v58 = vsel %vm480_vm9, %v6054_v49, 0.0 }
0x1556   :  { %2209 = vadd.xlane.f32.xlu0 %v2208_v47 }
0x1558   :  { %v6056_v50 = vpop.eup %6055 }
0x1559   :  { %v2214_v51 = vsel %vm480_vm9, %v6056_v50, 0.0 }
0x155a   :  { %2212 = vadd.xlane.f32.xlu0 %v2211_v58 }
0x155e   :  { %2215 = vadd.xlane.f32.xlu0 %v2214_v51 }
0x1574   :  { %2378 = vrot.lane.b32.xlu0 %v6828_v62, %s6257_s25 }
0x15cf   :  { %v2195_v10 = vpop.xlane.xlu0 %2194 }
0x15d0   :  { %6057 = vrcp.f32 %v2195_v10 }
0x15d3   :  { %v2198_v15 = vpop.xlane.xlu0 %2197 }
0x15d4   :  { %6059 = vrcp.f32 %v2198_v15 }
0x15d7   :  { %v2201_v53 = vpop.xlane.xlu0 %2200 }
0x15d8   :  { %6061 = vrcp.f32 %v2201_v53 }
0x15da   :  { %v6058_v56 = vpop.eup %6057 }
0x15db   :  { %v2204_v54 = vpop.xlane.xlu0 %2203  ;;  %v2225_v59 = vmul.f32 %v6058_v56, %v6042_v25 }
0x15dc   :  { %6063 = vrcp.f32 %v2204_v54 }
0x15de   :  { %v6060_v57 = vpop.eup %6059 }
0x15df   :  { %v2226_v60 = vmul.f32 %v6060_v57, %v6044_v29  ;;  %v2207_v63 = vpop.xlane.xlu0 %2206 }
0x15e0   :  { %6065 = vrcp.f32 %v2207_v63 }
0x15e1   :  { %v2233_v0 = vpack.c.bf16 %v2226_v60, %v2225_v59 }
0x15e2   :  { %v6062_v62 = vpop.eup %6061 }
0x15e3   :  { %5562 = vmatmul.mubr.msk.bf16.vlgmr.msra.gmra.mrb[60].mxu1 %vm480_vm9, %v2233_v0  ;;  %v2210_v3 = vpop.xlane.xlu0 %2209  ;;  %v2227_v5 = vmul.f32 %v6062_v62, %v6046_v38 }
0x15e4   :  { %5572 = vmatpush3.bf16.msra.mxu1 %v2331_v1  ;;  %6067 = vrcp.f32 %v2210_v3  ;;  %5573 = vmatprep.mubr.msk.bf16.mxu1 %vm6249_vm6, %v6248_v13 }
0x15e5   :  { %5583 = vmatprep.subr.bf16.mxu1 %v6248_v13 }
0x15e6   :  { %v6064_v4 = vpop.eup %6063 }
0x15e7   :  { %v2228_v6 = vmul.f32 %v6064_v4, %v6048_v43  ;;  %v2213_v7 = vpop.xlane.xlu0 %2212  ;;  %v1896_v43 = vld [vmem:[%s7641_s4 + $0x118] sm:$0xff] }
0x15e8   :  { %6069 = vrcp.f32 %v2213_v7  ;;  %v2457_v52 = vpack.c.bf16 %v1896_v43, %v1895_v42  ;;  %v6954_v7 = vadd.f32 %v6837_v2, %v6735_v45 }
0x15e9   :  { %v2281_v8 = vpack.c.bf16 %v2228_v6, %v2227_v5 }
0x15ea   :  { %v6066_v11 = vpop.eup %6065 }
0x15eb   :  { %5568 = vmatmul.mubr.msk.bf16.vlgmr.msra.gmra.mrb[60].mxu0 %vm480_vm9, %v2281_v8  ;;  %v2216_v9 = vpop.xlane.xlu0 %2215  ;;  %v2229_v16 = vmul.f32 %v6066_v11, %v6050_v44 }
0x15ec   :  { %6071 = vrcp.f32 %v2216_v9  ;;  %5579 = vmatprep.mubr.msk.bf16.mxu0 %vm6249_vm6, %v6248_v13 }
0x15ee   :  { %v6068_v12 = vpop.eup %6067 }
0x15ef   :  { %v2230_v21 = vmul.f32 %v6068_v12, %v6052_v48  ;;  %v2379_v22 = vpop.permute.xlu0 %2378 }
0x15f0   :  { %5578 = vmatpush3.bf16.msra.mxu0 %v2379_v22  ;;  %v1797_v22 = vmul.f32 %v6954_v7, %v6954_v7 }
0x15f1   :  { %v2329_v23 = vpack.c.bf16 %v2230_v21, %v2229_v16  ;;  %5591 = vmatprep.subr.bf16.mxu0 %v6248_v13 }
0x15f2   :  { %v6070_v24 = vpop.eup %6069 }
0x15f3   :  { %5574 = vmatmul.mubr.msk.bf16.vlgmr.msra.gmra.mrb[64].mxu1 %vm480_vm9, %v2329_v23  ;;  %v2231_v18 = vmul.f32 %v6070_v24, %v6054_v49  ;;  %v1795_v23 = vadd.f32 %v6839_v61, %v6738_v55  ;;  %v1799_v24 = vsel %vm153_vm5, %v1797_v22, 0.0  ;;  %v2527_v55 = vld [vmem:[%s7641_s4 + $0x140] sm:$0xff]  ;;  %v2528_v61 = vld [vmem:[%s7641_s4 + $0x148] sm:$0xff] }
0x15f4   :  { %5587 = vmatprep.mubr.msk.bf16.mxu1 %vm6249_vm6, %v6248_v13  ;;  %5584 = vmatpush3.bf16.msra.mxu1 %v2456_v40 }
0x15f5   :  { %5585 = vmatprep.subr.bf16.mxu1 %v6248_v13 }
0x15f6   :  { %v6072_v14 = vpop.eup %6071 }
0x15f7   :  { %v2232_v25 = vmul.f32 %v6072_v14, %v6056_v50 }
0x15f8   :  { %5586 = vmatpush3.bf16.msra.mxu1 %v2457_v52 }
0x15f9   :  { %v2377_v31 = vpack.c.bf16 %v2232_v25, %v2231_v18  ;;  %5599 = vmatprep.subr.bf16.mxu1 %v6248_v13  ;;  %v2532_v18 = vpack.c.bf16 %v2528_v61, %v2527_v55  ;;  %v2529_v25 = vld [vmem:[%s7641_s4 + $0x150] sm:$0xff] }
0x15fb   :  { %5580 = vmatmul.mubr.msk.bf16.vlgmr.msra.gmra.mrb[64].mxu0 %vm480_vm9, %v2377_v31  ;;  %v2530_v31 = vld [vmem:[%s7641_s4 + $0x158] sm:$0xff] }
0x15fc   :  { %5595 = vmatprep.mubr.msk.bf16.mxu0 %vm6249_vm6, %v6248_v13  ;;  %5592 = vmatpush3.bf16.msra.mxu0 %v2532_v18 }
0x15fd   :  { %5593 = vmatprep.subr.bf16.mxu0 %v6248_v13 }
0x16b6   :  { %v2274_v34 = vpop.f32.mrb[60].mxu1 }
0x16b7   :  { %v5563_v26 = vpop.f32.mrb[61].mxu1 }
0x16b8   :  { %v2277_v17 = vpop.f32.mrb[62].mxu1  ;;  %v2578_v26 = vld [vmem:[%s7640_s3 + $0x80] sm:$0xff] }
0x16b9   :  { %v5564_v28 = vpop.f32.mrb[63].mxu1 }
0x16be   :  { %v2322_v29 = vpop.f32.mrb[60].mxu0 }
0x16bf   :  { %v5569_v20 = vpop.f32.mrb[61].mxu0 }
0x16c0   :  { %v2325_v33 = vpop.f32.mrb[62].mxu0  ;;  %v2581_v20 = vld [vmem:[%s7640_s3 + $0x98] sm:$0xff] }
0x16c1   :  { %v5897_v38 = vpack.i.bf16 %v2325_v33, %v2322_v29  ;;  %v5570_v27 = vpop.f32.mrb[63].mxu0  ;;  %v2580_v29 = vld [vmem:[%s7640_s3 + $0x90] sm:$0xff] }
0x16c2   :  { %v2584_v33 = vpack.c.bf16 %v2581_v20, %v2580_v29 }
0x16c3   :  { %5898 = vrot.lane.b32.xlu1 %v5897_v38, %s6258_s9 }
0x16c6   :  { %v2370_v41 = vpop.f32.mrb[64].mxu1 }
0x16c7   :  { %v5575_v35 = vpop.f32.mrb[65].mxu1 }
0x16c8   :  { %v2373_v39 = vpop.f32.mrb[66].mxu1 }
0x16c9   :  { %v5902_v44 = vpack.i.bf16 %v2373_v39, %v2370_v41  ;;  %v5576_v46 = vpop.f32.mrb[67].mxu1 }
0x16cb   :  { %5903 = vrot.lane.b32.xlu0 %v5902_v44, %s6259_s14 }
0x16ce   :  { %v2418_v48 = vpop.f32.mrb[64].mxu0 }
0x16cf   :  { %v5581_v47 = vpop.f32.mrb[65].mxu0 }
0x16d0   :  { %v2421_v49 = vpop.f32.mrb[66].mxu0 }
0x16d1   :  { %v5907_v58 = vpack.i.bf16 %v2421_v49, %v2418_v48  ;;  %v5582_v50 = vpop.f32.mrb[67].mxu0  ;;  %v5123_v49 = vld [vmem:[%s7641_s4 + $0x247] ss:$0 sm:$0xff] }
0x16d3   :  { %5908 = vrot.lane.b32.xlu1 %v5907_v58, %s6260_s15 }
0x1735   :  { %v5899_v51 = vpop.permute.xlu1 %5898 }
0x1736   :  { %v5901_v15 = vunpack.i.h.bf16 %v5899_v51  ;;  %v5900_v53 = vunpack.i.l.bf16 %v5899_v51 }
0x1738   :  { %v2449_v59 = vsel %vm272_vm8, %v2274_v34, %v5900_v53  ;;  %v2450_v60 = vsel %vm272_vm8, %v2277_v17, %v5901_v15  ;;  %v2533_v34 = vpack.c.bf16 %v2530_v31, %v2529_v25  ;;  %v2579_v17 = vld [vmem:[%s7640_s3 + $0x88] sm:$0xff] }
0x1739   :  { %v2583_v28 = vpack.c.bf16 %v2579_v17, %v2578_v26  ;;  %v143_v17 = vld [vmem:[%s7638_s1 + $0x88] sm:$0xff] }
0x173a   :  { %5594 = vmatpush3.bf16.msra.mxu0 %v2533_v34  ;;  %v142_v34 = vld [vmem:[%s7638_s1 + $0x80] sm:$0xff] }
0x173b   :  { %5607 = vmatprep.subr.bf16.mxu0 %v6248_v13 }
0x173d   :  { %v5904_v10 = vpop.permute.xlu0 %5903 }
0x173e   :  { %v5906_v54 = vunpack.i.h.bf16 %v5904_v10  ;;  %v5905_v56 = vunpack.i.l.bf16 %v5904_v10 }
0x1740   :  { %v2452_v1 = vsel %vm480_vm9, %v2450_v60, %v5906_v54  ;;  %v2451_v3 = vsel %vm480_vm9, %v2449_v59, %v5905_v56  ;;  %v5111_v56 = vld [vmem:[%s7641_s4 + $0x244] ss:$0 sm:$0xff] }
0x1745   :  { %v5909_v57 = vpop.permute.xlu1 %5908 }
0x1746   :  { %v5911_v63 = vunpack.i.h.bf16 %v5909_v57  ;;  %v5910_v0 = vunpack.i.l.bf16 %v5909_v57 }
0x1748   :  { %v2453_v62 = vsel %vm789_vm10, %v2451_v3, %v5910_v0  ;;  %v2454_v4 = vsel %vm789_vm10, %v2452_v1, %v5911_v63 }
0x1749   :  { %v2455_v5 = vpack.c.bf16 %v2454_v4, %v2453_v62 }
0x174b   :  { %5588 = vmatmul.mubr.msk.bf16.vlgmr.msra.gmra.mrb[68].mxu1 %vm153_vm5, %v2455_v5 }
0x174c   :  { %5603 = vmatprep.mubr.msk.bf16.mxu1 %vm6249_vm6, %v6248_v13  ;;  %5600 = vmatpush3.bf16.msra.mxu1 %v2583_v28 }
0x174d   :  { %5601 = vmatprep.subr.bf16.mxu1 %v6248_v13 }
0x1750   :  { %5602 = vmatpush3.bf16.msra.mxu1 %v2584_v33 }
0x1751   :  { %5613 = vmatprep.subr.bf16.mxu1 %v6248_v13 }
0x181e   :  { %v2495_v6 = vpop.f32.mrb[68].mxu1 }
0x181f   :  { %v6957_v8 = vadd.f32 %v6345_v30, %v2495_v6  ;;  %v5589_v9 = vpop.f32.mrb[69].mxu1 }
0x1820   :  { %v2498_v11 = vpop.f32.mrb[70].mxu1 }
0x1821   :  { %v6960_v12 = vadd.f32 %v6349_v32, %v2498_v11  ;;  %v5590_v16 = vpop.f32.mrb[71].mxu1  ;;  %v2505_v21 = vmul.f32 %v6957_v8, %v6957_v8  ;;  %v1798_v32 = vmul.f32 %v1795_v23, %v1795_v23 }
0x1823   :  { %v2507_v45 = vsel %vm153_vm5, %v2505_v21, 0.0  ;;  %v2506_v30 = vmul.f32 %v6960_v12, %v6960_v12  ;;  %v1802_v14 = vsel %vm153_vm5, %v1798_v32, 0.0 }
0x1824   :  { %2508 = vadd.xlane.f32.xlu0 %v2507_v45 }
0x1825   :  { %v2510_v2 = vsel %vm153_vm5, %v2506_v30, 0.0 }
0x1826   :  { %2511 = vadd.xlane.f32.xlu1 %v2510_v2 }
0x1828   :  { %1800 = vadd.xlane.f32.xlu0 %v1799_v24 }
0x182c   :  { %1803 = vadd.xlane.f32.xlu0 %v1802_v14 }
0x18b1   :  { %v2509_v36 = vpop.xlane.xlu0 %2508 }
0x18b2   :  { %v2513_v37 = vmul.f32 0.03125, %v2509_v36 }
0x18b3   :  { %v2512_v38 = vpop.xlane.xlu1 %2511 }
0x18b4   :  { %v2515_v27 = vadd.f32 1e-06, %v2513_v37  ;;  %v2514_v40 = vmul.f32 0.03125, %v2512_v38  ;;  %v144_v38 = vld [vmem:[%s7638_s1 + $0x90] sm:$0xff] }
0x18b5   :  { %v1801_v41 = vpop.xlane.xlu0 %1800 }
0x18b6   :  { %6073 = vrsqrt.f32 %v2515_v27  ;;  %v2516_v42 = vadd.f32 1e-06, %v2514_v40  ;;  %v1805_v43 = vmul.f32 0.03125, %v1801_v41 }
0x18b8   :  { %6075 = vrsqrt.f32 %v2516_v42  ;;  %v1807_v35 = vadd.f32 1e-06, %v1805_v43  ;;  %v146_v42 = vld [vmem:[%s7638_s1 + $0xa0] sm:$0xff] }
0x18b9   :  { %v1804_v52 = vpop.xlane.xlu0 %1803 }
0x18ba   :  { %6077 = vrsqrt.f32 %v1807_v35  ;;  %v1806_v39 = vmul.f32 0.03125, %v1804_v52 }
0x18bc   :  { %v1808_v44 = vadd.f32 1e-06, %v1806_v39  ;;  %v145_v39 = vld [vmem:[%s7638_s1 + $0x98] sm:$0xff] }
0x18be   :  { %6079 = vrsqrt.f32 %v1808_v44 }
0x18c0   :  { %v6074_v46 = vpop.eup %6073 }
0x18c1   :  { %v2519_v48 = vmul.f32 %v6074_v46, %v6957_v8 }
0x18c2   :  { %v6076_v47 = vpop.eup %6075 }
0x18c3   :  { %v2520_v58 = vmul.f32 %v6076_v47, %v6960_v12  ;;  %v2525_v51 = vmul.f32 %v5123_v49, %v2519_v48 }
0x18c4   :  { %v6078_v50 = vpop.eup %6077 }
0x18c5   :  { %v2526_v10 = vmul.f32 %v5123_v49, %v2520_v58  ;;  %v1811_v15 = vmul.f32 %v6078_v50, %v6954_v7 }
0x18c7   :  { %v2531_v53 = vpack.c.bf16 %v2526_v10, %v2525_v51  ;;  %v1817_v59 = vmul.f32 %v5111_v56, %v1811_v15  ;;  %v147_v10 = vld [vmem:[%s7638_s1 + $0xa8] sm:$0xff] }
0x18c8   :  { %v6080_v54 = vpop.eup %6079 }
0x18c9   :  { %v1812_v57 = vmul.f32 %v6080_v54, %v1795_v23  ;;  %5596 = vmatmul.mubr.msk.bf16.vlgmr.msra.gmra.mrb[68].mxu0 %vm153_vm5, %v2531_v53 }
0x18ca   :  { %5609 = vmatprep.mubr.msk.bf16.mxu0 %vm6249_vm6, %v6248_v13 }
0x18cb   :  { %v1818_v60 = vmul.f32 %v5111_v56, %v1812_v57 }
0x18cd   :  { %v7014_v63 = vpack.c.bf16 %v1818_v60, %v1817_v59  ;;  %v148_v60 = vld [vmem:[%s7638_s1 + $0xb0] sm:$0xff] }
0x18cf   :  { %5604 = vmatmul.mubr.msk.bf16.vlgmr.msra.gmra.mrb[72].mxu1 %vm153_vm5, %v7014_v63 }
0x18d0   :  { %5615 = vmatprep.mubr.msk.bf16.mxu1 %vm6249_vm6, %v6248_v13 }
0x199c   :  { %v2571_v0 = vpop.f32.mrb[68].mxu0 }
0x199d   :  { %v5597_v1 = vpop.f32.mrb[69].mxu0 }
0x199e   :  { %v2574_v3 = vpop.f32.mrb[70].mxu0 }
0x199f   :  { %v2665_v62 = vpack.c.bf16 %v2574_v3, %v2571_v0  ;;  %v5598_v4 = vpop.f32.mrb[71].mxu0  ;;  %v149_v3 = vld [vmem:[%s7638_s1 + $0xb8] sm:$0xff] }
0x19a1   :  { %2766 = vrot.lane.b32.xlu0 %v2665_v62, %s6252_s29  ;;  %2716 = vrot.lane.b32.xlu1 %v2665_v62, %s6251_s28 }
0x19a2   :  { %v2622_v5 = vpop.f32.mrb[72].mxu1 }
0x19a3   :  { %v5605_v6 = vpop.f32.mrb[73].mxu1 }
0x19a4   :  { %v2625_v7 = vpop.f32.mrb[74].mxu1 }
0x19a5   :  { %v7022_v9 = vpack.c.bf16 %v2625_v7, %v2622_v5  ;;  %2816 = vrot.lane.b32.xlu1 %v2665_v62, %s6253_s30  ;;  %v5606_v11 = vpop.f32.mrb[75].mxu1 }
0x19ce   :  { %2633 = vxpose.xlu1.b32.start [1/2] (short) (narrow) %v2622_v5, 32 }
0x19d2   :  { %2634 = vxpose.xlu1.b32.end [2/2] (short) (narrow) %v2625_v7, 32 }
0x1a13   :  { %v2717_v16 = vpop.permute.xlu1 %2716  ;;  %v2767_v25 = vpop.permute.xlu0 %2766 }
0x1a17   :  { %v2817_v21 = vpop.permute.xlu1 %2816 }
0x1a4e   :  { %v2649_v22 = vpop.trf.xlu1 }
0x1a4f   :  { %v2666_v23 = vpack.c.bf16 %v2649_v22, %v2649_v22 }
0x1a51   :  { %v2671_v45 = vsel %vm276_vm7, %v2666_v23, 0 }
0x1a52   :  { %5608 = vmatpush3.bf16.msra.mxu0 %v2671_v45  ;;  %v2650_v30 = vpop.trf.xlu1 }
0x1a53   :  { %v2714_v2 = vpack.c.bf16 %v2650_v30, %v2650_v30  ;;  %5619 = vmatprep.subr.bf16.mxu0 %v6248_v13 }
0x1a55   :  { %v2722_v32 = vsel %vm276_vm7, %v2714_v2, 0  ;;  %5610 = vmatmul.mubr.msk.bf16.vlgmr.msra.gmra.mrb[72].mxu0 %vm272_vm8, %v2665_v62 }
0x1a56   :  { %5614 = vmatpush3.bf16.msra.mxu1 %v2722_v32  ;;  %v2651_v24 = vpop.trf.xlu1  ;;  %5621 = vmatprep.mubr.msk.bf16.mxu0 %vm6249_vm6, %v6248_v13 }
0x1a57   :  { %v2765_v14 = vpack.c.bf16 %v2651_v24, %v2651_v24  ;;  %5625 = vmatprep.subr.bf16.mxu1 %v6248_v13 }
0x1a59   :  { %v2772_v55 = vsel %vm276_vm7, %v2765_v14, 0  ;;  %5616 = vmatmul.mubr.msk.bf16.vlgmr.msra.gmra.mrb[76].mxu1 %vm272_vm8, %v2717_v16 }
0x1a5a   :  { %5620 = vmatpush3.bf16.msra.mxu0 %v2772_v55  ;;  %v2652_v61 = vpop.trf.xlu1  ;;  %5627 = vmatprep.mubr.msk.bf16.mxu1 %vm6249_vm6, %v6248_v13 }
0x1a5b   :  { %v2815_v18 = vpack.c.bf16 %v2652_v61, %v2652_v61  ;;  %5631 = vmatprep.subr.bf16.mxu0 %v6248_v13 }
0x1a5d   :  { %v2822_v31 = vsel %vm276_vm7, %v2815_v18, 0  ;;  %5622 = vmatmul.mubr.msk.bf16.vlgmr.msra.gmra.mrb[76].mxu0 %vm272_vm8, %v2767_v25 }
0x1a5e   :  { %5626 = vmatpush3.bf16.msra.mxu1 %v2822_v31  ;;  %5633 = vmatprep.mubr.msk.bf16.mxu0 %vm6249_vm6, %v6248_v13 }
0x1a5f   :  { %5637 = vmatprep.subr.bf16.mxu1 %v6248_v13 }
0x1a61   :  { %5628 = vmatmul.mubr.msk.bf16.vlgmr.msra.gmra.mrb[80].mxu1 %vm272_vm8, %v2817_v21 }
0x1a62   :  { %5639 = vmatprep.mubr.msk.bf16.mxu1 %vm6249_vm6, %v6248_v13 }
0x1b28   :  { %v2707_v26 = vpop.f32.mrb[72].mxu0 }
0x1b29   :  { %v2865_v28 = vadd.f32 %v2707_v26, %v142_v34  ;;  %v5611_v29 = vpop.f32.mrb[73].mxu0 }
0x1b2a   :  { %v2710_v20 = vpop.f32.mrb[74].mxu0 }
0x1b2b   :  { %v2866_v33 = vadd.f32 %v2710_v20, %v143_v17  ;;  %v5612_v36 = vpop.f32.mrb[75].mxu0  ;;  %v2873_v37 = vsel %vm480_vm9, %v2865_v28, -inf }
0x1b2c   :  { %2874 = vmax.xlane.f32.xlu0 %v2873_v37  ;;  %v2758_v27 = vpop.f32.mrb[76].mxu1 }
0x1b2d   :  { %v5617_v40 = vpop.f32.mrb[77].mxu1  ;;  %v2867_v43 = vadd.f32 %v2758_v27, %v144_v38  ;;  %v2876_v52 = vsel %vm480_vm9, %v2866_v33, -inf }
0x1b2e   :  { %v2761_v41 = vpop.f32.mrb[78].mxu1 }
0x1b2f   :  { %v5618_v35 = vpop.f32.mrb[79].mxu1  ;;  %v2868_v49 = vadd.f32 %v2761_v41, %v145_v39  ;;  %v2879_v51 = vsel %vm480_vm9, %v2867_v43, -inf }
0x1b30   :  { %2877 = vmax.xlane.f32.xlu0 %v2876_v52  ;;  %v2808_v44 = vpop.f32.mrb[76].mxu0 }
0x1b31   :  { %v2869_v46 = vadd.f32 %v2808_v44, %v146_v42  ;;  %v5623_v48 = vpop.f32.mrb[77].mxu0  ;;  %v2882_v59 = vsel %vm480_vm9, %v2868_v49, -inf }
0x1b32   :  { %v2811_v47 = vpop.f32.mrb[78].mxu0 }
0x1b33   :  { %v5624_v58 = vpop.f32.mrb[79].mxu0  ;;  %v2885_v50 = vsel %vm480_vm9, %v2869_v46, -inf  ;;  %v2870_v56 = vadd.f32 %v2811_v47, %v147_v10 }
0x1b34   :  { %2886 = vmax.xlane.f32.xlu1 %v2885_v50  ;;  %2880 = vmax.xlane.f32.xlu0 %v2879_v51  ;;  %v2858_v15 = vpop.f32.mrb[80].mxu1 }
0x1b35   :  { %v5629_v53 = vpop.f32.mrb[81].mxu1  ;;  %v2871_v0 = vadd.f32 %v2858_v15, %v148_v60  ;;  %v2888_v1 = vsel %vm480_vm9, %v2870_v56, -inf }
0x1b36   :  { %v2861_v54 = vpop.f32.mrb[82].mxu1 }
0x1b37   :  { %v5630_v57 = vpop.f32.mrb[83].mxu1  ;;  %v2872_v62 = vadd.f32 %v2861_v54, %v149_v3  ;;  %v2891_v4 = vsel %vm480_vm9, %v2871_v0, -inf }
0x1b38   :  { %2883 = vmax.xlane.f32.xlu0 %v2882_v59 }
0x1b39   :  { %v2894_v5 = vsel %vm480_vm9, %v2872_v62, -inf }
0x1b3c   :  { %2889 = vmax.xlane.f32.xlu0 %v2888_v1 }
0x1b40   :  { %2892 = vmax.xlane.f32.xlu0 %v2891_v4 }
0x1b44   :  { %2895 = vmax.xlane.f32.xlu0 %v2894_v5 }
0x1b45   :  { %3012 = vrot.lane.b32.xlu1 %v7022_v9, %s6261_s16 }
0x1b49   :  { %3060 = vrot.lane.b32.xlu1 %v7022_v9, %s6262_s17 }
0x1b5a   :  { %2964 = vrot.lane.b32.xlu0 %v7022_v9, %s6250_s27 }
0x1bb9   :  { %v2875_v6 = vpop.xlane.xlu0 %2874 }
0x1bba   :  { %v2897_v7 = vsub.f32 %v2865_v28, %v2875_v6 }
0x1bbc   :  { %v2905_v11 = vmul.f32 1.442695, %v2897_v7 }
0x1bbd   :  { %v2878_v16 = vpop.xlane.xlu0 %2877 }
0x1bbe   :  { %6081 = vpow2.f32 %v2905_v11  ;;  %v2898_v21 = vsub.f32 %v2866_v33, %v2878_v16 }
0x1bc0   :  { %v2907_v22 = vmul.f32 1.442695, %v2898_v21 }
0x1bc1   :  { %v2887_v23 = vpop.xlane.xlu1 %2886  ;;  %v2881_v45 = vpop.xlane.xlu0 %2880 }
0x1bc2   :  { %6083 = vpow2.f32 %v2907_v22  ;;  %v2901_v30 = vsub.f32 %v2869_v46, %v2887_v23  ;;  %v2899_v2 = vsub.f32 %v2867_v43, %v2881_v45 }
0x1bc4   :  { %v2909_v32 = vmul.f32 1.442695, %v2899_v2  ;;  %v2913_v24 = vmul.f32 1.442695, %v2901_v30 }
0x1bc5   :  { %v3013_v14 = vpop.permute.xlu1 %3012  ;;  %v2884_v55 = vpop.xlane.xlu0 %2883 }
0x1bc6   :  { %v2900_v61 = vsub.f32 %v2868_v49, %v2884_v55  ;;  %5638 = vmatpush3.bf16.msra.mxu1 %v3013_v14  ;;  %6085 = vpow2.f32 %v2909_v32 }
0x1bc7   :  { %5649 = vmatprep.subr.bf16.mxu1 %v6248_v13  ;;  %6087 = vpow2.f32 %v2913_v24 }
0x1bc8   :  { %v6082_v18 = vpop.eup %6081  ;;  %v2911_v25 = vmul.f32 1.442695, %v2900_v61 }
0x1bc9   :  { %v2890_v31 = vpop.xlane.xlu0 %2889  ;;  %v2921_v34 = vsel %vm480_vm9, %v6082_v18, 0.0 }
0x1bca   :  { %v2902_v26 = vsub.f32 %v2870_v56, %v2890_v31  ;;  %2922 = vadd.xlane.f32.xlu0 %v2921_v34  ;;  %6089 = vpow2.f32 %v2911_v25  ;;  %v2629_v31 = vld [vmem:[%s7641_s4 + $0x180] sm:$0xff]  ;;  %v2630_v34 = vld [vmem:[%s7641_s4 + $0x188] sm:$0xff] }
0x1bcc   :  { %v6084_v17 = vpop.eup %6083  ;;  %v2915_v28 = vmul.f32 1.442695, %v2902_v26  ;;  %v3186_v26 = vpack.c.bf16 %v2630_v34, %v2629_v31 }
0x1bcd   :  { %v2893_v29 = vpop.xlane.xlu0 %2892  ;;  %v2924_v20 = vsel %vm480_vm9, %v6084_v17, 0.0 }
0x1bce   :  { %v2903_v33 = vsub.f32 %v2871_v0, %v2893_v29  ;;  %2925 = vadd.xlane.f32.xlu0 %v2924_v20  ;;  %6091 = vpow2.f32 %v2915_v28  ;;  %v3061_v0 = vpop.permute.xlu1 %3060 }
0x1bd0   :  { %v6086_v36 = vpop.eup %6085  ;;  %v2917_v37 = vmul.f32 1.442695, %v2903_v33 }
0x1bd1   :  { %v2896_v38 = vpop.xlane.xlu0 %2895  ;;  %v2927_v40 = vsel %vm480_vm9, %v6086_v36, 0.0  ;;  %v6088_v41 = vpop.eup %6087 }
0x1bd2   :  { %v2904_v27 = vsub.f32 %v2872_v62, %v2896_v38  ;;  %2928 = vadd.xlane.f32.xlu0 %v2927_v40  ;;  %6093 = vpow2.f32 %v2917_v37  ;;  %v2933_v35 = vsel %vm480_vm9, %v6088_v41, 0.0  ;;  %v2632_v37 = vld [vmem:[%s7641_s4 + $0x198] sm:$0xff] }
0x1bd4   :  { %v2919_v42 = vmul.f32 1.442695, %v2904_v27  ;;  %v6090_v52 = vpop.eup %6089 }
0x1bd5   :  { %v2965_v43 = vpop.permute.xlu0 %2964  ;;  %v2930_v39 = vsel %vm480_vm9, %v6090_v52, 0.0 }
0x1bd6   :  { %5632 = vmatpush3.bf16.msra.mxu0 %v2965_v43  ;;  %2934 = vadd.xlane.f32.xlu0 %v2933_v35  ;;  %6095 = vpow2.f32 %v2919_v42 }
0x1bd7   :  { %5643 = vmatprep.subr.bf16.mxu0 %v6248_v13 }
0x1bd8   :  { %v6092_v44 = vpop.eup %6091 }
0x1bd9   :  { %v2936_v46 = vsel %vm480_vm9, %v6092_v44, 0.0 }
0x1bda   :  { %2931 = vadd.xlane.f32.xlu0 %v2930_v39 }
0x1bdc   :  { %v6094_v48 = vpop.eup %6093 }
0x1bdd   :  { %v2939_v47 = vsel %vm480_vm9, %v6094_v48, 0.0 }
0x1bde   :  { %2937 = vadd.xlane.f32.xlu0 %v2936_v46 }
0x1be0   :  { %v6096_v49 = vpop.eup %6095 }
0x1be1   :  { %v2942_v58 = vsel %vm480_vm9, %v6096_v49, 0.0 }
0x1be2   :  { %2940 = vadd.xlane.f32.xlu0 %v2939_v47 }
0x1be6   :  { %2943 = vadd.xlane.f32.xlu0 %v2942_v58 }
0x1bfc   :  { %3108 = vrot.lane.b32.xlu0 %v7022_v9, %s6263_s18 }
0x1c57   :  { %v2923_v50 = vpop.xlane.xlu0 %2922 }
0x1c58   :  { %6097 = vrcp.f32 %v2923_v50 }
0x1c5b   :  { %v2926_v51 = vpop.xlane.xlu0 %2925 }
0x1c5c   :  { %6099 = vrcp.f32 %v2926_v51 }
0x1c5f   :  { %v2929_v10 = vpop.xlane.xlu0 %2928 }
0x1c60   :  { %6101 = vrcp.f32 %v2929_v10 }
0x1c62   :  { %v6098_v15 = vpop.eup %6097 }
0x1c63   :  { %v2935_v53 = vpop.xlane.xlu0 %2934  ;;  %v2953_v56 = vmul.f32 %v6098_v15, %v6082_v18 }
0x1c66   :  { %v6100_v54 = vpop.eup %6099 }
0x1c67   :  { %v2954_v57 = vmul.f32 %v6100_v54, %v6084_v17  ;;  %v2932_v59 = vpop.xlane.xlu0 %2931 }
0x1c68   :  { %6103 = vrcp.f32 %v2932_v59 }
0x1c69   :  { %v2961_v60 = vpack.c.bf16 %v2954_v57, %v2953_v56  ;;  %6105 = vrcp.f32 %v2935_v53 }
0x1c6a   :  { %v6102_v3 = vpop.eup %6101 }
0x1c6b   :  { %5634 = vmatmul.mubr.msk.bf16.vlgmr.msra.gmra.mrb[80].mxu0 %vm480_vm9, %v2961_v60  ;;  %v2938_v9 = vpop.xlane.xlu0 %2937  ;;  %v2955_v4 = vmul.f32 %v6102_v3, %v6086_v36  ;;  %v2631_v36 = vld [vmem:[%s7641_s4 + $0x190] sm:$0xff] }
0x1c6c   :  { %5644 = vmatpush3.bf16.msra.mxu0 %v3061_v0  ;;  %5645 = vmatprep.mubr.msk.bf16.mxu0 %vm6249_vm6, %v6248_v13  ;;  %6107 = vrcp.f32 %v2938_v9  ;;  %v3187_v27 = vpack.c.bf16 %v2632_v37, %v2631_v36 }
0x1c6d   :  { %5655 = vmatprep.subr.bf16.mxu0 %v6248_v13 }
0x1c6f   :  { %v2941_v1 = vpop.xlane.xlu0 %2940 }
0x1c70   :  { %6109 = vrcp.f32 %v2941_v1 }
0x1c72   :  { %v6104_v62 = vpop.eup %6103 }
0x1c73   :  { %v2956_v5 = vmul.f32 %v6104_v62, %v6090_v52  ;;  %v2944_v6 = vpop.xlane.xlu0 %2943  ;;  %v6106_v7 = vpop.eup %6105 }
0x1c74   :  { %6111 = vrcp.f32 %v2944_v6  ;;  %v2957_v21 = vmul.f32 %v6106_v7, %v6088_v41 }
0x1c75   :  { %v3011_v11 = vpack.c.bf16 %v2956_v5, %v2955_v4 }
0x1c76   :  { %v6108_v16 = vpop.eup %6107 }
0x1c77   :  { %v2958_v22 = vmul.f32 %v6108_v16, %v6092_v44  ;;  %5640 = vmatmul.mubr.msk.bf16.vlgmr.msra.gmra.mrb[84].mxu1 %vm480_vm9, %v3011_v11  ;;  %v3109_v23 = vpop.permute.xlu0 %3108 }
0x1c78   :  { %5650 = vmatpush3.bf16.msra.mxu1 %v3109_v23  ;;  %5651 = vmatprep.mubr.msk.bf16.mxu1 %vm6249_vm6, %v6248_v13  ;;  %v3259_v23 = vld [vmem:[%s7640_s3 + $0x50] sm:$0xff] }
0x1c79   :  { %v3059_v45 = vpack.c.bf16 %v2958_v22, %v2957_v21  ;;  %5663 = vmatprep.subr.bf16.mxu1 %v6248_v13 }
0x1c7a   :  { %v6110_v30 = vpop.eup %6109 }
0x1c7b   :  { %5646 = vmatmul.mubr.msk.bf16.vlgmr.msra.gmra.mrb[84].mxu0 %vm480_vm9, %v3059_v45  ;;  %v2959_v32 = vmul.f32 %v6110_v30, %v6094_v48  ;;  %v3260_v45 = vld [vmem:[%s7640_s3 + $0x58] sm:$0xff] }
0x1c7c   :  { %5659 = vmatprep.mubr.msk.bf16.mxu0 %vm6249_vm6, %v6248_v13  ;;  %5656 = vmatpush3.bf16.msra.mxu0 %v3186_v26  ;;  %v3271_v30 = vpack.c.bf16 %v3260_v45, %v3259_v23  ;;  %v5138_v23 = vld [vmem:[%s7641_s4 + $0x246] ss:$0 sm:$0xff] }
0x1c7d   :  { %5657 = vmatprep.subr.bf16.mxu0 %v6248_v13 }
0x1c7e   :  { %v6112_v2 = vpop.eup %6111 }
0x1c7f   :  { %v2960_v24 = vmul.f32 %v6112_v2, %v6096_v49  ;;  %v3261_v2 = vld [vmem:[%s7641_s4 + $0x1c0] sm:$0xff] }
0x1c80   :  { %5658 = vmatpush3.bf16.msra.mxu0 %v3187_v27 }
0x1c81   :  { %v3107_v14 = vpack.c.bf16 %v2960_v24, %v2959_v32  ;;  %5671 = vmatprep.subr.bf16.mxu0 %v6248_v13  ;;  %v3262_v32 = vld [vmem:[%s7641_s4 + $0x1c8] sm:$0xff]  ;;  %v3263_v24 = vld [vmem:[%s7641_s4 + $0x1d0] sm:$0xff] }
0x1c83   :  { %5652 = vmatmul.mubr.msk.bf16.vlgmr.msra.gmra.mrb[88].mxu1 %vm480_vm9, %v3107_v14  ;;  %v3319_v14 = vpack.c.bf16 %v3262_v32, %v3261_v2 }
0x1c84   :  { %5667 = vmatprep.mubr.msk.bf16.mxu1 %vm6249_vm6, %v6248_v13 }
0x1d3e   :  { %v3004_v55 = vpop.f32.mrb[80].mxu0 }
0x1d3f   :  { %v5635_v61 = vpop.f32.mrb[81].mxu0 }
0x1d40   :  { %v3007_v18 = vpop.f32.mrb[82].mxu0 }
0x1d41   :  { %v5636_v25 = vpop.f32.mrb[83].mxu0 }
0x1d4a   :  { %v3052_v17 = vpop.f32.mrb[84].mxu1 }
0x1d4b   :  { %v5641_v28 = vpop.f32.mrb[85].mxu1 }
0x1d4c   :  { %v3055_v29 = vpop.f32.mrb[86].mxu1 }
0x1d4d   :  { %v5912_v20 = vpack.i.bf16 %v3055_v29, %v3052_v17  ;;  %v5642_v33 = vpop.f32.mrb[87].mxu1 }
0x1d4e   :  { %v3100_v38 = vpop.f32.mrb[84].mxu0  ;;  %v5135_v33 = vld [vmem:[%s7641_s4 + $0x249] ss:$0 sm:$0xff] }
0x1d4f   :  { %v5647_v40 = vpop.f32.mrb[85].mxu0  ;;  %5913 = vrot.lane.b32.xlu1 %v5912_v20, %s6258_s9 }
0x1d50   :  { %v3103_v41 = vpop.f32.mrb[86].mxu0  ;;  %v3265_v40 = vld [vmem:[%s7641_s4 + $0x1e0] sm:$0xff] }
0x1d51   :  { %v5917_v42 = vpack.i.bf16 %v3103_v41, %v3100_v38  ;;  %v5648_v43 = vpop.f32.mrb[87].mxu0  ;;  %v3266_v41 = vld [vmem:[%s7641_s4 + $0x1e8] sm:$0xff] }
0x1d52   :  { %v3267_v43 = vld [vmem:[%s7641_s4 + $0x1f0] sm:$0xff] }
0x1d53   :  { %5918 = vrot.lane.b32.xlu0 %v5917_v42, %s6259_s14  ;;  %v3321_v42 = vpack.c.bf16 %v3266_v41, %v3265_v40 }
0x1d56   :  { %v3148_v35 = vpop.f32.mrb[88].mxu1 }
0x1d57   :  { %v5653_v52 = vpop.f32.mrb[89].mxu1 }
0x1d58   :  { %v3151_v39 = vpop.f32.mrb[90].mxu1 }
0x1d59   :  { %v5922_v44 = vpack.i.bf16 %v3151_v39, %v3148_v35  ;;  %v5654_v46 = vpop.f32.mrb[91].mxu1  ;;  %v3268_v35 = vld [vmem:[%s7641_s4 + $0x1f8] sm:$0xff] }
0x1d5a   :  { %v3322_v52 = vpack.c.bf16 %v3268_v35, %v3267_v43 }
0x1d5b   :  { %5923 = vrot.lane.b32.xlu1 %v5922_v44, %s6260_s15 }
0x1dc1   :  { %v5914_v48 = vpop.permute.xlu1 %5913 }
0x1dc2   :  { %v5916_v49 = vunpack.i.h.bf16 %v5914_v48  ;;  %v5915_v58 = vunpack.i.l.bf16 %v5914_v48 }
0x1dc4   :  { %v3180_v15 = vsel %vm272_vm8, %v3007_v18, %v5916_v49  ;;  %v3179_v53 = vsel %vm272_vm8, %v3004_v55, %v5915_v58  ;;  %v3264_v55 = vld [vmem:[%s7641_s4 + $0x1d8] sm:$0xff] }
0x1dc5   :  { %v5919_v47 = vpop.permute.xlu0 %5918  ;;  %v3320_v61 = vpack.c.bf16 %v3264_v55, %v3263_v24 }
0x1dc6   :  { %v5921_v50 = vunpack.i.h.bf16 %v5919_v47  ;;  %v5920_v51 = vunpack.i.l.bf16 %v5919_v47 }
0x1dc8   :  { %v3181_v57 = vsel %vm480_vm9, %v3179_v53, %v5920_v51  ;;  %v3182_v59 = vsel %vm480_vm9, %v3180_v15, %v5921_v50 }
0x1dcd   :  { %v5924_v10 = vpop.permute.xlu1 %5923 }
0x1dce   :  { %v5926_v54 = vunpack.i.h.bf16 %v5924_v10  ;;  %v5925_v56 = vunpack.i.l.bf16 %v5924_v10 }
0x1dd0   :  { %v3184_v60 = vsel %vm789_vm10, %v3182_v59, %v5926_v54  ;;  %v3183_v0 = vsel %vm789_vm10, %v3181_v57, %v5925_v56 }
0x1dd1   :  { %v3185_v9 = vpack.c.bf16 %v3184_v60, %v3183_v0  ;;  %v3392_v0 = vld [vmem:[%s7639_s2 + $0x60] sm:$0xff] }
0x1dd3   :  { %5660 = vmatmul.mubr.msk.bf16.vlgmr.msra.gmra.mrb[88].mxu0 %vm153_vm5, %v3185_v9  ;;  %v3393_v9 = vld [vmem:[%s7639_s2 + $0x68] sm:$0xff] }
0x1dd4   :  { %5679 = vmatprep.mubr.msk.bf16.mxu0 %vm6249_vm6, %v6248_v13  ;;  %5672 = vmatpush3.bf16.msra.mxu0 %v3319_v14 }
0x1dd5   :  { %5673 = vmatprep.subr.bf16.mxu0 %v6248_v13 }
0x1dd8   :  { %5674 = vmatpush3.bf16.msra.mxu0 %v3320_v61 }
0x1dd9   :  { %5675 = vmatprep.subr.bf16.mxu0 %v6248_v13 }
0x1ddc   :  { %5676 = vmatpush3.bf16.msra.mxu0 %v3321_v42 }
0x1ddd   :  { %5677 = vmatprep.subr.bf16.mxu0 %v6248_v13 }
0x1de0   :  { %5678 = vmatpush3.bf16.msra.mxu0 %v3322_v52  ;;  %v6207_v52 = vld [vmem:[%s7638_s1 + $0x40] sm:$0xff] }
0x1de1   :  { %5697 = vmatprep.subr.bf16.mxu0 %v6248_v13 }
0x1ea6   :  { %v3225_v1 = vpop.f32.mrb[88].mxu0 }
0x1ea7   :  { %v7136_v3 = vadd.f32 %v3225_v1, %v6957_v8  ;;  %v5661_v62 = vpop.f32.mrb[89].mxu0  ;;  %v3257_v8 = vld [vmem:[%s7640_s3 + $0x40] sm:$0xff]  ;;  %v3397_v1 = vpack.c.bf16 %v3393_v9, %v3392_v0 }
0x1ea8   :  { %v3228_v4 = vpop.f32.mrb[90].mxu0  ;;  %v3395_v62 = vld [vmem:[%s7639_s2 + $0x78] sm:$0xff]  ;;  %v6210_v0 = vld [vmem:[%s7638_s1 + $0x60] sm:$0xff] }
0x1ea9   :  { %v7139_v5 = vadd.f32 %v3228_v4, %v6960_v12  ;;  %v5662_v6 = vpop.f32.mrb[91].mxu0  ;;  %v3235_v7 = vmul.f32 %v7136_v3, %v7136_v3  ;;  %v3258_v12 = vld [vmem:[%s7640_s3 + $0x48] sm:$0xff] }
0x1eaa   :  { %v3270_v22 = vpack.c.bf16 %v3258_v12, %v3257_v8 }
0x1eab   :  { %v3237_v11 = vsel %vm153_vm5, %v3235_v7, 0.0  ;;  %v3236_v16 = vmul.f32 %v7139_v5, %v7139_v5 }
0x1eac   :  { %3238 = vadd.xlane.f32.xlu0 %v3237_v11  ;;  %5664 = vmatpush3.bf16.msra.mxu1 %v3270_v22 }
0x1ead   :  { %v3240_v21 = vsel %vm153_vm5, %v3236_v16, 0.0  ;;  %5665 = vmatprep.subr.bf16.mxu1 %v6248_v13 }
0x1eae   :  { %3241 = vadd.xlane.f32.xlu1 %v3240_v21 }
0x1eb0   :  { %5666 = vmatpush3.bf16.msra.mxu1 %v3271_v30 }
0x1eb1   :  { %5683 = vmatprep.subr.bf16.mxu1 %v6248_v13 }
0x1f39   :  { %v3239_v18 = vpop.xlane.xlu0 %3238 }
0x1f3a   :  { %v3243_v25 = vmul.f32 0.03125, %v3239_v18 }
0x1f3b   :  { %v3242_v31 = vpop.xlane.xlu1 %3241 }
0x1f3c   :  { %v3245_v34 = vadd.f32 1e-06, %v3243_v25  ;;  %v3244_v26 = vmul.f32 0.03125, %v3242_v31 }
0x1f3e   :  { %6113 = vrsqrt.f32 %v3245_v34  ;;  %v3246_v17 = vadd.f32 1e-06, %v3244_v26 }
0x1f40   :  { %6115 = vrsqrt.f32 %v3246_v17 }
0x1f48   :  { %v6114_v28 = vpop.eup %6113 }
0x1f49   :  { %v3249_v29 = vmul.f32 %v6114_v28, %v7136_v3 }
0x1f4a   :  { %v6116_v20 = vpop.eup %6115 }
0x1f4b   :  { %v3250_v36 = vmul.f32 %v6116_v20, %v7139_v5  ;;  %v3255_v37 = vmul.f32 %v5135_v33, %v3249_v29 }
0x1f4d   :  { %v3256_v38 = vmul.f32 %v5135_v33, %v3250_v36 }
0x1f4f   :  { %v3269_v27 = vpack.c.bf16 %v3256_v38, %v3255_v37 }
0x1f51   :  { %5668 = vmatmul.mubr.msk.bf16.vlgmr.msra.gmra.mrb[92].mxu1 %vm153_vm5, %v3269_v27 }
0x1f52   :  { %5687 = vmatprep.mubr.msk.bf16.mxu1 %vm6249_vm6, %v6248_v13  ;;  %5684 = vmatpush3.bf16.msra.mxu1 %v3397_v1 }
0x1f53   :  { %5685 = vmatprep.subr.bf16.mxu1 %v6248_v13 }
0x2024   :  { %v3309_v39 = vpop.f32.mrb[92].mxu1 }
0x2025   :  { %v5669_v44 = vpop.f32.mrb[93].mxu1  ;;  %v3316_v48 = vmax.f32 %v3309_v39, 0.0 }
0x2026   :  { %v3312_v46 = vpop.f32.mrb[94].mxu1 }
0x2027   :  { %v3317_v47 = vmax.f32 %v3312_v46, 0.0  ;;  %v5670_v49 = vpop.f32.mrb[95].mxu1 }
0x2029   :  { %v3318_v58 = vpack.c.bf16 %v3317_v47, %v3316_v48  ;;  %v6208_v48 = vld [vmem:[%s7638_s1 + $0x48] sm:$0xff] }
0x202b   :  { %5680 = vmatmul.mubr.msk.bf16.vlgmr.msra.gmra.mrb[92].mxu0 %vm70_vm4, %v3318_v58 }
0x202c   :  { %5699 = vmatprep.mubr.msk.bf16.mxu0 %vm6249_vm6, %v6248_v13 }
0x20fe   :  { %v3360_v50 = vpop.f32.mrb[92].mxu0 }
0x20ff   :  { %v7201_v51 = vadd.f32 %v3360_v50, %v7136_v3  ;;  %v5681_v10 = vpop.f32.mrb[93].mxu0  ;;  %v3394_v3 = vld [vmem:[%s7639_s2 + $0x70] sm:$0xff] }
0x2100   :  { %v3363_v15 = vpop.f32.mrb[94].mxu0  ;;  %v3398_v4 = vpack.c.bf16 %v3395_v62, %v3394_v3  ;;  %v6211_v62 = vld [vmem:[%s7638_s1 + $0x58] sm:$0xff] }
0x2101   :  { %v7204_v53 = vadd.f32 %v3363_v15, %v7139_v5  ;;  %v5682_v54 = vpop.f32.mrb[95].mxu0  ;;  %v3370_v56 = vmul.f32 %v7201_v51, %v7201_v51 }
0x2102   :  { %5686 = vmatpush3.bf16.msra.mxu1 %v3398_v4  ;;  %v6209_v54 = vld [vmem:[%s7638_s1 + $0x50] sm:$0xff] }
0x2103   :  { %v3372_v57 = vsel %vm153_vm5, %v3370_v56, 0.0  ;;  %v3371_v59 = vmul.f32 %v7204_v53, %v7204_v53  ;;  %5691 = vmatprep.subr.bf16.mxu1 %v6248_v13 }
0x2104   :  { %3373 = vadd.xlane.f32.xlu0 %v3372_v57 }
0x2105   :  { %v3375_v60 = vsel %vm153_vm5, %v3371_v59, 0.0 }
0x2108   :  { %3376 = vadd.xlane.f32.xlu0 %v3375_v60 }
0x2191   :  { %v3374_v5 = vpop.xlane.xlu0 %3373 }
0x2192   :  { %v3378_v6 = vmul.f32 0.03125, %v3374_v5 }
0x2194   :  { %v3380_v7 = vadd.f32 1e-06, %v3378_v6 }
0x2195   :  { %v3377_v11 = vpop.xlane.xlu0 %3376 }
0x2196   :  { %6117 = vrsqrt.f32 %v3380_v7  ;;  %v3379_v16 = vmul.f32 0.03125, %v3377_v11 }
0x2198   :  { %v3381_v21 = vadd.f32 1e-06, %v3379_v16 }
0x219a   :  { %6119 = vrsqrt.f32 %v3381_v21 }
0x21a0   :  { %v6118_v8 = vpop.eup %6117 }
0x21a1   :  { %v3384_v12 = vmul.f32 %v6118_v8, %v7201_v51  ;;  %v6212_v8 = vld [vmem:[%s7638_s1 + $0x68] sm:$0xff] }
0x21a3   :  { %v3390_v30 = vmul.f32 %v5138_v23, %v3384_v12 }
0x21a4   :  { %v6120_v22 = vpop.eup %6119 }
0x21a5   :  { %v3385_v45 = vmul.f32 %v6120_v22, %v7204_v53 }
0x21a7   :  { %v3391_v2 = vmul.f32 %v5138_v23, %v3385_v45  ;;  %v6213_v45 = vld [vmem:[%s7638_s1 + $0x70] sm:$0xff] }
0x21a9   :  { %v3396_v32 = vpack.c.bf16 %v3391_v2, %v3390_v30 }
0x21ab   :  { %5688 = vmatmul.mubr.msk.bf16.vlgmr.msra.gmra.mrb[96].mxu1 %vm153_vm5, %v3396_v32  ;;  %v6214_v32 = vld [vmem:[%s7638_s1 + $0x78] sm:$0xff] }
0x21ac   :  { %5693 = vmatprep.mubr.msk.bf16.mxu1 %vm6249_vm6, %v6248_v13 }
0x227e   :  { %v3436_v24 = vpop.f32.mrb[96].mxu1 }
0x227f   :  { %3449 = vrot.lane.b32.xlu1 %v3436_v24, %s6250_s27  ;;  %v5689_v14 = vpop.f32.mrb[97].mxu1 }
0x2280   :  { %v3439_v55 = vpop.f32.mrb[98].mxu1 }
0x2281   :  { %v7235_v61 = vpack.c.bf16 %v3439_v55, %v3436_v24  ;;  %3451 = vrot.lane.b32.xlu0 %v3439_v55, %s6250_s27  ;;  %v5690_v18 = vpop.f32.mrb[99].mxu1 }
0x2283   :  { %3538 = vrot.lane.b32.xlu1 %v7235_v61, %s6251_s28 }
0x2285   :  { %3638 = vrot.lane.b32.xlu0 %v7235_v61, %s6253_s30 }
0x2287   :  { %3588 = vrot.lane.b32.xlu1 %v7235_v61, %s6252_s29 }
0x22f1   :  { %v3450_v25 = vpop.permute.xlu1 %3449 }
0x22f2   :  { %3455 = vxpose.xlu1.b32.start [1/2] (short) (narrow) %v3450_v25, 32 }
0x22f3   :  { %v3452_v31 = vpop.permute.xlu0 %3451 }
0x22f5   :  { %v3539_v34 = vpop.permute.xlu1 %3538 }
0x22f6   :  { %3456 = vxpose.xlu1.b32.end [2/2] (short) (narrow) %v3452_v31, 32 }
0x22f7   :  { %v3639_v43 = vpop.permute.xlu0 %3638 }
0x22f9   :  { %v3589_v26 = vpop.permute.xlu1 %3588 }
0x2372   :  { %v3471_v17 = vpop.trf.xlu1 }
0x2373   :  { %v3488_v28 = vpack.c.bf16 %v3471_v17, %v3471_v17 }
0x2375   :  { %v3493_v29 = vsel %vm276_vm7, %v3488_v28, 0 }
0x2376   :  { %5692 = vmatpush3.bf16.msra.mxu1 %v3493_v29  ;;  %v3472_v20 = vpop.trf.xlu1 }
0x2377   :  { %v3536_v33 = vpack.c.bf16 %v3472_v20, %v3472_v20  ;;  %5703 = vmatprep.subr.bf16.mxu1 %v6248_v13 }
0x2379   :  { %v3544_v36 = vsel %vm276_vm7, %v3536_v33, 0  ;;  %5694 = vmatmul.mubr.msk.bf16.vlgmr.msra.gmra.mrb[100].mxu1 %vm272_vm8, %v7235_v61 }
0x237a   :  { %5698 = vmatpush3.bf16.msra.mxu0 %v3544_v36  ;;  %v3473_v37 = vpop.trf.xlu1  ;;  %5705 = vmatprep.mubr.msk.bf16.mxu1 %vm6249_vm6, %v6248_v13 }
0x237b   :  { %v3587_v38 = vpack.c.bf16 %v3473_v37, %v3473_v37  ;;  %5709 = vmatprep.subr.bf16.mxu0 %v6248_v13 }
0x237d   :  { %v3594_v27 = vsel %vm276_vm7, %v3587_v38, 0  ;;  %5700 = vmatmul.mubr.msk.bf16.vlgmr.msra.gmra.mrb[96].mxu0 %vm272_vm8, %v3539_v34 }
0x237e   :  { %5704 = vmatpush3.bf16.msra.mxu1 %v3594_v27  ;;  %v3474_v40 = vpop.trf.xlu1  ;;  %5711 = vmatprep.mubr.msk.bf16.mxu0 %vm6249_vm6, %v6248_v13 }
0x237f   :  { %v3637_v41 = vpack.c.bf16 %v3474_v40, %v3474_v40  ;;  %5715 = vmatprep.subr.bf16.mxu1 %v6248_v13 }
0x2381   :  { %v3644_v42 = vsel %vm276_vm7, %v3637_v41, 0  ;;  %5706 = vmatmul.mubr.msk.bf16.vlgmr.msra.gmra.mrb[104].mxu1 %vm272_vm8, %v3589_v26 }
0x2382   :  { %5710 = vmatpush3.bf16.msra.mxu0 %v3644_v42  ;;  %5717 = vmatprep.mubr.msk.bf16.mxu1 %vm6249_vm6, %v6248_v13 }
0x2383   :  { %5721 = vmatprep.subr.bf16.mxu0 %v6248_v13 }
0x2385   :  { %5712 = vmatmul.mubr.msk.bf16.vlgmr.msra.gmra.mrb[100].mxu0 %vm272_vm8, %v3639_v43 }
0x2386   :  { %5723 = vmatprep.mubr.msk.bf16.mxu0 %vm6249_vm6, %v6248_v13 }
0x244c   :  { %v3529_v35 = vpop.f32.mrb[100].mxu1 }
0x244d   :  { %v3687_v39 = vadd.f32 %v6207_v52, %v3529_v35  ;;  %v5695_v44 = vpop.f32.mrb[101].mxu1 }
0x244e   :  { %v3532_v46 = vpop.f32.mrb[102].mxu1 }
0x244f   :  { %v3688_v47 = vadd.f32 %v6208_v48, %v3532_v46  ;;  %v5696_v49 = vpop.f32.mrb[103].mxu1  ;;  %v3695_v58 = vsel %vm480_vm9, %v3687_v39, -inf }
0x2450   :  { %v3580_v50 = vpop.f32.mrb[96].mxu0  ;;  %3696 = vmax.xlane.f32.xlu0 %v3695_v58 }
0x2451   :  { %v5701_v10 = vpop.f32.mrb[97].mxu0  ;;  %v3689_v56 = vadd.f32 %v6209_v54, %v3580_v50  ;;  %v3698_v59 = vsel %vm480_vm9, %v3688_v47, -inf }
0x2452   :  { %v3583_v15 = vpop.f32.mrb[98].mxu0 }
0x2453   :  { %v5702_v57 = vpop.f32.mrb[99].mxu0  ;;  %v3690_v4 = vadd.f32 %v6211_v62, %v3583_v15  ;;  %v3701_v6 = vsel %vm480_vm9, %v3689_v56, -inf }
0x2454   :  { %3699 = vmax.xlane.f32.xlu0 %v3698_v59  ;;  %v3630_v60 = vpop.f32.mrb[104].mxu1 }
0x2455   :  { %v3691_v9 = vadd.f32 %v6210_v0, %v3630_v60  ;;  %v5707_v1 = vpop.f32.mrb[105].mxu1  ;;  %v3704_v23 = vsel %vm480_vm9, %v3690_v4, -inf }
0x2456   :  { %v3633_v3 = vpop.f32.mrb[106].mxu1 }
0x2457   :  { %v5708_v5 = vpop.f32.mrb[107].mxu1  ;;  %v3707_v7 = vsel %vm480_vm9, %v3691_v9, -inf  ;;  %v3692_v12 = vadd.f32 %v6212_v8, %v3633_v3 }
0x2458   :  { %v3680_v11 = vpop.f32.mrb[100].mxu0  ;;  %3702 = vmax.xlane.f32.xlu0 %v3701_v6  ;;  %3708 = vmax.xlane.f32.xlu1 %v3707_v7 }
0x2459   :  { %v5713_v16 = vpop.f32.mrb[101].mxu0  ;;  %v3693_v30 = vadd.f32 %v6213_v45, %v3680_v11  ;;  %v3710_v2 = vsel %vm480_vm9, %v3692_v12, -inf }
0x245a   :  { %v3683_v21 = vpop.f32.mrb[102].mxu0 }
0x245b   :  { %v5714_v22 = vpop.f32.mrb[103].mxu0  ;;  %v3694_v24 = vadd.f32 %v6214_v32, %v3683_v21  ;;  %v3713_v14 = vsel %vm480_vm9, %v3693_v30, -inf }
0x245c   :  { %3705 = vmax.xlane.f32.xlu0 %v3704_v23 }
0x245d   :  { %v3716_v55 = vsel %vm480_vm9, %v3694_v24, -inf }
0x2460   :  { %3711 = vmax.xlane.f32.xlu0 %v3710_v2 }
0x2464   :  { %3714 = vmax.xlane.f32.xlu0 %v3713_v14 }
0x2468   :  { %3717 = vmax.xlane.f32.xlu0 %v3716_v55 }
0x2469   :  { %3832 = vrot.lane.b32.xlu1 %v7235_v61, %s6254_s22 }
0x246d   :  { %3880 = vrot.lane.b32.xlu1 %v7235_v61, %s6255_s23 }
0x247e   :  { %3784 = vrot.lane.b32.xlu0 %v7235_v61, %s6256_s24 }
0x24dd   :  { %v3697_v18 = vpop.xlane.xlu0 %3696 }
0x24de   :  { %v3719_v25 = vsub.f32 %v3687_v39, %v3697_v18 }
0x24e0   :  { %v3727_v31 = vmul.f32 1.442695, %v3719_v25 }
0x24e1   :  { %v3700_v34 = vpop.xlane.xlu0 %3699 }
0x24e2   :  { %6121 = vpow2.f32 %v3727_v31  ;;  %v3720_v26 = vsub.f32 %v3688_v47, %v3700_v34 }
0x24e4   :  { %v3729_v17 = vmul.f32 1.442695, %v3720_v26 }
0x24e5   :  { %v3703_v28 = vpop.xlane.xlu0 %3702  ;;  %v3709_v29 = vpop.xlane.xlu1 %3708 }
0x24e6   :  { %6123 = vpow2.f32 %v3729_v17  ;;  %v3721_v20 = vsub.f32 %v3689_v56, %v3703_v28  ;;  %v3723_v36 = vsub.f32 %v3691_v9, %v3709_v29 }
0x24e8   :  { %v3731_v33 = vmul.f32 1.442695, %v3721_v20  ;;  %v3735_v41 = vmul.f32 1.442695, %v3723_v36 }
0x24e9   :  { %v3706_v37 = vpop.xlane.xlu0 %3705  ;;  %v3833_v38 = vpop.permute.xlu1 %3832 }
0x24ea   :  { %6125 = vpow2.f32 %v3731_v33  ;;  %v3722_v27 = vsub.f32 %v3690_v4, %v3706_v37  ;;  %5722 = vmatpush3.bf16.msra.mxu0 %v3833_v38 }
0x24eb   :  { %5733 = vmatprep.subr.bf16.mxu0 %v6248_v13 }
0x24ec   :  { %v6122_v40 = vpop.eup %6121  ;;  %v3733_v42 = vmul.f32 1.442695, %v3722_v27 }
0x24ed   :  { %v3712_v43 = vpop.xlane.xlu0 %3711  ;;  %v3743_v35 = vsel %vm480_vm9, %v6122_v40, 0.0 }
0x24ee   :  { %6127 = vpow2.f32 %v3733_v42  ;;  %v3724_v52 = vsub.f32 %v3692_v12, %v3712_v43  ;;  %3744 = vadd.xlane.f32.xlu0 %v3743_v35 }
0x24ef   :  { %6129 = vpow2.f32 %v3735_v41 }
0x24f0   :  { %v6124_v39 = vpop.eup %6123  ;;  %v3737_v44 = vmul.f32 1.442695, %v3724_v52 }
0x24f1   :  { %v3715_v46 = vpop.xlane.xlu0 %3714  ;;  %v3746_v48 = vsel %vm480_vm9, %v6124_v39, 0.0 }
0x24f2   :  { %v3725_v47 = vsub.f32 %v3693_v30, %v3715_v46  ;;  %3747 = vadd.xlane.f32.xlu0 %v3746_v48  ;;  %6131 = vpow2.f32 %v3737_v44  ;;  %v3881_v30 = vpop.permute.xlu1 %3880  ;;  %v3444_v44 = vld [vmem:[%s7641_s4 + $0x128] sm:$0xff] }
0x24f4   :  { %v6126_v49 = vpop.eup %6125  ;;  %v3739_v58 = vmul.f32 1.442695, %v3725_v47 }
0x24f5   :  { %v3718_v50 = vpop.xlane.xlu0 %3717  ;;  %v3749_v10 = vsel %vm480_vm9, %v6126_v49, 0.0 }
0x24f6   :  { %v3726_v15 = vsub.f32 %v3694_v24, %v3718_v50  ;;  %3750 = vadd.xlane.f32.xlu0 %v3749_v10  ;;  %6133 = vpow2.f32 %v3739_v58  ;;  %v3445_v58 = vld [vmem:[%s7641_s4 + $0x130] sm:$0xff]  ;;  %v3446_v50 = vld [vmem:[%s7641_s4 + $0x138] sm:$0xff] }
0x24f8   :  { %v6128_v54 = vpop.eup %6127  ;;  %v3741_v56 = vmul.f32 1.442695, %v3726_v15  ;;  %v4007_v15 = vpack.c.bf16 %v3446_v50, %v3445_v58 }
0x24f9   :  { %v3785_v57 = vpop.permute.xlu0 %3784  ;;  %v3752_v59 = vsel %vm480_vm9, %v6128_v54, 0.0  ;;  %v6130_v60 = vpop.eup %6129 }
0x24fa   :  { %3753 = vadd.xlane.f32.xlu0 %v3752_v59  ;;  %5716 = vmatpush3.bf16.msra.mxu1 %v3785_v57  ;;  %6135 = vpow2.f32 %v3741_v56  ;;  %v3755_v0 = vsel %vm480_vm9, %v6130_v60, 0.0 }
0x24fb   :  { %5727 = vmatprep.subr.bf16.mxu1 %v6248_v13 }
0x24fc   :  { %v6132_v9 = vpop.eup %6131 }
0x24fd   :  { %v3758_v1 = vsel %vm480_vm9, %v6132_v9, 0.0 }
0x24fe   :  { %3756 = vadd.xlane.f32.xlu0 %v3755_v0 }
0x2500   :  { %v6134_v3 = vpop.eup %6133 }
0x2501   :  { %v3761_v62 = vsel %vm480_vm9, %v6134_v3, 0.0 }
0x2502   :  { %3759 = vadd.xlane.f32.xlu0 %v3758_v1 }
0x2504   :  { %v6136_v4 = vpop.eup %6135 }
0x2505   :  { %v3764_v5 = vsel %vm480_vm9, %v6136_v4, 0.0 }
0x2506   :  { %3762 = vadd.xlane.f32.xlu0 %v3761_v62 }
0x250a   :  { %3765 = vadd.xlane.f32.xlu0 %v3764_v5 }
0x2520   :  { %3928 = vrot.lane.b32.xlu0 %v7235_v61, %s6257_s25 }
0x257b   :  { %v3745_v6 = vpop.xlane.xlu0 %3744 }
0x257c   :  { %6137 = vrcp.f32 %v3745_v6 }
0x257f   :  { %v3748_v7 = vpop.xlane.xlu0 %3747 }
0x2580   :  { %6139 = vrcp.f32 %v3748_v7 }
0x2583   :  { %v3751_v11 = vpop.xlane.xlu0 %3750 }
0x2584   :  { %6141 = vrcp.f32 %v3751_v11 }
0x2586   :  { %v6138_v21 = vpop.eup %6137 }
0x2587   :  { %v3754_v16 = vpop.xlane.xlu0 %3753  ;;  %v3775_v12 = vmul.f32 %v6138_v21, %v6122_v40  ;;  %v4129_v21 = vld [vmem:[%s7640_s3 + $0xa8] sm:$0xff] }
0x2588   :  { %6143 = vrcp.f32 %v3754_v16  ;;  %v4128_v16 = vld [vmem:[%s7640_s3 + $0xa0] sm:$0xff] }
0x258a   :  { %v6140_v8 = vpop.eup %6139 }
0x258b   :  { %v3776_v22 = vmul.f32 %v6140_v8, %v6124_v39  ;;  %v3757_v23 = vpop.xlane.xlu0 %3756  ;;  %v3443_v39 = vld [vmem:[%s7641_s4 + $0x120] sm:$0xff] }
0x258c   :  { %6145 = vrcp.f32 %v3757_v23  ;;  %v4006_v47 = vpack.c.bf16 %v3444_v44, %v3443_v39 }
0x258d   :  { %v3783_v45 = vpack.c.bf16 %v3776_v22, %v3775_v12 }
0x258e   :  { %v6142_v61 = vpop.eup %6141 }
0x258f   :  { %5718 = vmatmul.mubr.msk.bf16.vlgmr.msra.gmra.mrb[108].mxu1 %vm480_vm9, %v3783_v45  ;;  %v3760_v2 = vpop.xlane.xlu0 %3759  ;;  %v3777_v24 = vmul.f32 %v6142_v61, %v6126_v49 }
0x2590   :  { %5728 = vmatpush3.bf16.msra.mxu1 %v3881_v30  ;;  %6147 = vrcp.f32 %v3760_v2  ;;  %5729 = vmatprep.mubr.msk.bf16.mxu1 %vm6249_vm6, %v6248_v13 }
0x2591   :  { %5739 = vmatprep.subr.bf16.mxu1 %v6248_v13 }
0x2592   :  { %v6144_v32 = vpop.eup %6143 }
0x2593   :  { %v3778_v14 = vmul.f32 %v6144_v32, %v6128_v54  ;;  %v3763_v55 = vpop.xlane.xlu0 %3762  ;;  %v4132_v32 = vpack.c.bf16 %v4129_v21, %v4128_v16 }
0x2594   :  { %6149 = vrcp.f32 %v3763_v55  ;;  %v4131_v55 = vld [vmem:[%s7640_s3 + $0xb8] sm:$0xff] }
0x2595   :  { %v3831_v18 = vpack.c.bf16 %v3778_v14, %v3777_v24  ;;  %v4130_v14 = vld [vmem:[%s7640_s3 + $0xb0] sm:$0xff] }
0x2596   :  { %v6146_v31 = vpop.eup %6145 }
0x2597   :  { %5724 = vmatmul.mubr.msk.bf16.vlgmr.msra.gmra.mrb[104].mxu0 %vm480_vm9, %v3831_v18  ;;  %v3766_v25 = vpop.xlane.xlu0 %3765  ;;  %v3779_v26 = vmul.f32 %v6146_v31, %v6130_v60  ;;  %v4133_v18 = vpack.c.bf16 %v4131_v55, %v4130_v14  ;;  %v6216_v55 = vld [vmem:[%s7638_s1 + $0x88] sm:$0xff] }
0x2598   :  { %6151 = vrcp.f32 %v3766_v25  ;;  %5735 = vmatprep.mubr.msk.bf16.mxu0 %vm6249_vm6, %v6248_v13 }
0x259a   :  { %v6148_v34 = vpop.eup %6147 }
0x259b   :  { %v3780_v17 = vmul.f32 %v6148_v34, %v6132_v9  ;;  %v3929_v28 = vpop.permute.xlu0 %3928 }
0x259c   :  { %5734 = vmatpush3.bf16.msra.mxu0 %v3929_v28 }
0x259d   :  { %v3879_v29 = vpack.c.bf16 %v3780_v17, %v3779_v26  ;;  %5747 = vmatprep.subr.bf16.mxu0 %v6248_v13 }
0x259e   :  { %v6150_v20 = vpop.eup %6149 }
0x259f   :  { %5730 = vmatmul.mubr.msk.bf16.vlgmr.msra.gmra.mrb[112].mxu1 %vm480_vm9, %v3879_v29  ;;  %v3781_v36 = vmul.f32 %v6150_v20, %v6134_v3 }
0x25a0   :  { %5743 = vmatprep.mubr.msk.bf16.mxu1 %vm6249_vm6, %v6248_v13  ;;  %5740 = vmatpush3.bf16.msra.mxu1 %v4006_v47 }
0x25a1   :  { %5741 = vmatprep.subr.bf16.mxu1 %v6248_v13 }
0x25a2   :  { %v6152_v33 = vpop.eup %6151 }
0x25a3   :  { %v3782_v37 = vmul.f32 %v6152_v33, %v6136_v4 }
0x25a4   :  { %5742 = vmatpush3.bf16.msra.mxu1 %v4007_v15 }
0x25a5   :  { %v3927_v38 = vpack.c.bf16 %v3782_v37, %v3781_v36  ;;  %5755 = vmatprep.subr.bf16.mxu1 %v6248_v13 }
0x25a7   :  { %5736 = vmatmul.mubr.msk.bf16.vlgmr.msra.gmra.mrb[108].mxu0 %vm480_vm9, %v3927_v38 }
0x25a8   :  { %5751 = vmatprep.mubr.msk.bf16.mxu0 %vm6249_vm6, %v6248_v13 }
0x2662   :  { %v3824_v27 = vpop.f32.mrb[108].mxu1 }
0x2663   :  { %v5719_v40 = vpop.f32.mrb[109].mxu1 }
0x2664   :  { %v3827_v41 = vpop.f32.mrb[110].mxu1  ;;  %v4078_v40 = vld [vmem:[%s7641_s4 + $0x168] sm:$0xff] }
0x2665   :  { %v5720_v42 = vpop.f32.mrb[111].mxu1 }
0x2666   :  { %v4079_v42 = vld [vmem:[%s7641_s4 + $0x170] sm:$0xff] }
0x266a   :  { %v3872_v43 = vpop.f32.mrb[104].mxu0 }
0x266b   :  { %v5725_v35 = vpop.f32.mrb[105].mxu0 }
0x266c   :  { %v3875_v52 = vpop.f32.mrb[106].mxu0 }
0x266d   :  { %v5927_v46 = vpack.i.bf16 %v3875_v52, %v3872_v43  ;;  %v5726_v48 = vpop.f32.mrb[107].mxu0  ;;  %v4080_v43 = vld [vmem:[%s7641_s4 + $0x178] sm:$0xff] }
0x266e   :  { %v4083_v35 = vpack.c.bf16 %v4080_v43, %v4079_v42 }
0x266f   :  { %5928 = vrot.lane.b32.xlu1 %v5927_v46, %s6258_s9 }
0x2672   :  { %v3920_v49 = vpop.f32.mrb[112].mxu1 }
0x2673   :  { %v5731_v10 = vpop.f32.mrb[113].mxu1 }
0x2674   :  { %v3923_v54 = vpop.f32.mrb[114].mxu1  ;;  %v5149_v10 = vld [vmem:[%s7641_s4 + $0x248] ss:$0 sm:$0xff] }
0x2675   :  { %v5932_v56 = vpack.i.bf16 %v3923_v54, %v3920_v49  ;;  %v5732_v57 = vpop.f32.mrb[115].mxu1 }
0x2677   :  { %5933 = vrot.lane.b32.xlu0 %v5932_v56, %s6259_s14 }
0x267a   :  { %v3968_v59 = vpop.f32.mrb[108].mxu0 }
0x267b   :  { %v5737_v60 = vpop.f32.mrb[109].mxu0 }
0x267c   :  { %v3971_v0 = vpop.f32.mrb[110].mxu0 }
0x267d   :  { %v5937_v9 = vpack.i.bf16 %v3971_v0, %v3968_v59  ;;  %v5738_v1 = vpop.f32.mrb[111].mxu0 }
0x267f   :  { %5938 = vrot.lane.b32.xlu1 %v5937_v9, %s6260_s15 }
0x26e1   :  { %v5929_v3 = vpop.permute.xlu1 %5928 }
0x26e2   :  { %v5931_v4 = vunpack.i.h.bf16 %v5929_v3  ;;  %v5930_v5 = vunpack.i.l.bf16 %v5929_v3 }
0x26e4   :  { %v3999_v8 = vsel %vm272_vm8, %v3824_v27, %v5930_v5  ;;  %v4000_v12 = vsel %vm272_vm8, %v3827_v41, %v5931_v4  ;;  %v4077_v27 = vld [vmem:[%s7641_s4 + $0x160] sm:$0xff] }
0x26e5   :  { %v4082_v41 = vpack.c.bf16 %v4078_v40, %v4077_v27 }
0x26e7   :  { %5748 = vmatpush3.bf16.msra.mxu0 %v4082_v41  ;;  %v6219_v41 = vld [vmem:[%s7638_s1 + $0x98] sm:$0xff] }
0x26e8   :  { %5749 = vmatprep.subr.bf16.mxu0 %v6248_v13 }
0x26e9   :  { %v5934_v62 = vpop.permute.xlu0 %5933 }
0x26ea   :  { %v5936_v6 = vunpack.i.h.bf16 %v5934_v62  ;;  %v5935_v7 = vunpack.i.l.bf16 %v5934_v62 }
0x26eb   :  { %5750 = vmatpush3.bf16.msra.mxu0 %v4083_v35 }
0x26ec   :  { %v4002_v45 = vsel %vm480_vm9, %v4000_v12, %v5936_v6  ;;  %v4001_v30 = vsel %vm480_vm9, %v3999_v8, %v5935_v7  ;;  %5763 = vmatprep.subr.bf16.mxu0 %v6248_v13 }
0x26f1   :  { %v5939_v11 = vpop.permute.xlu1 %5938 }
0x26f2   :  { %v5941_v22 = vunpack.i.h.bf16 %v5939_v11  ;;  %v5940_v23 = vunpack.i.l.bf16 %v5939_v11 }
0x26f4   :  { %v4003_v2 = vsel %vm789_vm10, %v4001_v30, %v5940_v23  ;;  %v4004_v61 = vsel %vm789_vm10, %v4002_v45, %v5941_v22 }
0x26f5   :  { %v4005_v24 = vpack.c.bf16 %v4004_v61, %v4003_v2  ;;  %v6215_v61 = vld [vmem:[%s7638_s1 + $0x80] sm:$0xff] }
0x26f7   :  { %5744 = vmatmul.mubr.msk.bf16.vlgmr.msra.gmra.mrb[116].mxu1 %vm153_vm5, %v4005_v24 }
0x26f8   :  { %5756 = vmatpush3.bf16.msra.mxu1 %v4132_v32  ;;  %5759 = vmatprep.mubr.msk.bf16.mxu1 %vm6249_vm6, %v6248_v13 }
0x26f9   :  { %5757 = vmatprep.subr.bf16.mxu1 %v6248_v13 }
0x26fc   :  { %5758 = vmatpush3.bf16.msra.mxu1 %v4133_v18 }
0x26fd   :  { %5769 = vmatprep.subr.bf16.mxu1 %v6248_v13 }
0x26ff   :  { %5760 = vmatmul.mubr.msk.bf16.vlgmr.msra.gmra.mrb[120].mxu1 %vm153_vm5, %v7014_v63 }
0x2700   :  { %5771 = vmatprep.mubr.msk.bf16.mxu1 %vm6249_vm6, %v6248_v13 }
0x27ca   :  { %v4045_v25 = vpop.f32.mrb[116].mxu1 }
0x27cb   :  { %v7374_v31 = vadd.f32 %v4045_v25, %v7201_v51  ;;  %v5745_v34 = vpop.f32.mrb[117].mxu1 }
0x27cc   :  { %v4048_v26 = vpop.f32.mrb[118].mxu1 }
0x27cd   :  { %v7377_v17 = vadd.f32 %v4048_v26, %v7204_v53  ;;  %v5746_v28 = vpop.f32.mrb[119].mxu1  ;;  %v4055_v29 = vmul.f32 %v7374_v31, %v7374_v31 }
0x27cf   :  { %v4057_v20 = vsel %vm153_vm5, %v4055_v29, 0.0  ;;  %v4056_v63 = vmul.f32 %v7377_v17, %v7377_v17 }
0x27d0   :  { %4058 = vadd.xlane.f32.xlu0 %v4057_v20  ;;  %v6217_v20 = vld [vmem:[%s7638_s1 + $0x90] sm:$0xff] }
0x27d1   :  { %v4060_v33 = vsel %vm153_vm5, %v4056_v63, 0.0 }
0x27d2   :  { %4061 = vadd.xlane.f32.xlu1 %v4060_v33  ;;  %v4168_v51 = vpop.f32.mrb[120].mxu1 }
0x27d3   :  { %v5761_v36 = vpop.f32.mrb[121].mxu1 }
0x27d4   :  { %v4171_v37 = vpop.f32.mrb[122].mxu1 }
0x27d5   :  { %v7385_v38 = vpack.c.bf16 %v4171_v37, %v4168_v51  ;;  %v5762_v53 = vpop.f32.mrb[123].mxu1 }
0x285d   :  { %v4059_v52 = vpop.xlane.xlu0 %4058 }
0x285e   :  { %v4063_v39 = vmul.f32 0.03125, %v4059_v52 }
0x285f   :  { %v4062_v44 = vpop.xlane.xlu1 %4061 }
0x2860   :  { %v4065_v46 = vadd.f32 1e-06, %v4063_v39  ;;  %v4064_v48 = vmul.f32 0.03125, %v4062_v44 }
0x2862   :  { %6153 = vrsqrt.f32 %v4065_v46  ;;  %v4066_v47 = vadd.f32 1e-06, %v4064_v48  ;;  %v6220_v48 = vld [vmem:[%s7638_s1 + $0xa8] sm:$0xff] }
0x2864   :  { %6155 = vrsqrt.f32 %v4066_v47 }
0x286c   :  { %v6154_v49 = vpop.eup %6153 }
0x286d   :  { %v4069_v58 = vmul.f32 %v6154_v49, %v7374_v31 }
0x286e   :  { %v6156_v50 = vpop.eup %6155 }
0x286f   :  { %v4070_v15 = vmul.f32 %v6156_v50, %v7377_v17  ;;  %v4075_v54 = vmul.f32 %v5149_v10, %v4069_v58  ;;  %v6221_v50 = vld [vmem:[%s7638_s1 + $0xb0] sm:$0xff] }
0x2871   :  { %v4076_v56 = vmul.f32 %v5149_v10, %v4070_v15 }
0x2873   :  { %v4081_v57 = vpack.c.bf16 %v4076_v56, %v4075_v54  ;;  %v6222_v54 = vld [vmem:[%s7638_s1 + $0xb8] sm:$0xff] }
0x2875   :  { %5752 = vmatmul.mubr.msk.bf16.vlgmr.msra.gmra.mrb[112].mxu0 %vm153_vm5, %v4081_v57 }
0x2876   :  { %5765 = vmatprep.mubr.msk.bf16.mxu0 %vm6249_vm6, %v6248_v13 }
0x2948   :  { %v4121_v59 = vpop.f32.mrb[112].mxu0 }
0x2949   :  { %v5753_v60 = vpop.f32.mrb[113].mxu0 }
0x294a   :  { %v4124_v0 = vpop.f32.mrb[114].mxu0 }
0x294b   :  { %v4211_v9 = vpack.c.bf16 %v4124_v0, %v4121_v59  ;;  %v5754_v1 = vpop.f32.mrb[115].mxu0 }
0x294d   :  { %4312 = vrot.lane.b32.xlu1 %v4211_v9, %s6252_s29  ;;  %4262 = vrot.lane.b32.xlu0 %v4211_v9, %s6251_s28 }
0x2951   :  { %4362 = vrot.lane.b32.xlu0 %v4211_v9, %s6253_s30 }
0x2976   :  { %4179 = vxpose.xlu1.b32.start [1/2] (short) (narrow) %v4168_v51, 32 }
0x297a   :  { %4180 = vxpose.xlu1.b32.end [2/2] (short) (narrow) %v4171_v37, 32  ;;  %v6218_v37 = vld [vmem:[%s7638_s1 + $0xa0] sm:$0xff] }
0x29bf   :  { %v4313_v3 = vpop.permute.xlu1 %4312  ;;  %v4263_v8 = vpop.permute.xlu0 %4262 }
0x29c3   :  { %v4363_v30 = vpop.permute.xlu0 %4362 }
0x29f6   :  { %v4195_v62 = vpop.trf.xlu1 }
0x29f7   :  { %v4212_v4 = vpack.c.bf16 %v4195_v62, %v4195_v62 }
0x29f9   :  { %v4217_v5 = vsel %vm276_vm7, %v4212_v4, 0 }
0x29fa   :  { %5764 = vmatpush3.bf16.msra.mxu0 %v4217_v5  ;;  %v4196_v6 = vpop.trf.xlu1 }
0x29fb   :  { %v4260_v7 = vpack.c.bf16 %v4196_v6, %v4196_v6  ;;  %5775 = vmatprep.subr.bf16.mxu0 %v6248_v13 }
0x29fd   :  { %v4268_v11 = vsel %vm276_vm7, %v4260_v7, 0  ;;  %5766 = vmatmul.mubr.msk.bf16.vlgmr.msra.gmra.mrb[116].mxu0 %vm272_vm8, %v4211_v9 }
0x29fe   :  { %5770 = vmatpush3.bf16.msra.mxu1 %v4268_v11  ;;  %v4197_v16 = vpop.trf.xlu1  ;;  %5777 = vmatprep.mubr.msk.bf16.mxu0 %vm6249_vm6, %v6248_v13 }
0x29ff   :  { %v4311_v21 = vpack.c.bf16 %v4197_v16, %v4197_v16  ;;  %5781 = vmatprep.subr.bf16.mxu1 %v6248_v13 }
0x2a01   :  { %v4318_v12 = vsel %vm276_vm7, %v4311_v21, 0  ;;  %5772 = vmatmul.mubr.msk.bf16.vlgmr.msra.gmra.mrb[124].mxu1 %vm272_vm8, %v4263_v8 }
0x2a02   :  { %5776 = vmatpush3.bf16.msra.mxu0 %v4318_v12  ;;  %v4198_v22 = vpop.trf.xlu1  ;;  %5783 = vmatprep.mubr.msk.bf16.mxu1 %vm6249_vm6, %v6248_v13 }
0x2a03   :  { %v4361_v23 = vpack.c.bf16 %v4198_v22, %v4198_v22  ;;  %5787 = vmatprep.subr.bf16.mxu0 %v6248_v13 }
0x2a05   :  { %v4368_v45 = vsel %vm276_vm7, %v4361_v23, 0  ;;  %5778 = vmatmul.mubr.msk.bf16.vlgmr.msra.gmra.mrb[120].mxu0 %vm272_vm8, %v4313_v3 }
0x2a06   :  { %5782 = vmatpush3.bf16.msra.mxu1 %v4368_v45  ;;  %5789 = vmatprep.mubr.msk.bf16.mxu0 %vm6249_vm6, %v6248_v13 }
0x2a07   :  { %5793 = vmatprep.subr.bf16.mxu1 %v6248_v13 }
0x2a09   :  { %5784 = vmatmul.mubr.msk.bf16.vlgmr.msra.gmra.mrb[128].mxu1 %vm272_vm8, %v4363_v30 }
0x2a0a   :  { %5795 = vmatprep.mubr.msk.bf16.mxu1 %vm6249_vm6, %v6248_v13 }
0x2ad0   :  { %v4253_v2 = vpop.f32.mrb[116].mxu0 }
0x2ad1   :  { %v4411_v32 = vadd.f32 %v6215_v61, %v4253_v2  ;;  %v5767_v24 = vpop.f32.mrb[117].mxu0 }
0x2ad2   :  { %v4256_v14 = vpop.f32.mrb[118].mxu0 }
0x2ad3   :  { %v4412_v18 = vadd.f32 %v6216_v55, %v4256_v14  ;;  %v5768_v25 = vpop.f32.mrb[119].mxu0  ;;  %v4419_v34 = vsel %vm480_vm9, %v4411_v32, -inf }
0x2ad4   :  { %4420 = vmax.xlane.f32.xlu0 %v4419_v34  ;;  %v4304_v26 = vpop.f32.mrb[124].mxu1 }
0x2ad5   :  { %v5773_v28 = vpop.f32.mrb[125].mxu1  ;;  %v4413_v63 = vadd.f32 %v6217_v20, %v4304_v26  ;;  %v4422_v51 = vsel %vm480_vm9, %v4412_v18, -inf }
0x2ad6   :  { %v4307_v29 = vpop.f32.mrb[126].mxu1 }
0x2ad7   :  { %v5774_v33 = vpop.f32.mrb[127].mxu1  ;;  %v4414_v42 = vadd.f32 %v6219_v41, %v4307_v29  ;;  %v4425_v52 = vsel %vm480_vm9, %v4413_v63, -inf }
0x2ad8   :  { %4423 = vmax.xlane.f32.xlu0 %v4422_v51  ;;  %v4354_v36 = vpop.f32.mrb[120].mxu0 }
0x2ad9   :  { %v4415_v53 = vadd.f32 %v6218_v37, %v4354_v36  ;;  %v5779_v27 = vpop.f32.mrb[121].mxu0  ;;  %v4428_v58 = vsel %vm480_vm9, %v4414_v42, -inf }
0x2ada   :  { %v4357_v40 = vpop.f32.mrb[122].mxu0 }
0x2adb   :  { %v5780_v43 = vpop.f32.mrb[123].mxu0  ;;  %v4431_v35 = vsel %vm480_vm9, %v4415_v53, -inf  ;;  %v4416_v47 = vadd.f32 %v6220_v48, %v4357_v40 }
0x2adc   :  { %4432 = vmax.xlane.f32.xlu1 %v4431_v35  ;;  %4426 = vmax.xlane.f32.xlu0 %v4425_v52  ;;  %v4404_v39 = vpop.f32.mrb[128].mxu1 }
0x2add   :  { %v5785_v44 = vpop.f32.mrb[129].mxu1  ;;  %v4417_v10 = vadd.f32 %v6221_v50, %v4404_v39  ;;  %v4434_v15 = vsel %vm480_vm9, %v4416_v47, -inf }
0x2ade   :  { %v4407_v46 = vpop.f32.mrb[130].mxu1 }
0x2adf   :  { %v5786_v49 = vpop.f32.mrb[131].mxu1  ;;  %v4418_v56 = vadd.f32 %v6222_v54, %v4407_v46  ;;  %v4437_v57 = vsel %vm480_vm9, %v4417_v10, -inf }
0x2ae0   :  { %4429 = vmax.xlane.f32.xlu0 %v4428_v58 }
0x2ae1   :  { %v4440_v59 = vsel %vm480_vm9, %v4418_v56, -inf }
0x2ae4   :  { %4435 = vmax.xlane.f32.xlu0 %v4434_v15 }
0x2ae8   :  { %4438 = vmax.xlane.f32.xlu0 %v4437_v57 }
0x2aec   :  { %4441 = vmax.xlane.f32.xlu0 %v4440_v59 }
0x2aed   :  { %4558 = vrot.lane.b32.xlu1 %v7385_v38, %s6261_s16 }
0x2af1   :  { %4606 = vrot.lane.b32.xlu1 %v7385_v38, %s6262_s17 }
0x2b02   :  { %4510 = vrot.lane.b32.xlu0 %v7385_v38, %s6250_s27 }
0x2b61   :  { %v4421_v60 = vpop.xlane.xlu0 %4420 }
0x2b62   :  { %v4443_v0 = vsub.f32 %v4411_v32, %v4421_v60 }
0x2b64   :  { %v4451_v9 = vmul.f32 1.442695, %v4443_v0 }
0x2b65   :  { %v4424_v1 = vpop.xlane.xlu0 %4423 }
0x2b66   :  { %6157 = vpow2.f32 %v4451_v9  ;;  %v4444_v3 = vsub.f32 %v4412_v18, %v4424_v1 }
0x2b68   :  { %v4453_v62 = vmul.f32 1.442695, %v4444_v3 }
0x2b69   :  { %v4433_v4 = vpop.xlane.xlu1 %4432  ;;  %v4427_v5 = vpop.xlane.xlu0 %4426 }
0x2b6a   :  { %6159 = vpow2.f32 %v4453_v62  ;;  %v4447_v6 = vsub.f32 %v4415_v53, %v4433_v4  ;;  %v4445_v7 = vsub.f32 %v4413_v63, %v4427_v5 }
0x2b6c   :  { %v4455_v11 = vmul.f32 1.442695, %v4445_v7  ;;  %v4459_v16 = vmul.f32 1.442695, %v4447_v6 }
0x2b6d   :  { %v4559_v21 = vpop.permute.xlu1 %4558  ;;  %v4430_v8 = vpop.xlane.xlu0 %4429 }
0x2b6e   :  { %v4446_v12 = vsub.f32 %v4414_v42, %v4430_v8  ;;  %5794 = vmatpush3.bf16.msra.mxu1 %v4559_v21  ;;  %6161 = vpow2.f32 %v4455_v11 }
0x2b6f   :  { %5805 = vmatprep.subr.bf16.mxu1 %v6248_v13  ;;  %6163 = vpow2.f32 %v4459_v16 }
0x2b70   :  { %v6158_v22 = vpop.eup %6157  ;;  %v4457_v23 = vmul.f32 1.442695, %v4446_v12 }
0x2b71   :  { %v4436_v45 = vpop.xlane.xlu0 %4435  ;;  %v4467_v30 = vsel %vm480_vm9, %v6158_v22, 0.0  ;;  %v4607_v50 = vpop.permute.xlu1 %4606 }
0x2b72   :  { %v4448_v2 = vsub.f32 %v4416_v47, %v4436_v45  ;;  %4468 = vadd.xlane.f32.xlu0 %v4467_v30  ;;  %6165 = vpow2.f32 %v4457_v23  ;;  %v4175_v23 = vld [vmem:[%s7641_s4 + $0x1a0] sm:$0xff]  ;;  %v4176_v45 = vld [vmem:[%s7641_s4 + $0x1a8] sm:$0xff] }
0x2b73   :  { %v4732_v30 = vpack.c.bf16 %v4176_v45, %v4175_v23 }
0x2b74   :  { %v6160_v61 = vpop.eup %6159  ;;  %v4461_v32 = vmul.f32 1.442695, %v4448_v2 }
0x2b75   :  { %v4439_v24 = vpop.xlane.xlu0 %4438  ;;  %v4470_v14 = vsel %vm480_vm9, %v6160_v61, 0.0 }
0x2b76   :  { %v4449_v55 = vsub.f32 %v4417_v10, %v4439_v24  ;;  %4471 = vadd.xlane.f32.xlu0 %v4470_v14  ;;  %6167 = vpow2.f32 %v4461_v32 }
0x2b78   :  { %v6162_v18 = vpop.eup %6161  ;;  %v4463_v25 = vmul.f32 1.442695, %v4449_v55  ;;  %v4177_v55 = vld [vmem:[%s7641_s4 + $0x1b0] sm:$0xff] }
0x2b79   :  { %v4442_v34 = vpop.xlane.xlu0 %4441  ;;  %v4473_v28 = vsel %vm480_vm9, %v6162_v18, 0.0  ;;  %v6164_v29 = vpop.eup %6163 }
0x2b7a   :  { %v4450_v26 = vsub.f32 %v4418_v56, %v4442_v34  ;;  %4474 = vadd.xlane.f32.xlu0 %v4473_v28  ;;  %6169 = vpow2.f32 %v4463_v25  ;;  %v4479_v33 = vsel %vm480_vm9, %v6164_v29, 0.0 }
0x2b7c   :  { %v4465_v20 = vmul.f32 1.442695, %v4450_v26  ;;  %v6166_v51 = vpop.eup %6165 }
0x2b7d   :  { %v4511_v63 = vpop.permute.xlu0 %4510  ;;  %v4476_v36 = vsel %vm480_vm9, %v6166_v51, 0.0 }
0x2b7e   :  { %5788 = vmatpush3.bf16.msra.mxu0 %v4511_v63  ;;  %4480 = vadd.xlane.f32.xlu0 %v4479_v33  ;;  %6171 = vpow2.f32 %v4465_v20 }
0x2b7f   :  { %5799 = vmatprep.subr.bf16.mxu0 %v6248_v13 }
0x2b80   :  { %v6168_v37 = vpop.eup %6167 }
0x2b81   :  { %v4482_v53 = vsel %vm480_vm9, %v6168_v37, 0.0 }
0x2b82   :  { %4477 = vadd.xlane.f32.xlu0 %v4476_v36 }
0x2b84   :  { %v6170_v27 = vpop.eup %6169 }
0x2b85   :  { %v4485_v40 = vsel %vm480_vm9, %v6170_v27, 0.0 }
0x2b86   :  { %4483 = vadd.xlane.f32.xlu0 %v4482_v53 }
0x2b88   :  { %v6172_v41 = vpop.eup %6171 }
0x2b89   :  { %v4488_v42 = vsel %vm480_vm9, %v6172_v41, 0.0 }
0x2b8a   :  { %4486 = vadd.xlane.f32.xlu0 %v4485_v40 }
0x2b8e   :  { %4489 = vadd.xlane.f32.xlu0 %v4488_v42 }
0x2ba4   :  { %4654 = vrot.lane.b32.xlu0 %v7385_v38, %s6263_s18 }
0x2bff   :  { %v4469_v43 = vpop.xlane.xlu0 %4468 }
0x2c00   :  { %6173 = vrcp.f32 %v4469_v43 }
0x2c03   :  { %v4472_v35 = vpop.xlane.xlu0 %4471 }
0x2c04   :  { %6175 = vrcp.f32 %v4472_v35 }
0x2c07   :  { %v4475_v52 = vpop.xlane.xlu0 %4474 }
0x2c08   :  { %6177 = vrcp.f32 %v4475_v52 }
0x2c0a   :  { %v6174_v39 = vpop.eup %6173 }
0x2c0b   :  { %v4481_v44 = vpop.xlane.xlu0 %4480  ;;  %v4499_v48 = vmul.f32 %v6174_v39, %v6158_v22 }
0x2c0e   :  { %v6176_v46 = vpop.eup %6175 }
0x2c0f   :  { %v4500_v47 = vmul.f32 %v6176_v46, %v6160_v61  ;;  %v4478_v49 = vpop.xlane.xlu0 %4477 }
0x2c10   :  { %6179 = vrcp.f32 %v4478_v49 }
0x2c11   :  { %v4507_v58 = vpack.c.bf16 %v4500_v47, %v4499_v48  ;;  %6181 = vrcp.f32 %v4481_v44 }
0x2c12   :  { %v6178_v15 = vpop.eup %6177 }
0x2c13   :  { %5790 = vmatmul.mubr.msk.bf16.vlgmr.msra.gmra.mrb[124].mxu0 %vm480_vm9, %v4507_v58  ;;  %v4484_v38 = vpop.xlane.xlu0 %4483  ;;  %v4501_v56 = vmul.f32 %v6178_v15, %v6162_v18  ;;  %v4178_v18 = vld [vmem:[%s7641_s4 + $0x1b8] sm:$0xff] }
0x2c14   :  { %5800 = vmatpush3.bf16.msra.mxu0 %v4607_v50  ;;  %5801 = vmatprep.mubr.msk.bf16.mxu0 %vm6249_vm6, %v6248_v13  ;;  %6183 = vrcp.f32 %v4484_v38  ;;  %v4733_v34 = vpack.c.bf16 %v4178_v18, %v4177_v55 }
0x2c15   :  { %5811 = vmatprep.subr.bf16.mxu0 %v6248_v13 }
0x2c17   :  { %v4487_v10 = vpop.xlane.xlu0 %4486 }
0x2c18   :  { %6185 = vrcp.f32 %v4487_v10 }
0x2c1a   :  { %v6180_v54 = vpop.eup %6179 }
0x2c1b   :  { %v4502_v57 = vmul.f32 %v6180_v54, %v6166_v51  ;;  %v4490_v59 = vpop.xlane.xlu0 %4489  ;;  %v6182_v60 = vpop.eup %6181 }
0x2c1c   :  { %6187 = vrcp.f32 %v4490_v59  ;;  %v4503_v1 = vmul.f32 %v6182_v60, %v6164_v29 }
0x2c1d   :  { %v4557_v0 = vpack.c.bf16 %v4502_v57, %v4501_v56 }
0x2c1e   :  { %v6184_v9 = vpop.eup %6183 }
0x2c1f   :  { %v4504_v3 = vmul.f32 %v6184_v9, %v6168_v37  ;;  %5796 = vmatmul.mubr.msk.bf16.vlgmr.msra.gmra.mrb[132].mxu1 %vm480_vm9, %v4557_v0  ;;  %v4655_v62 = vpop.permute.xlu0 %4654 }
0x2c20   :  { %5806 = vmatpush3.bf16.msra.mxu1 %v4655_v62  ;;  %5807 = vmatprep.mubr.msk.bf16.mxu1 %vm6249_vm6, %v6248_v13  ;;  %v4806_v62 = vld [vmem:[%s7640_s3 + $0x78] sm:$0xff] }
0x2c21   :  { %v4605_v4 = vpack.c.bf16 %v4504_v3, %v4503_v1  ;;  %5819 = vmatprep.subr.bf16.mxu1 %v6248_v13  ;;  %v4805_v3 = vld [vmem:[%s7640_s3 + $0x70] sm:$0xff] }
0x2c22   :  { %v6186_v5 = vpop.eup %6185 }
0x2c23   :  { %5802 = vmatmul.mubr.msk.bf16.vlgmr.msra.gmra.mrb[128].mxu0 %vm480_vm9, %v4605_v4  ;;  %v4505_v7 = vmul.f32 %v6186_v5, %v6170_v27  ;;  %v4817_v4 = vpack.c.bf16 %v4806_v62, %v4805_v3  ;;  %v4807_v5 = vld [vmem:[%s7641_s4 + $0x200] sm:$0xff] }
0x2c24   :  { %5815 = vmatprep.mubr.msk.bf16.mxu0 %vm6249_vm6, %v6248_v13  ;;  %5812 = vmatpush3.bf16.msra.mxu0 %v4732_v30 }
0x2c25   :  { %5813 = vmatprep.subr.bf16.mxu0 %v6248_v13 }
0x2c26   :  { %v6188_v6 = vpop.eup %6187 }
0x2c27   :  { %v4506_v11 = vmul.f32 %v6188_v6, %v6172_v41  ;;  %v4808_v6 = vld [vmem:[%s7641_s4 + $0x208] sm:$0xff] }
0x2c28   :  { %5814 = vmatpush3.bf16.msra.mxu0 %v4733_v34  ;;  %v4811_v34 = vld [vmem:[%s7641_s4 + $0x220] sm:$0xff] }
0x2c29   :  { %v4653_v16 = vpack.c.bf16 %v4506_v11, %v4505_v7  ;;  %5827 = vmatprep.subr.bf16.mxu0 %v6248_v13  ;;  %v4809_v7 = vld [vmem:[%s7641_s4 + $0x210] sm:$0xff]  ;;  %v4865_v11 = vpack.c.bf16 %v4808_v6, %v4807_v5 }
0x2c2b   :  { %5808 = vmatmul.mubr.msk.bf16.vlgmr.msra.gmra.mrb[136].mxu1 %vm480_vm9, %v4653_v16  ;;  %v4810_v16 = vld [vmem:[%s7641_s4 + $0x218] sm:$0xff] }
0x2c2c   :  { %5823 = vmatprep.mubr.msk.bf16.mxu1 %vm6249_vm6, %v6248_v13 }
0x2ce6   :  { %v4550_v21 = vpop.f32.mrb[124].mxu0 }
0x2ce7   :  { %v5791_v8 = vpop.f32.mrb[125].mxu0 }
0x2ce8   :  { %v4553_v12 = vpop.f32.mrb[126].mxu0 }
0x2ce9   :  { %v5792_v22 = vpop.f32.mrb[127].mxu0 }
0x2cf2   :  { %v4598_v2 = vpop.f32.mrb[132].mxu1 }
0x2cf3   :  { %v5797_v61 = vpop.f32.mrb[133].mxu1 }
0x2cf4   :  { %v4601_v32 = vpop.f32.mrb[134].mxu1 }
0x2cf5   :  { %v5942_v24 = vpack.i.bf16 %v4601_v32, %v4598_v2  ;;  %v5798_v14 = vpop.f32.mrb[135].mxu1 }
0x2cf6   :  { %v4646_v25 = vpop.f32.mrb[128].mxu0 }
0x2cf7   :  { %v5803_v26 = vpop.f32.mrb[129].mxu0  ;;  %5943 = vrot.lane.b32.xlu1 %v5942_v24, %s6258_s9  ;;  %v5161_v24 = vld [vmem:[%s7641_s4 + $0x24a] ss:$0 sm:$0xff] }
0x2cf8   :  { %v4649_v28 = vpop.f32.mrb[130].mxu0  ;;  %v4812_v26 = vld [vmem:[%s7641_s4 + $0x228] sm:$0xff] }
0x2cf9   :  { %v5947_v29 = vpack.i.bf16 %v4649_v28, %v4646_v25  ;;  %v5804_v20 = vpop.f32.mrb[131].mxu0  ;;  %v4867_v28 = vpack.c.bf16 %v4812_v26, %v4811_v34 }
0x2cfa   :  { %v4814_v20 = vld [vmem:[%s7641_s4 + $0x238] sm:$0xff] }
0x2cfb   :  { %5948 = vrot.lane.b32.xlu0 %v5947_v29, %s6259_s14  ;;  %v4813_v29 = vld [vmem:[%s7641_s4 + $0x230] sm:$0xff] }
0x2cfe   :  { %v4694_v63 = vpop.f32.mrb[136].mxu1 }
0x2cff   :  { %v5809_v33 = vpop.f32.mrb[137].mxu1 }
0x2d00   :  { %v4697_v51 = vpop.f32.mrb[138].mxu1 }
0x2d01   :  { %v5952_v36 = vpack.i.bf16 %v4697_v51, %v4694_v63  ;;  %v5810_v37 = vpop.f32.mrb[139].mxu1  ;;  %v4868_v63 = vpack.c.bf16 %v4814_v20, %v4813_v29 }
0x2d03   :  { %5953 = vrot.lane.b32.xlu1 %v5952_v36, %s6260_s15 }
0x2d69   :  { %v5944_v53 = vpop.permute.xlu1 %5943 }
0x2d6a   :  { %v5946_v40 = vunpack.i.h.bf16 %v5944_v53  ;;  %v5945_v41 = vunpack.i.l.bf16 %v5944_v53 }
0x2d6c   :  { %v4726_v52 = vsel %vm272_vm8, %v4553_v12, %v5946_v40  ;;  %v4725_v39 = vsel %vm272_vm8, %v4550_v21, %v5945_v41  ;;  %v4866_v21 = vpack.c.bf16 %v4810_v16, %v4809_v7 }
0x2d6d   :  { %v5949_v27 = vpop.permute.xlu0 %5948 }
0x2d6e   :  { %v5951_v42 = vunpack.i.h.bf16 %v5949_v27  ;;  %v5950_v43 = vunpack.i.l.bf16 %v5949_v27 }
0x2d70   :  { %v4727_v48 = vsel %vm480_vm9, %v4725_v39, %v5950_v43  ;;  %v4728_v47 = vsel %vm480_vm9, %v4726_v52, %v5951_v42 }
0x2d75   :  { %v5954_v35 = vpop.permute.xlu1 %5953 }
0x2d76   :  { %v5956_v44 = vunpack.i.h.bf16 %v5954_v35  ;;  %v5955_v46 = vunpack.i.l.bf16 %v5954_v35 }
0x2d78   :  { %v4730_v49 = vsel %vm789_vm10, %v4728_v47, %v5956_v44  ;;  %v4729_v58 = vsel %vm789_vm10, %v4727_v48, %v5955_v46 }
0x2d79   :  { %v4731_v50 = vpack.c.bf16 %v4730_v49, %v4729_v58  ;;  %v30_v49 = vld [vmem:[%s7640_s3 + $0xc0] sm:$0xff]  ;;  %v31_v58 = vld [vmem:[%s7640_s3 + $0xc8] sm:$0xff] }
0x2d7b   :  { %5816 = vmatmul.mubr.msk.bf16.vlgmr.msra.gmra.mrb[132].mxu0 %vm153_vm5, %v4731_v50  ;;  %v4941_v50 = vpack.c.bf16 %v31_v58, %v30_v49 }
0x2d7c   :  { %5835 = vmatprep.mubr.msk.bf16.mxu0 %vm6249_vm6, %v6248_v13  ;;  %5828 = vmatpush3.bf16.msra.mxu0 %v4865_v11 }
0x2d7d   :  { %5829 = vmatprep.subr.bf16.mxu0 %v6248_v13 }
0x2d80   :  { %5830 = vmatpush3.bf16.msra.mxu0 %v4866_v21 }
0x2d81   :  { %5831 = vmatprep.subr.bf16.mxu0 %v6248_v13 }
0x2d84   :  { %5832 = vmatpush3.bf16.msra.mxu0 %v4867_v28 }
0x2d85   :  { %5833 = vmatprep.subr.bf16.mxu0 %v6248_v13 }
0x2d88   :  { %5834 = vmatpush3.bf16.msra.mxu0 %v4868_v63 }
0x2e4e   :  { %v4771_v38 = vpop.f32.mrb[132].mxu0 }
0x2e4f   :  { %v7523_v10 = vadd.f32 %v4771_v38, %v7374_v31  ;;  %v5817_v15 = vpop.f32.mrb[133].mxu0  ;;  %v4803_v31 = vld [vmem:[%s7640_s3 + $0x60] sm:$0xff]  ;;  %v32_v38 = vld [vmem:[%s7640_s3 + $0xd0] sm:$0xff] }
0x2e50   :  { %v4774_v54 = vpop.f32.mrb[134].mxu0 }
0x2e51   :  { %v7526_v56 = vadd.f32 %v4774_v54, %v7377_v17  ;;  %v5818_v57 = vpop.f32.mrb[135].mxu0  ;;  %v4781_v59 = vmul.f32 %v7523_v10, %v7523_v10  ;;  %v4804_v17 = vld [vmem:[%s7640_s3 + $0x68] sm:$0xff] }
0x2e52   :  { %v4816_v1 = vpack.c.bf16 %v4804_v17, %v4803_v31  ;;  %v5164_v17 = vld [vmem:[%s7641_s4 + $0x24b] ss:$0 sm:$0xff] }
0x2e53   :  { %v4783_v60 = vsel %vm153_vm5, %v4781_v59, 0.0  ;;  %v4782_v0 = vmul.f32 %v7526_v56, %v7526_v56 }
0x2e54   :  { %4784 = vadd.xlane.f32.xlu0 %v4783_v60  ;;  %5820 = vmatpush3.bf16.msra.mxu1 %v4816_v1 }
0x2e55   :  { %v4786_v9 = vsel %vm153_vm5, %v4782_v0, 0.0  ;;  %5821 = vmatprep.subr.bf16.mxu1 %v6248_v13 }
0x2e56   :  { %4787 = vadd.xlane.f32.xlu1 %v4786_v9 }
0x2e58   :  { %5822 = vmatpush3.bf16.msra.mxu1 %v4817_v4 }
0x2e59   :  { %5839 = vmatprep.subr.bf16.mxu1 %v6248_v13 }
0x2ee1   :  { %v4785_v8 = vpop.xlane.xlu0 %4784 }
0x2ee2   :  { %v4789_v12 = vmul.f32 0.03125, %v4785_v8 }
0x2ee3   :  { %v4788_v22 = vpop.xlane.xlu1 %4787 }
0x2ee4   :  { %v4791_v23 = vadd.f32 1e-06, %v4789_v12  ;;  %v4790_v45 = vmul.f32 0.03125, %v4788_v22 }
0x2ee6   :  { %6189 = vrsqrt.f32 %v4791_v23  ;;  %v4792_v30 = vadd.f32 1e-06, %v4790_v45  ;;  %v4987_v23 = vld [vmem:[%s7637_s0 + $0x20] sm:$0xff]  ;;  %v4988_v45 = vld [vmem:[%s7637_s0 + $0x28] sm:$0xff]  ;;  %s6264_s0 = smov [#allocation2]  }
0x2ee7   :  { %vm5029_vm13 = vcmp.ne.s32.totalorder %v4987_v23, 4294967196  ;;  %vm5030_vm14 = vcmp.ne.s32.totalorder %v4988_v45, 4294967196  ;;  %s5069_s21 = sshll.u32 %s6264_s0, 4  ;;  %s5070_s21 = int_to_ptr.vmem [resolvable:$true] %s5069_s21 }
0x2ee8   :  { %6191 = vrsqrt.f32 %v4792_v30  ;;  %s6223_s22 = scalar_lea.vmem %s5070_s21, 16  ;;  %s6227_s23 = scalar_lea.vmem %s5070_s21, 32 }
0x2ee9   :  { %p6224_p0 = scmp.ne.s32.totalorder %s5070_s21, %s6223_s22  ;;  %p6228_p1 = scmp.lt.s32.totalorder %s5070_s21, %s5070_s21 }
0x2eea   :  { %p6229_p2 = scmp.lt.s32.totalorder %s6227_s23, %s6223_s22 }
0x2eec   :  { %p6230_p3 = por %p6229_p2, %p6228_p1 }
0x2eee   :  { %p6231_p4 = pnand %p6230_p3, %p6224_p0 }
0x2ef0   :  { %v6190_v2 = vpop.eup %6189 }
0x2ef1   :  { %v4795_v61 = vmul.f32 %v6190_v2, %v7523_v10 }
0x2ef2   :  { %v6192_v32 = vpop.eup %6191 }
0x2ef3   :  { %v4796_v14 = vmul.f32 %v6192_v32, %v7526_v56  ;;  %v4801_v55 = vmul.f32 %v5161_v24, %v4795_v61 }
0x2ef5   :  { %v4802_v18 = vmul.f32 %v5161_v24, %v4796_v14 }
0x2ef7   :  { %v4815_v25 = vpack.c.bf16 %v4802_v18, %v4801_v55 }
0x2ef9   :  { %5824 = vmatmul.mubr.msk.bf16.vlgmr.msra.gmra.mrb[140].mxu1 %vm153_vm5, %v4815_v25 }
0x2efa   :  { %5843 = vmatprep.mubr.msk.bf16.mxu1 %vm6249_vm6, %v6248_v13  ;;  %5840 = vmatpush3.bf16.msra.mxu1 %v4941_v50 }
0x2efb   :  { %5841 = vmatprep.subr.bf16.mxu1 %v6248_v13 }
0x2fcc   :  { %v4855_v33 = vpop.f32.mrb[140].mxu1 }
0x2fcd   :  { %v5825_v51 = vpop.f32.mrb[141].mxu1  ;;  %v4862_v37 = vmax.f32 %v4855_v33, 0.0 }
0x2fce   :  { %v4858_v36 = vpop.f32.mrb[142].mxu1  ;;  %v5166_v51 = vsel %vm5029_vm13, 1.0, %v6248_v13 }
0x2fcf   :  { %v4863_v53 = vmax.f32 %v4858_v36, 0.0  ;;  %v5826_v27 = vpop.f32.mrb[143].mxu1  ;;  %v5049_v36 = vsel %vm5039_vm15, %v5166_v51, 0.0 }
0x2fd1   :  { %v4864_v40 = vpack.c.bf16 %v4863_v53, %v4862_v37 }
0x2fd3   :  { %5836 = vmatmul.mubr.msk.bf16.vlgmr.msra.gmra.mrb[136].mxu0 %vm70_vm4, %v4864_v40 }
0x30a6   :  { %v4906_v41 = vpop.f32.mrb[136].mxu0 }
0x30a7   :  { %v4913_v42 = vadd.f32 %v4906_v41, %v7523_v10  ;;  %v5837_v43 = vpop.f32.mrb[137].mxu0  ;;  %v33_v10 = vld [vmem:[%s7640_s3 + $0xd8] sm:$0xff] }
0x30a8   :  { %v4909_v35 = vpop.f32.mrb[138].mxu0  ;;  %v4942_v15 = vpack.c.bf16 %v33_v10, %v32_v38 }
0x30a9   :  { %v4916_v52 = vmul.f32 %v4913_v42, %v4913_v42  ;;  %v4914_v39 = vadd.f32 %v4909_v35, %v7526_v56  ;;  %v5838_v44 = vpop.f32.mrb[139].mxu0 }
0x30aa   :  { %5842 = vmatpush3.bf16.msra.mxu1 %v4942_v15 }
0x30ab   :  { %v4917_v46 = vmul.f32 %v4914_v39, %v4914_v39  ;;  %v4918_v48 = vsel %vm153_vm5, %v4916_v52, 0.0 }
0x30ac   :  { %4919 = vadd.xlane.f32.xlu0 %v4918_v48 }
0x30ad   :  { %v4921_v47 = vsel %vm153_vm5, %v4917_v46, 0.0 }
0x30b0   :  { %4922 = vadd.xlane.f32.xlu0 %v4921_v47 }
0x3139   :  { %v4920_v54 = vpop.xlane.xlu0 %4919 }
0x313a   :  { %v4924_v56 = vmul.f32 0.03125, %v4920_v54 }
0x313c   :  { %v4926_v57 = vadd.f32 1e-06, %v4924_v56 }
0x313d   :  { %v4923_v59 = vpop.xlane.xlu0 %4922 }
0x313e   :  { %6193 = vrsqrt.f32 %v4926_v57  ;;  %v4925_v60 = vmul.f32 0.03125, %v4923_v59 }
0x3140   :  { %v4927_v0 = vadd.f32 1e-06, %v4925_v60 }
0x3142   :  { %6195 = vrsqrt.f32 %v4927_v0 }
0x3148   :  { %v6194_v9 = vpop.eup %6193 }
0x3149   :  { %v4930_v31 = vmul.f32 %v6194_v9, %v4913_v42 }
0x314b   :  { %v4936_v62 = vmul.f32 %v5164_v17, %v4930_v31 }
0x314c   :  { %v6196_v1 = vpop.eup %6195 }
0x314d   :  { %v4931_v3 = vmul.f32 %v6196_v1, %v4914_v39  ;;  %v4938_v5 = vmul.f32 0.17677669, %v4936_v62 }
0x314f   :  { %v4937_v4 = vmul.f32 %v5164_v17, %v4931_v3 }
0x3151   :  { %v4939_v6 = vmul.f32 0.17677669, %v4937_v4 }
0x3153   :  { %v4940_v7 = vpack.c.bf16 %v4939_v6, %v4938_v5 }
0x3155   :  { %5844 = vmatmul.mubr.msk.bf16.vlgmr.msra.gmra.mrb[144].mxu1 %vm153_vm5, %v4940_v7 }
0x3228   :  { %v4980_v11 = vpop.f32.mrb[144].mxu1 }
0x3229   :  { %v5845_v16 = vpop.f32.mrb[145].mxu1  ;;  %v4989_v21 = vsel %vm70_vm4, %v4980_v11, -inf }
0x322a   :  { %4990 = vmax.xlane.f32.xlu1 %v4989_v21  ;;  %v4983_v8 = vpop.f32.mrb[146].mxu1 }
0x322b   :  { %v5846_v12 = vpop.f32.mrb[147].mxu1  ;;  %v4992_v22 = vsel %vm70_vm4, %v4983_v8, -inf }
0x322c   :  { %4993 = vmax.xlane.f32.xlu0 %v4992_v22 }
0x323b   :  { %5014 = vperm.xlu1 %5866, %v4987_v23  }
0x3242   :  { %5017 = vperm.xlu0 %5865, %v4988_v45  }
0x32b7   :  { %v4991_v30 = vpop.xlane.xlu1 %4990 }
0x32b8   :  { %v4995_v2 = vsub.f32 %v4980_v11, %v4991_v30 }
0x32b9   :  { %v4994_v61 = vpop.xlane.xlu0 %4993 }
0x32ba   :  { %v4997_v32 = vmul.f32 1.442695, %v4995_v2  ;;  %v4996_v24 = vsub.f32 %v4983_v8, %v4994_v61 }
0x32bb   :  { %v5015_v55 = vpop.permute.xlu1 %5014 }
0x32bc   :  { %6197 = vpow2.f32 %v4997_v32  ;;  %v4999_v14 = vmul.f32 1.442695, %v4996_v24  ;;  %vm5019_vm11 = vcmp.eq.s32.totalorder %v6333_v19, %v5015_v55 }
0x32bd   :  { %v5021_v28 = vsel %vm5019_vm11, %v4980_v11, 0.0 }
0x32be   :  { %6199 = vpow2.f32 %v4999_v14  ;;  %v5023_v63 = vsel %vm70_vm4, %v5021_v28, 0.0 }
0x32c1   :  { %v5018_v18 = vpop.permute.xlu0 %5017 }
0x32c2   :  { %vm5020_vm12 = vcmp.eq.s32.totalorder %v6333_v19, %v5018_v18  ;;  %v5167_v19 = vsel %vm5030_vm14, 1.0, %v6248_v13 }
0x32c3   :  { %v5022_v20 = vsel %vm5020_vm12, %v4983_v8, 0.0  ;;  %v5050_v37 = vsel %vm5039_vm15, %v5167_v19, 0.0 }
0x32c4   :  { %v5026_v33 = vsel %vm70_vm4, %v5022_v20, 0.0  ;;  %v5051_v53 = vadd.f32 %v5050_v37, %v5049_v36 }
0x32c6   :  { %v6198_v25 = vpop.eup %6197  ;;  %v5052_v27 = vrot.slane %v5051_v53, 4 }
0x32c7   :  { %v5001_v34 = vsel %vm70_vm4, %v6198_v25, 0.0 }
0x32c8   :  { %v6200_v26 = vpop.eup %6199  ;;  %5002 = vadd.xlane.f32.xlu1 %v5001_v34  ;;  %v5053_v41 = vadd.f32 %v5052_v27, %v5051_v53 }
0x32c9   :  { %v5004_v29 = vsel %vm70_vm4, %v6200_v26, 0.0 }
0x32ca   :  { %5005 = vadd.xlane.f32.xlu0 %v5004_v29  ;;  %v5054_v43 = vrot.slane %v5053_v41, 2 }
0x32cc   :  { %5024 = vadd.xlane.f32.xlu1 %v5023_v63  ;;  %v5055_v35 = vadd.f32 %v5054_v43, %v5053_v41 }
0x32ce   :  { %5027 = vadd.xlane.f32.xlu0 %v5026_v33  ;;  %v5056_v44 = vrot.slane %v5055_v35, 1 }
0x32d0   :  { %v5057_v50 = vadd.f32 %v5056_v44, %v5055_v35 }
0x32d2   :  { %v5058_v54 = vmax.f32 %v5057_v50, 1.0 }
0x3355   :  { %v5003_v40 = vpop.xlane.xlu1 %5002 }
0x3356   :  { %6201 = vlog2.f32 %v5003_v40 }
0x3357   :  { %v5006_v42 = vpop.xlane.xlu0 %5005 }
0x3358   :  { %6203 = vlog2.f32 %v5006_v42 }
0x3359   :  { %v5025_v13 = vpop.xlane.xlu1 %5024  ;;  %6205 = vrcp.f32 %v5058_v54 }
0x335b   :  { %v5028_v38 = vpop.xlane.xlu0 %5027 }
0x3360   :  { %v6202_v52 = vpop.eup %6201 }
0x3361   :  { %v5008_v39 = vmul.f32 0.6931472, %v6202_v52 }
0x3362   :  { %v6204_v46 = vpop.eup %6203 }
0x3363   :  { %v5010_v48 = vmul.f32 0.6931472, %v6204_v46  ;;  %v5011_v47 = vadd.f32 %v5008_v39, %v4991_v30  ;;  %v6206_v3 = vpop.eup %6205 }
0x3365   :  { %v5035_v49 = vsub.f32 %v5011_v47, %v5025_v13  ;;  %v5012_v58 = vadd.f32 %v5010_v48, %v4994_v61 }
0x3367   :  { %v5037_v10 = vmul.f32 %v5166_v51, %v5035_v49  ;;  %v5036_v15 = vsub.f32 %v5012_v58, %v5028_v38 }
0x3369   :  { %v5038_v56 = vmul.f32 %v5167_v19, %v5036_v15  ;;  %v5040_v57 = vsel %vm5039_vm15, %v5037_v10, 0.0 }
0x336b   :  { %v5041_v59 = vsel %vm5039_vm15, %v5038_v56, 0.0 }
0x336c   :  { %v5042_v60 = vadd.f32 %v5041_v59, %v5040_v57 }
0x336e   :  { %v5043_v0 = vrot.slane %v5042_v60, 4 }
0x3370   :  { %v5044_v9 = vadd.f32 %v5043_v0, %v5042_v60 }
0x3372   :  { %v5045_v31 = vrot.slane %v5044_v9, 2 }
0x3374   :  { %v5046_v17 = vadd.f32 %v5045_v31, %v5044_v9 }
0x3376   :  { %v5047_v1 = vrot.slane %v5046_v17, 1 }
0x3378   :  { %v5048_v62 = vadd.f32 %v5047_v1, %v5046_v17 }
0x337a   :  { %v5060_v4 = vmul.f32 %v6206_v3, %v5048_v62 }
0x337c   :  { %5062 = vst.msk [vmem:[#allocation2] sm:$0x1] %vm5061_vm0, %v5060_v4 }
0x337d   :  { %6234 = shalt.err (!%p6231_p4)
}
0x337e   :  { %s6235_s26 = scalar_lea.hbm %s7642_s5, 16 }
0x337f   :  { %p6236_p5 = scmp.ne.s32.totalorder %s7642_s5, %s6235_s26  ;;  %p6239_p6 = scmp.lt.u32.totalorder %s6235_s26, %s7642_s5 }
0x3381   :  { %p6241_p7 = pnand %p6239_p6, %p6236_p5 }
0x3383   :  { %6244 = shalt.err (!%p6241_p7)
}
0x3384   :  { %5072 = dma.vmem_to_hbm [thread:$0]  %s5070_s21, 16, %s7642_s5, [#allocation3]  }
0x3385   :  { %6245 = dma.done.wait [#allocation3], 16  }
0x3386   :  { %6246 = vsyncadd [#allocation3], 4294967280 }
0x3387   :  { %5076 = vsyncpa [#allocation3], 1 }

</bundles_post_ra>
